<compile_context>
chip_gen: v7x
topology: tpu7x:2x2x1
jax: 0.10.0
libtpu: 0.0.40
codegen_flags: <defaults>
</compile_context>

<pallas_src>
import functools

import jax
import jax.numpy as jnp
from jax.experimental import pallas as pl
from jax.experimental.pallas import tpu as pltpu


def _round_up(x, m):
    return (x + m - 1) // m * m


# --------------------------------------------------------------------------
# Fused 3x3 conv (pad=1) + bias + ReLU (+ optional fused 2x2 max-pool)
# --------------------------------------------------------------------------
def _conv3x3_kernel(x_ref, w_ref, b_ref, o_ref, *, TH, W, Cin, Cp, pool):
    # x_ref : (H+2, W+2, Cin)  bf16  whole padded image of batch b
    #                                 (VMEM-resident across all row tiles r)
    # w_ref : (3, 3, Cin, Cp)  bf16  full weight, resident across the grid
    # b_ref : (1, Cp)          f32
    # o_ref : (TH, W, Cp)  or  (TH//2, W//2, Cp)   bf16
    r = pl.program_id(1)
    row0 = pl.multiple_of(r * TH, TH)
    win = x_ref[pl.ds(row0, TH + 2), :, :]                # (TH+2, W+2, Cin)

    acc = jnp.zeros((TH * W, Cp), jnp.float32)
    for ky in range(3):
        rows = win[ky:ky + TH]                            # (TH, W+2, Cin)
        for kx in range(3):
            lhs = rows[:, kx:kx + W, :].reshape(TH * W, Cin)
            acc = acc + jnp.dot(lhs, w_ref[ky, kx],
                                preferred_element_type=jnp.float32)

    y = jnp.maximum(acc + b_ref[...], 0.0).reshape(TH, W, Cp)
    if pool:
        y = y.reshape(TH // 2, 2, W // 2, 2, Cp)
        y = jnp.maximum(y[:, 0], y[:, 1])                 # max over row pair
        y = jnp.maximum(y[:, :, 0], y[:, :, 1])           # max over col pair
    o_ref[...] = y.astype(o_ref.dtype)


def conv3x3_relu(x, w, b, pool):
    """x:(B,H,W,Cin) bf16 NHWC, w:(3,3,Cin,Cp) bf16, b:(1,Cp) f32.

    Returns bf16 NHWC with Cp (=Cout padded to 128) channels; spatial dims are
    halved when `pool` (fused 2x2/2 max-pool).
    """
    B, H, W, Cin = x.shape
    Cp = w.shape[-1]
    TH = 8 if (H % 8 == 0 and H > 8) else H               # rows per grid step
    if pool:
        assert TH % 2 == 0 and W % 2 == 0
        THo, Ho, Wo = TH // 2, H // 2, W // 2
    else:
        THo, Ho, Wo = TH, H, W
    xp = jnp.pad(x.astype(jnp.bfloat16), ((0, 0), (1, 1), (1, 1), (0, 0)))
    kern = functools.partial(_conv3x3_kernel, TH=TH, W=W, Cin=Cin, Cp=Cp,
                             pool=pool)
    # NOTE: at full 224-res the per-batch image block would need a raised
    # vmem_limit_bytes (or H chunking); at these shapes defaults are fine.
    return pl.pallas_call(
        kern,
        out_shape=jax.ShapeDtypeStruct((B, Ho, Wo, Cp), jnp.bfloat16),
        grid_spec=pltpu.PrefetchScalarGridSpec(
            num_scalar_prefetch=0,
            grid=(B, H // TH),
            in_specs=[
                # whole padded image of batch b; index ignores r -> DMA'd once per b
                pl.BlockSpec((None, H + 2, W + 2, Cin),
                             lambda bb, rr: (bb, 0, 0, 0)),
                # full weight, constant index -> DMA'd once for the whole grid
                pl.BlockSpec((3, 3, Cin, Cp), lambda bb, rr: (0, 0, 0, 0)),
                pl.BlockSpec((1, Cp), lambda bb, rr: (0, 0)),
            ],
            out_specs=pl.BlockSpec((None, THo, Wo, Cp),
                                   lambda bb, rr: (bb, rr, 0, 0)),
        ),
        compiler_params=pltpu.CompilerParams(
            dimension_semantics=("parallel", "arbitrary")),
    )(xp, w, b)


# --------------------------------------------------------------------------
# Tiled matmul + bias (+ optional ReLU)  --  classifier layers
# --------------------------------------------------------------------------
def _mm_bias_act_kernel(x_ref, w_ref, b_ref, o_ref, acc_ref, *, relu):
    @pl.when(pl.program_id(2) == 0)
    def _():
        acc_ref[...] = jnp.zeros_like(acc_ref)

    acc_ref[...] += jnp.dot(x_ref[...], w_ref[...],
                            preferred_element_type=jnp.float32)

    @pl.when(pl.program_id(2) == pl.num_programs(2) - 1)
    def _():
        y = acc_ref[...] + b_ref[...]
        if relu:
            y = jnp.maximum(y, 0.0)
        o_ref[...] = y.astype(o_ref.dtype)


def pallas_linear(x, layer, relu, out_dtype):
    """y = x @ W + b with pre-padded bf16 (Kp,Np) weight and (1,Np) f32 bias."""
    wp, bp = layer["w"], layer["b"]
    n_out, tn, tk = layer["n"], layer["tn"], layer["tk"]
    M, K = x.shape
    Kp, Np = wp.shape
    tm = min(256, _round_up(M, 8))
    Mp = _round_up(M, tm)
    xp = jnp.pad(x.astype(jnp.bfloat16), ((0, Mp - M), (0, Kp - K)))
    kern = functools.partial(_mm_bias_act_kernel, relu=relu)
    out = pl.pallas_call(
        kern,
        out_shape=jax.ShapeDtypeStruct((Mp, Np), out_dtype),
        grid_spec=pltpu.PrefetchScalarGridSpec(
            num_scalar_prefetch=0,
            grid=(Mp // tm, Np // tn, Kp // tk),
            in_specs=[
                pl.BlockSpec((tm, tk), lambda i, j, k: (i, k)),
                pl.BlockSpec((tk, tn), lambda i, j, k: (k, j)),
                pl.BlockSpec((1, tn), lambda i, j, k: (0, j)),
            ],
            out_specs=pl.BlockSpec((tm, tn), lambda i, j, k: (i, j)),
            scratch_shapes=[pltpu.VMEM((tm, tn), jnp.float32)],
        ),
        compiler_params=pltpu.CompilerParams(
            dimension_semantics=("parallel", "parallel", "arbitrary")),
    )(xp, wp, bp)
    return out[:M, :n_out]


# --------------------------------------------------------------------------
# VGG forward (matches torch: features -> view(B,-1) -> classifier)
# --------------------------------------------------------------------------
def vgg_forward(x_nchw, feat_layers, cls_layers):
    x = jnp.transpose(x_nchw, (0, 2, 3, 1)).astype(jnp.bfloat16)  # NCHW->NHWC once
    for layer in feat_layers:
        x = conv3x3_relu(x, layer["w"], layer["b"], layer["pool"])
    # Flatten in HWC order with padded channels; W1 was pre-folded to match.
    B = x.shape[0]
    x = x.reshape(B, -1)
    # nn.Linear: y = x @ W.T + b ; Dropout == identity (eval).
    x = pallas_linear(x, cls_layers[0], relu=True, out_dtype=jnp.bfloat16)
    x = pallas_linear(x, cls_layers[1], relu=True, out_dtype=jnp.bfloat16)
    x = pallas_linear(x, cls_layers[2], relu=False, out_dtype=jnp.float32)
    return x


# --------------------------------------------------------------------------
# Deterministic parameter init (mirrors VGG._initialize_weights)
# --------------------------------------------------------------------------
def make_feature_params(key, cfg, in_channels):
    layers = []
    c_real, c_pad = in_channels, in_channels
    i = 0
    while i < len(cfg):
        v = cfg[i]
        if v == "M":
            # Never occurs in VGG cfgs (every 'M' follows a conv and is fused).
            raise NotImplementedError("standalone MaxPool ('M' not following a conv)")
        key, k1 = jax.random.split(key)
        fan_out = v * 3 * 3  # kaiming_normal_, mode='fan_out', relu
        std = (2.0 / fan_out) ** 0.5
        w_oihw = jax.random.normal(k1, (v, c_real, 3, 3), jnp.float32) * std
        cp = _round_up(v, 128)
        # (ky,kx,Cin,Cout), Cin/Cout zero-padded to the padded channel counts.
        w = jnp.transpose(w_oihw, (2, 3, 1, 0))
        w = jnp.pad(w, ((0, 0), (0, 0), (0, c_pad - c_real), (0, cp - v)))
        w = w.astype(jnp.bfloat16)
        b = jnp.zeros((1, cp), jnp.float32)
        pool = (i + 1 < len(cfg) and cfg[i + 1] == "M")
        layers.append({"w": w, "b": b, "pool": pool})
        c_real, c_pad = v, cp
        i += 2 if pool else 1
    return layers, c_real, c_pad, key


def make_classifier_params(key, c_real, c_pad, hf, wf, hidden, num_classes,
                           tn_max=512, tk_max=2048):
    in_features = c_real * hf * wf
    key, k1, k2, k3 = jax.random.split(key, 4)
    # nn.init.normal_(weight, 0, 0.01); bias = 0
    w1 = jax.random.normal(k1, (hidden, in_features), jnp.float32) * 0.01
    w2 = jax.random.normal(k2, (hidden, hidden), jnp.float32) * 0.01
    w3 = jax.random.normal(k3, (num_classes, hidden), jnp.float32) * 0.01

    # Fold torch's CHW flatten order AND the conv-stack channel padding into
    # W1's input dim so the activation needs neither transpose nor slicing.
    w1f = jnp.transpose(w1.reshape(hidden, c_real, hf, wf), (0, 2, 3, 1))
    w1f = jnp.pad(w1f, ((0, 0), (0, 0), (0, 0), (0, c_pad - c_real)))
    w1f = w1f.reshape(hidden, hf * wf * c_pad)

    def prep(w_out_in, n_out):
        K = w_out_in.shape[1]
        tk = min(tk_max, _round_up(K, 128))
        tn = min(tn_max, _round_up(n_out, 128))
        Kp, Np = _round_up(K, tk), _round_up(n_out, tn)
        wp = jnp.pad(w_out_in.T, ((0, Kp - K), (0, Np - n_out))).astype(jnp.bfloat16)
        bp = jnp.zeros((1, Np), jnp.float32)
        return {"w": wp, "b": bp, "n": n_out, "tn": tn, "tk": tk}

    layers = [prep(w1f, hidden), prep(w2, hidden), prep(w3, num_classes)]
    return layers, key


if __name__ == "__main__":
    key = jax.random.PRNGKey(0)

    # Scaled-down configuration with the same structure as the reference module
    # (conv, conv+pool, conv+pool -> 3x Linear with ReLU/Dropout between).
    cfg = [8, 8, "M", 16, "M"]
    B, Cin, H, W = 2, 3, 16, 16
    hidden, num_classes = 32, 10

    feat_layers, c_real, c_pad, key = make_feature_params(key, cfg, Cin)
    n_pool = sum(1 for v in cfg if v == "M")
    hf, wf = H // (2 ** n_pool), W // (2 ** n_pool)   # analogue of 7x7
    cls_layers, key = make_classifier_params(key, c_real, c_pad, hf, wf,
                                             hidden, num_classes)

    key, kx = jax.random.split(key)
    x = jax.random.normal(kx, (B, Cin, H, W), jnp.float32)

    fwd = jax.jit(functools.partial(vgg_forward,
                                    feat_layers=feat_layers,
                                    cls_layers=cls_layers))
    out = fwd(x)
    jax.block_until_ready(out)
    assert out.shape == (B, num_classes), out.shape
    assert out.dtype == jnp.float32
    print("KERNEL_OK")
</pallas_src>

<mosaic_0001>
module attributes {stable_mosaic.version = 11 : i64} {
  func.func @_conv3x3_kernel(%arg0: i32, %arg1: i32, %arg2: memref<1x18x18x128xbf16, #tpu.memory_space<vmem>>, %arg3: memref<3x3x128x128xbf16, #tpu.memory_space<vmem>>, %arg4: memref<1x128xf32, #tpu.memory_space<vmem>>, %arg5: memref<1x4x8x128xbf16, #tpu.memory_space<vmem>>) attributes {dimension_semantics = [#tpu.dimension_semantics<parallel>, #tpu.dimension_semantics<arbitrary>], iteration_bounds = array<i64: 2, 2>, scalar_prefetch = 0 : i64, scratch_operands = 0 : i64, tpu.core_type = #tpu.core_type<tc>, window_params = [{transform_indices = @transform_0, window_bounds = array<i64: 1, 18, 18, 128>}, {pipeline_mode = #tpu.pipeline_mode<synchronous>, transform_indices = @transform_1, window_bounds = array<i64: 3, 3, 128, 128>}, {pipeline_mode = #tpu.pipeline_mode<synchronous>, transform_indices = @transform_2, window_bounds = array<i64: 1, 128>}, {transform_indices = @transform_3, window_bounds = array<i64: 1, 4, 8, 128>}]} {
    %c8_i32 = arith.constant 8 : i32
    %0 = arith.muli %arg1, %c8_i32 : i32
    %1 = tpu.assume_multiple %0, 8 : i32
    %c0 = arith.constant 0 : index
    %2 = arith.index_cast %1 : i32 to index
    %c0_0 = arith.constant 0 : index
    %c0_1 = arith.constant 0 : index
    %3 = vector.load %arg2[%c0, %2, %c0_0, %c0_1] : memref<1x18x18x128xbf16, #tpu.memory_space<vmem>>, vector<1x10x18x128xbf16>
    %4 = vector.shape_cast %3 : vector<1x10x18x128xbf16> to vector<10x18x128xbf16>
    %cst = arith.constant 0.000000e+00 : f32
    %5 = vector.broadcast %cst : f32 to vector<128x128xf32>
    %6 = vector.extract_strided_slice %4 {offsets = [0, 0, 0], sizes = [8, 18, 128], strides = [1, 1, 1]} : vector<10x18x128xbf16> to vector<8x18x128xbf16>
    %7 = vector.extract_strided_slice %6 {offsets = [0, 0, 0], sizes = [8, 16, 128], strides = [1, 1, 1]} : vector<8x18x128xbf16> to vector<8x16x128xbf16>
    %8 = vector.shape_cast %7 : vector<8x16x128xbf16> to vector<128x128xbf16>
    %c0_2 = arith.constant 0 : index
    %c0_3 = arith.constant 0 : index
    %c0_4 = arith.constant 0 : index
    %c0_5 = arith.constant 0 : index
    %9 = vector.load %arg3[%c0_2, %c0_3, %c0_4, %c0_5] : memref<3x3x128x128xbf16, #tpu.memory_space<vmem>>, vector<1x1x128x128xbf16>
    %10 = vector.shape_cast %9 : vector<1x1x128x128xbf16> to vector<128x128xbf16>
    %cst_6 = arith.constant dense<0.000000e+00> : vector<128x128xf32>
    %11 = tpu.matmul %8, %10, %cst_6 {dimension_numbers = #tpu.dot_dimension_numbers<[1], [0], [0], [1], [0, 0, 1, 1], [], []>} : vector<128x128xbf16>, vector<128x128xbf16>, vector<128x128xf32> -> vector<128x128xf32>
    %12 = arith.addf %5, %11 : vector<128x128xf32>
    %13 = vector.extract_strided_slice %6 {offsets = [0, 1, 0], sizes = [8, 16, 128], strides = [1, 1, 1]} : vector<8x18x128xbf16> to vector<8x16x128xbf16>
    %14 = vector.shape_cast %13 : vector<8x16x128xbf16> to vector<128x128xbf16>
    %c0_7 = arith.constant 0 : index
    %c1 = arith.constant 1 : index
    %c0_8 = arith.constant 0 : index
    %c0_9 = arith.constant 0 : index
    %15 = vector.load %arg3[%c0_7, %c1, %c0_8, %c0_9] : memref<3x3x128x128xbf16, #tpu.memory_space<vmem>>, vector<1x1x128x128xbf16>
    %16 = vector.shape_cast %15 : vector<1x1x128x128xbf16> to vector<128x128xbf16>
    %cst_10 = arith.constant dense<0.000000e+00> : vector<128x128xf32>
    %17 = tpu.matmul %14, %16, %cst_10 {dimension_numbers = #tpu.dot_dimension_numbers<[1], [0], [0], [1], [0, 0, 1, 1], [], []>} : vector<128x128xbf16>, vector<128x128xbf16>, vector<128x128xf32> -> vector<128x128xf32>
    %18 = arith.addf %12, %17 : vector<128x128xf32>
    %19 = vector.extract_strided_slice %6 {offsets = [0, 2, 0], sizes = [8, 16, 128], strides = [1, 1, 1]} : vector<8x18x128xbf16> to vector<8x16x128xbf16>
    %20 = vector.shape_cast %19 : vector<8x16x128xbf16> to vector<128x128xbf16>
    %c0_11 = arith.constant 0 : index
    %c2 = arith.constant 2 : index
    %c0_12 = arith.constant 0 : index
    %c0_13 = arith.constant 0 : index
    %21 = vector.load %arg3[%c0_11, %c2, %c0_12, %c0_13] : memref<3x3x128x128xbf16, #tpu.memory_space<vmem>>, vector<1x1x128x128xbf16>
    %22 = vector.shape_cast %21 : vector<1x1x128x128xbf16> to vector<128x128xbf16>
    %cst_14 = arith.constant dense<0.000000e+00> : vector<128x128xf32>
    %23 = tpu.matmul %20, %22, %cst_14 {dimension_numbers = #tpu.dot_dimension_numbers<[1], [0], [0], [1], [0, 0, 1, 1], [], []>} : vector<128x128xbf16>, vector<128x128xbf16>, vector<128x128xf32> -> vector<128x128xf32>
    %24 = arith.addf %18, %23 : vector<128x128xf32>
    %25 = vector.extract_strided_slice %4 {offsets = [1, 0, 0], sizes = [8, 18, 128], strides = [1, 1, 1]} : vector<10x18x128xbf16> to vector<8x18x128xbf16>
    %26 = vector.extract_strided_slice %25 {offsets = [0, 0, 0], sizes = [8, 16, 128], strides = [1, 1, 1]} : vector<8x18x128xbf16> to vector<8x16x128xbf16>
    %27 = vector.shape_cast %26 : vector<8x16x128xbf16> to vector<128x128xbf16>
    %c1_15 = arith.constant 1 : index
    %c0_16 = arith.constant 0 : index
    %c0_17 = arith.constant 0 : index
    %c0_18 = arith.constant 0 : index
    %28 = vector.load %arg3[%c1_15, %c0_16, %c0_17, %c0_18] : memref<3x3x128x128xbf16, #tpu.memory_space<vmem>>, vector<1x1x128x128xbf16>
    %29 = vector.shape_cast %28 : vector<1x1x128x128xbf16> to vector<128x128xbf16>
    %cst_19 = arith.constant dense<0.000000e+00> : vector<128x128xf32>
    %30 = tpu.matmul %27, %29, %cst_19 {dimension_numbers = #tpu.dot_dimension_numbers<[1], [0], [0], [1], [0, 0, 1, 1], [], []>} : vector<128x128xbf16>, vector<128x128xbf16>, vector<128x128xf32> -> vector<128x128xf32>
    %31 = arith.addf %24, %30 : vector<128x128xf32>
    %32 = vector.extract_strided_slice %25 {offsets = [0, 1, 0], sizes = [8, 16, 128], strides = [1, 1, 1]} : vector<8x18x128xbf16> to vector<8x16x128xbf16>
    %33 = vector.shape_cast %32 : vector<8x16x128xbf16> to vector<128x128xbf16>
    %c1_20 = arith.constant 1 : index
    %c1_21 = arith.constant 1 : index
    %c0_22 = arith.constant 0 : index
    %c0_23 = arith.constant 0 : index
    %34 = vector.load %arg3[%c1_20, %c1_21, %c0_22, %c0_23] : memref<3x3x128x128xbf16, #tpu.memory_space<vmem>>, vector<1x1x128x128xbf16>
    %35 = vector.shape_cast %34 : vector<1x1x128x128xbf16> to vector<128x128xbf16>
    %cst_24 = arith.constant dense<0.000000e+00> : vector<128x128xf32>
    %36 = tpu.matmul %33, %35, %cst_24 {dimension_numbers = #tpu.dot_dimension_numbers<[1], [0], [0], [1], [0, 0, 1, 1], [], []>} : vector<128x128xbf16>, vector<128x128xbf16>, vector<128x128xf32> -> vector<128x128xf32>
    %37 = arith.addf %31, %36 : vector<128x128xf32>
    %38 = vector.extract_strided_slice %25 {offsets = [0, 2, 0], sizes = [8, 16, 128], strides = [1, 1, 1]} : vector<8x18x128xbf16> to vector<8x16x128xbf16>
    %39 = vector.shape_cast %38 : vector<8x16x128xbf16> to vector<128x128xbf16>
    %c1_25 = arith.constant 1 : index
    %c2_26 = arith.constant 2 : index
    %c0_27 = arith.constant 0 : index
    %c0_28 = arith.constant 0 : index
    %40 = vector.load %arg3[%c1_25, %c2_26, %c0_27, %c0_28] : memref<3x3x128x128xbf16, #tpu.memory_space<vmem>>, vector<1x1x128x128xbf16>
    %41 = vector.shape_cast %40 : vector<1x1x128x128xbf16> to vector<128x128xbf16>
    %cst_29 = arith.constant dense<0.000000e+00> : vector<128x128xf32>
    %42 = tpu.matmul %39, %41, %cst_29 {dimension_numbers = #tpu.dot_dimension_numbers<[1], [0], [0], [1], [0, 0, 1, 1], [], []>} : vector<128x128xbf16>, vector<128x128xbf16>, vector<128x128xf32> -> vector<128x128xf32>
    %43 = arith.addf %37, %42 : vector<128x128xf32>
    %44 = vector.extract_strided_slice %4 {offsets = [2, 0, 0], sizes = [8, 18, 128], strides = [1, 1, 1]} : vector<10x18x128xbf16> to vector<8x18x128xbf16>
    %45 = vector.extract_strided_slice %44 {offsets = [0, 0, 0], sizes = [8, 16, 128], strides = [1, 1, 1]} : vector<8x18x128xbf16> to vector<8x16x128xbf16>
    %46 = vector.shape_cast %45 : vector<8x16x128xbf16> to vector<128x128xbf16>
    %c2_30 = arith.constant 2 : index
    %c0_31 = arith.constant 0 : index
    %c0_32 = arith.constant 0 : index
    %c0_33 = arith.constant 0 : index
    %47 = vector.load %arg3[%c2_30, %c0_31, %c0_32, %c0_33] : memref<3x3x128x128xbf16, #tpu.memory_space<vmem>>, vector<1x1x128x128xbf16>
    %48 = vector.shape_cast %47 : vector<1x1x128x128xbf16> to vector<128x128xbf16>
    %cst_34 = arith.constant dense<0.000000e+00> : vector<128x128xf32>
    %49 = tpu.matmul %46, %48, %cst_34 {dimension_numbers = #tpu.dot_dimension_numbers<[1], [0], [0], [1], [0, 0, 1, 1], [], []>} : vector<128x128xbf16>, vector<128x128xbf16>, vector<128x128xf32> -> vector<128x128xf32>
    %50 = arith.addf %43, %49 : vector<128x128xf32>
    %51 = vector.extract_strided_slice %44 {offsets = [0, 1, 0], sizes = [8, 16, 128], strides = [1, 1, 1]} : vector<8x18x128xbf16> to vector<8x16x128xbf16>
    %52 = vector.shape_cast %51 : vector<8x16x128xbf16> to vector<128x128xbf16>
    %c2_35 = arith.constant 2 : index
    %c1_36 = arith.constant 1 : index
    %c0_37 = arith.constant 0 : index
    %c0_38 = arith.constant 0 : index
    %53 = vector.load %arg3[%c2_35, %c1_36, %c0_37, %c0_38] : memref<3x3x128x128xbf16, #tpu.memory_space<vmem>>, vector<1x1x128x128xbf16>
    %54 = vector.shape_cast %53 : vector<1x1x128x128xbf16> to vector<128x128xbf16>
    %cst_39 = arith.constant dense<0.000000e+00> : vector<128x128xf32>
    %55 = tpu.matmul %52, %54, %cst_39 {dimension_numbers = #tpu.dot_dimension_numbers<[1], [0], [0], [1], [0, 0, 1, 1], [], []>} : vector<128x128xbf16>, vector<128x128xbf16>, vector<128x128xf32> -> vector<128x128xf32>
    %56 = arith.addf %50, %55 : vector<128x128xf32>
    %57 = vector.extract_strided_slice %44 {offsets = [0, 2, 0], sizes = [8, 16, 128], strides = [1, 1, 1]} : vector<8x18x128xbf16> to vector<8x16x128xbf16>
    %58 = vector.shape_cast %57 : vector<8x16x128xbf16> to vector<128x128xbf16>
    %c2_40 = arith.constant 2 : index
    %c2_41 = arith.constant 2 : index
    %c0_42 = arith.constant 0 : index
    %c0_43 = arith.constant 0 : index
    %59 = vector.load %arg3[%c2_40, %c2_41, %c0_42, %c0_43] : memref<3x3x128x128xbf16, #tpu.memory_space<vmem>>, vector<1x1x128x128xbf16>
    %60 = vector.shape_cast %59 : vector<1x1x128x128xbf16> to vector<128x128xbf16>
    %cst_44 = arith.constant dense<0.000000e+00> : vector<128x128xf32>
    %61 = tpu.matmul %58, %60, %cst_44 {dimension_numbers = #tpu.dot_dimension_numbers<[1], [0], [0], [1], [0, 0, 1, 1], [], []>} : vector<128x128xbf16>, vector<128x128xbf16>, vector<128x128xf32> -> vector<128x128xf32>
    %62 = arith.addf %56, %61 : vector<128x128xf32>
    %c0_45 = arith.constant 0 : index
    %c0_46 = arith.constant 0 : index
    %63 = vector.load %arg4[%c0_45, %c0_46] : memref<1x128xf32, #tpu.memory_space<vmem>>, vector<1x128xf32>
    %64 = vector.broadcast %63 : vector<1x128xf32> to vector<128x128xf32>
    %65 = arith.addf %62, %64 : vector<128x128xf32>
    %cst_47 = arith.constant 0.000000e+00 : f32
    %66 = vector.broadcast %cst_47 : f32 to vector<128x128xf32>
    %67 = arith.maximumf %65, %66 : vector<128x128xf32>
    %68 = vector.shape_cast %67 : vector<128x128xf32> to vector<8x16x128xf32>
    %69 = vector.shape_cast %68 : vector<8x16x128xf32> to vector<4x2x8x2x128xf32>
    %70 = vector.extract_strided_slice %69 {offsets = [0, 0, 0, 0, 0], sizes = [4, 1, 8, 2, 128], strides = [1, 1, 1, 1, 1]} : vector<4x2x8x2x128xf32> to vector<4x1x8x2x128xf32>
    %71 = vector.shape_cast %70 : vector<4x1x8x2x128xf32> to vector<4x8x2x128xf32>
    %72 = vector.extract_strided_slice %69 {offsets = [0, 1, 0, 0, 0], sizes = [4, 1, 8, 2, 128], strides = [1, 1, 1, 1, 1]} : vector<4x2x8x2x128xf32> to vector<4x1x8x2x128xf32>
    %73 = vector.shape_cast %72 : vector<4x1x8x2x128xf32> to vector<4x8x2x128xf32>
    %74 = arith.maximumf %71, %73 : vector<4x8x2x128xf32>
    %75 = vector.extract_strided_slice %74 {offsets = [0, 0, 0, 0], sizes = [4, 8, 1, 128], strides = [1, 1, 1, 1]} : vector<4x8x2x128xf32> to vector<4x8x1x128xf32>
    %76 = vector.shape_cast %75 : vector<4x8x1x128xf32> to vector<4x8x128xf32>
    %77 = vector.extract_strided_slice %74 {offsets = [0, 0, 1, 0], sizes = [4, 8, 1, 128], strides = [1, 1, 1, 1]} : vector<4x8x2x128xf32> to vector<4x8x1x128xf32>
    %78 = vector.shape_cast %77 : vector<4x8x1x128xf32> to vector<4x8x128xf32>
    %79 = arith.maximumf %76, %78 : vector<4x8x128xf32>
    %80 = arith.truncf %79 : vector<4x8x128xf32> to vector<4x8x128xbf16>
    %c0_48 = arith.constant 0 : index
    %c0_49 = arith.constant 0 : index
    %c0_50 = arith.constant 0 : index
    %c0_51 = arith.constant 0 : index
    %81 = vector.load %arg5[%c0_48, %c0_49, %c0_50, %c0_51] : memref<1x4x8x128xbf16, #tpu.memory_space<vmem>>, vector<1x4x8x128xbf16>
    %82 = vector.shape_cast %81 : vector<1x4x8x128xbf16> to vector<4x8x128xbf16>
    %83 = vector.shape_cast %80 : vector<4x8x128xbf16> to vector<1x4x8x128xbf16>
    tpu.vector_store %arg5[%c0_48, %c0_49, %c0_50, %c0_51], %83 {strides = array<i32>} : memref<1x4x8x128xbf16, #tpu.memory_space<vmem>>, vector<1x4x8x128xbf16>,
    return
  }
  func.func @transform_0(%arg0: i32, %arg1: i32) -> (i32, i32, i32, i32) {
    %c0_i32 = arith.constant 0 : i32
    %c0_i32_0 = arith.constant 0 : i32
    %c0_i32_1 = arith.constant 0 : i32
    %c0_i32_2 = arith.constant 0 : i32
    return %arg0, %c0_i32, %c0_i32_0, %c0_i32_1 : i32, i32, i32, i32
  }
  func.func @transform_1(%arg0: i32, %arg1: i32) -> (i32, i32, i32, i32) {
    %c0_i32 = arith.constant 0 : i32
    %c0_i32_0 = arith.constant 0 : i32
    %c0_i32_1 = arith.constant 0 : i32
    %c0_i32_2 = arith.constant 0 : i32
    %c0_i32_3 = arith.constant 0 : i32
    return %c0_i32, %c0_i32_0, %c0_i32_1, %c0_i32_2 : i32, i32, i32, i32
  }
  func.func @transform_2(%arg0: i32, %arg1: i32) -> (i32, i32) {
    %c0_i32 = arith.constant 0 : i32
    %c0_i32_0 = arith.constant 0 : i32
    %c0_i32_1 = arith.constant 0 : i32
    return %c0_i32, %c0_i32_0 : i32, i32
  }
  func.func @transform_3(%arg0: i32, %arg1: i32) -> (i32, i32, i32, i32) {
    %c0_i32 = arith.constant 0 : i32
    %c0_i32_0 = arith.constant 0 : i32
    %c0_i32_1 = arith.constant 0 : i32
    return %arg0, %arg1, %c0_i32, %c0_i32_0 : i32, i32, i32, i32
  }
}

module attributes {stable_mosaic.version = 11 : i64} {
  func.func @_conv3x3_kernel(%arg0: i32, %arg1: i32, %arg2: memref<1x18x18x3xbf16, #tpu.memory_space<vmem>>, %arg3: memref<3x3x3x128xbf16, #tpu.memory_space<vmem>>, %arg4: memref<1x128xf32, #tpu.memory_space<vmem>>, %arg5: memref<1x8x16x128xbf16, #tpu.memory_space<vmem>>) attributes {dimension_semantics = [#tpu.dimension_semantics<parallel>, #tpu.dimension_semantics<arbitrary>], iteration_bounds = array<i64: 2, 2>, scalar_prefetch = 0 : i64, scratch_operands = 0 : i64, tpu.core_type = #tpu.core_type<tc>, window_params = [{transform_indices = @transform_0, window_bounds = array<i64: 1, 18, 18, 3>}, {pipeline_mode = #tpu.pipeline_mode<synchronous>, transform_indices = @transform_1, window_bounds = array<i64: 3, 3, 3, 128>}, {pipeline_mode = #tpu.pipeline_mode<synchronous>, transform_indices = @transform_2, window_bounds = array<i64: 1, 128>}, {transform_indices = @transform_3, window_bounds = array<i64: 1, 8, 16, 128>}]} {
    %c8_i32 = arith.constant 8 : i32
    %0 = arith.muli %arg1, %c8_i32 : i32
    %1 = tpu.assume_multiple %0, 8 : i32
    %c0 = arith.constant 0 : index
    %2 = arith.index_cast %1 : i32 to index
    %c0_0 = arith.constant 0 : index
    %c0_1 = arith.constant 0 : index
    %3 = vector.load %arg2[%c0, %2, %c0_0, %c0_1] : memref<1x18x18x3xbf16, #tpu.memory_space<vmem>>, vector<1x10x18x3xbf16>
    %4 = vector.shape_cast %3 : vector<1x10x18x3xbf16> to vector<10x18x3xbf16>
    %cst = arith.constant 0.000000e+00 : f32
    %5 = vector.broadcast %cst : f32 to vector<128x128xf32>
    %6 = vector.extract_strided_slice %4 {offsets = [0, 0, 0], sizes = [8, 18, 3], strides = [1, 1, 1]} : vector<10x18x3xbf16> to vector<8x18x3xbf16>
    %7 = vector.extract_strided_slice %6 {offsets = [0, 0, 0], sizes = [8, 16, 3], strides = [1, 1, 1]} : vector<8x18x3xbf16> to vector<8x16x3xbf16>
    %8 = vector.shape_cast %7 : vector<8x16x3xbf16> to vector<128x3xbf16>
    %c0_2 = arith.constant 0 : index
    %c0_3 = arith.constant 0 : index
    %c0_4 = arith.constant 0 : index
    %c0_5 = arith.constant 0 : index
    %9 = vector.load %arg3[%c0_2, %c0_3, %c0_4, %c0_5] : memref<3x3x3x128xbf16, #tpu.memory_space<vmem>>, vector<1x1x3x128xbf16>
    %10 = vector.shape_cast %9 : vector<1x1x3x128xbf16> to vector<3x128xbf16>
    %cst_6 = arith.constant dense<0.000000e+00> : vector<128x128xf32>
    %11 = tpu.matmul %8, %10, %cst_6 {dimension_numbers = #tpu.dot_dimension_numbers<[1], [0], [0], [1], [0, 0, 1, 1], [], []>} : vector<128x3xbf16>, vector<3x128xbf16>, vector<128x128xf32> -> vector<128x128xf32>
    %12 = arith.addf %5, %11 : vector<128x128xf32>
    %13 = vector.extract_strided_slice %6 {offsets = [0, 1, 0], sizes = [8, 16, 3], strides = [1, 1, 1]} : vector<8x18x3xbf16> to vector<8x16x3xbf16>
    %14 = vector.shape_cast %13 : vector<8x16x3xbf16> to vector<128x3xbf16>
    %c0_7 = arith.constant 0 : index
    %c1 = arith.constant 1 : index
    %c0_8 = arith.constant 0 : index
    %c0_9 = arith.constant 0 : index
    %15 = vector.load %arg3[%c0_7, %c1, %c0_8, %c0_9] : memref<3x3x3x128xbf16, #tpu.memory_space<vmem>>, vector<1x1x3x128xbf16>
    %16 = vector.shape_cast %15 : vector<1x1x3x128xbf16> to vector<3x128xbf16>
    %cst_10 = arith.constant dense<0.000000e+00> : vector<128x128xf32>
    %17 = tpu.matmul %14, %16, %cst_10 {dimension_numbers = #tpu.dot_dimension_numbers<[1], [0], [0], [1], [0, 0, 1, 1], [], []>} : vector<128x3xbf16>, vector<3x128xbf16>, vector<128x128xf32> -> vector<128x128xf32>
    %18 = arith.addf %12, %17 : vector<128x128xf32>
    %19 = vector.extract_strided_slice %6 {offsets = [0, 2, 0], sizes = [8, 16, 3], strides = [1, 1, 1]} : vector<8x18x3xbf16> to vector<8x16x3xbf16>
    %20 = vector.shape_cast %19 : vector<8x16x3xbf16> to vector<128x3xbf16>
    %c0_11 = arith.constant 0 : index
    %c2 = arith.constant 2 : index
    %c0_12 = arith.constant 0 : index
    %c0_13 = arith.constant 0 : index
    %21 = vector.load %arg3[%c0_11, %c2, %c0_12, %c0_13] : memref<3x3x3x128xbf16, #tpu.memory_space<vmem>>, vector<1x1x3x128xbf16>
    %22 = vector.shape_cast %21 : vector<1x1x3x128xbf16> to vector<3x128xbf16>
    %cst_14 = arith.constant dense<0.000000e+00> : vector<128x128xf32>
    %23 = tpu.matmul %20, %22, %cst_14 {dimension_numbers = #tpu.dot_dimension_numbers<[1], [0], [0], [1], [0, 0, 1, 1], [], []>} : vector<128x3xbf16>, vector<3x128xbf16>, vector<128x128xf32> -> vector<128x128xf32>
    %24 = arith.addf %18, %23 : vector<128x128xf32>
    %25 = vector.extract_strided_slice %4 {offsets = [1, 0, 0], sizes = [8, 18, 3], strides = [1, 1, 1]} : vector<10x18x3xbf16> to vector<8x18x3xbf16>
    %26 = vector.extract_strided_slice %25 {offsets = [0, 0, 0], sizes = [8, 16, 3], strides = [1, 1, 1]} : vector<8x18x3xbf16> to vector<8x16x3xbf16>
    %27 = vector.shape_cast %26 : vector<8x16x3xbf16> to vector<128x3xbf16>
    %c1_15 = arith.constant 1 : index
    %c0_16 = arith.constant 0 : index
    %c0_17 = arith.constant 0 : index
    %c0_18 = arith.constant 0 : index
    %28 = vector.load %arg3[%c1_15, %c0_16, %c0_17, %c0_18] : memref<3x3x3x128xbf16, #tpu.memory_space<vmem>>, vector<1x1x3x128xbf16>
    %29 = vector.shape_cast %28 : vector<1x1x3x128xbf16> to vector<3x128xbf16>
    %cst_19 = arith.constant dense<0.000000e+00> : vector<128x128xf32>
    %30 = tpu.matmul %27, %29, %cst_19 {dimension_numbers = #tpu.dot_dimension_numbers<[1], [0], [0], [1], [0, 0, 1, 1], [], []>} : vector<128x3xbf16>, vector<3x128xbf16>, vector<128x128xf32> -> vector<128x128xf32>
    %31 = arith.addf %24, %30 : vector<128x128xf32>
    %32 = vector.extract_strided_slice %25 {offsets = [0, 1, 0], sizes = [8, 16, 3], strides = [1, 1, 1]} : vector<8x18x3xbf16> to vector<8x16x3xbf16>
    %33 = vector.shape_cast %32 : vector<8x16x3xbf16> to vector<128x3xbf16>
    %c1_20 = arith.constant 1 : index
    %c1_21 = arith.constant 1 : index
    %c0_22 = arith.constant 0 : index
    %c0_23 = arith.constant 0 : index
    %34 = vector.load %arg3[%c1_20, %c1_21, %c0_22, %c0_23] : memref<3x3x3x128xbf16, #tpu.memory_space<vmem>>, vector<1x1x3x128xbf16>
    %35 = vector.shape_cast %34 : vector<1x1x3x128xbf16> to vector<3x128xbf16>
    %cst_24 = arith.constant dense<0.000000e+00> : vector<128x128xf32>
    %36 = tpu.matmul %33, %35, %cst_24 {dimension_numbers = #tpu.dot_dimension_numbers<[1], [0], [0], [1], [0, 0, 1, 1], [], []>} : vector<128x3xbf16>, vector<3x128xbf16>, vector<128x128xf32> -> vector<128x128xf32>
    %37 = arith.addf %31, %36 : vector<128x128xf32>
    %38 = vector.extract_strided_slice %25 {offsets = [0, 2, 0], sizes = [8, 16, 3], strides = [1, 1, 1]} : vector<8x18x3xbf16> to vector<8x16x3xbf16>
    %39 = vector.shape_cast %38 : vector<8x16x3xbf16> to vector<128x3xbf16>
    %c1_25 = arith.constant 1 : index
    %c2_26 = arith.constant 2 : index
    %c0_27 = arith.constant 0 : index
    %c0_28 = arith.constant 0 : index
    %40 = vector.load %arg3[%c1_25, %c2_26, %c0_27, %c0_28] : memref<3x3x3x128xbf16, #tpu.memory_space<vmem>>, vector<1x1x3x128xbf16>
    %41 = vector.shape_cast %40 : vector<1x1x3x128xbf16> to vector<3x128xbf16>
    %cst_29 = arith.constant dense<0.000000e+00> : vector<128x128xf32>
    %42 = tpu.matmul %39, %41, %cst_29 {dimension_numbers = #tpu.dot_dimension_numbers<[1], [0], [0], [1], [0, 0, 1, 1], [], []>} : vector<128x3xbf16>, vector<3x128xbf16>, vector<128x128xf32> -> vector<128x128xf32>
    %43 = arith.addf %37, %42 : vector<128x128xf32>
    %44 = vector.extract_strided_slice %4 {offsets = [2, 0, 0], sizes = [8, 18, 3], strides = [1, 1, 1]} : vector<10x18x3xbf16> to vector<8x18x3xbf16>
    %45 = vector.extract_strided_slice %44 {offsets = [0, 0, 0], sizes = [8, 16, 3], strides = [1, 1, 1]} : vector<8x18x3xbf16> to vector<8x16x3xbf16>
    %46 = vector.shape_cast %45 : vector<8x16x3xbf16> to vector<128x3xbf16>
    %c2_30 = arith.constant 2 : index
    %c0_31 = arith.constant 0 : index
    %c0_32 = arith.constant 0 : index
    %c0_33 = arith.constant 0 : index
    %47 = vector.load %arg3[%c2_30, %c0_31, %c0_32, %c0_33] : memref<3x3x3x128xbf16, #tpu.memory_space<vmem>>, vector<1x1x3x128xbf16>
    %48 = vector.shape_cast %47 : vector<1x1x3x128xbf16> to vector<3x128xbf16>
    %cst_34 = arith.constant dense<0.000000e+00> : vector<128x128xf32>
    %49 = tpu.matmul %46, %48, %cst_34 {dimension_numbers = #tpu.dot_dimension_numbers<[1], [0], [0], [1], [0, 0, 1, 1], [], []>} : vector<128x3xbf16>, vector<3x128xbf16>, vector<128x128xf32> -> vector<128x128xf32>
    %50 = arith.addf %43, %49 : vector<128x128xf32>
    %51 = vector.extract_strided_slice %44 {offsets = [0, 1, 0], sizes = [8, 16, 3], strides = [1, 1, 1]} : vector<8x18x3xbf16> to vector<8x16x3xbf16>
    %52 = vector.shape_cast %51 : vector<8x16x3xbf16> to vector<128x3xbf16>
    %c2_35 = arith.constant 2 : index
    %c1_36 = arith.constant 1 : index
    %c0_37 = arith.constant 0 : index
    %c0_38 = arith.constant 0 : index
    %53 = vector.load %arg3[%c2_35, %c1_36, %c0_37, %c0_38] : memref<3x3x3x128xbf16, #tpu.memory_space<vmem>>, vector<1x1x3x128xbf16>
    %54 = vector.shape_cast %53 : vector<1x1x3x128xbf16> to vector<3x128xbf16>
    %cst_39 = arith.constant dense<0.000000e+00> : vector<128x128xf32>
    %55 = tpu.matmul %52, %54, %cst_39 {dimension_numbers = #tpu.dot_dimension_numbers<[1], [0], [0], [1], [0, 0, 1, 1], [], []>} : vector<128x3xbf16>, vector<3x128xbf16>, vector<128x128xf32> -> vector<128x128xf32>
    %56 = arith.addf %50, %55 : vector<128x128xf32>
    %57 = vector.extract_strided_slice %44 {offsets = [0, 2, 0], sizes = [8, 16, 3], strides = [1, 1, 1]} : vector<8x18x3xbf16> to vector<8x16x3xbf16>
    %58 = vector.shape_cast %57 : vector<8x16x3xbf16> to vector<128x3xbf16>
    %c2_40 = arith.constant 2 : index
    %c2_41 = arith.constant 2 : index
    %c0_42 = arith.constant 0 : index
    %c0_43 = arith.constant 0 : index
    %59 = vector.load %arg3[%c2_40, %c2_41, %c0_42, %c0_43] : memref<3x3x3x128xbf16, #tpu.memory_space<vmem>>, vector<1x1x3x128xbf16>
    %60 = vector.shape_cast %59 : vector<1x1x3x128xbf16> to vector<3x128xbf16>
    %cst_44 = arith.constant dense<0.000000e+00> : vector<128x128xf32>
    %61 = tpu.matmul %58, %60, %cst_44 {dimension_numbers = #tpu.dot_dimension_numbers<[1], [0], [0], [1], [0, 0, 1, 1], [], []>} : vector<128x3xbf16>, vector<3x128xbf16>, vector<128x128xf32> -> vector<128x128xf32>
    %62 = arith.addf %56, %61 : vector<128x128xf32>
    %c0_45 = arith.constant 0 : index
    %c0_46 = arith.constant 0 : index
    %63 = vector.load %arg4[%c0_45, %c0_46] : memref<1x128xf32, #tpu.memory_space<vmem>>, vector<1x128xf32>
    %64 = vector.broadcast %63 : vector<1x128xf32> to vector<128x128xf32>
    %65 = arith.addf %62, %64 : vector<128x128xf32>
    %cst_47 = arith.constant 0.000000e+00 : f32
    %66 = vector.broadcast %cst_47 : f32 to vector<128x128xf32>
    %67 = arith.maximumf %65, %66 : vector<128x128xf32>
    %68 = vector.shape_cast %67 : vector<128x128xf32> to vector<8x16x128xf32>
    %69 = arith.truncf %68 : vector<8x16x128xf32> to vector<8x16x128xbf16>
    %c0_48 = arith.constant 0 : index
    %c0_49 = arith.constant 0 : index
    %c0_50 = arith.constant 0 : index
    %c0_51 = arith.constant 0 : index
    %70 = vector.load %arg5[%c0_48, %c0_49, %c0_50, %c0_51] : memref<1x8x16x128xbf16, #tpu.memory_space<vmem>>, vector<1x8x16x128xbf16>
    %71 = vector.shape_cast %70 : vector<1x8x16x128xbf16> to vector<8x16x128xbf16>
    %72 = vector.shape_cast %69 : vector<8x16x128xbf16> to vector<1x8x16x128xbf16>
    tpu.vector_store %arg5[%c0_48, %c0_49, %c0_50, %c0_51], %72 {strides = array<i32>} : memref<1x8x16x128xbf16, #tpu.memory_space<vmem>>, vector<1x8x16x128xbf16>,
    return
  }
  func.func @transform_0(%arg0: i32, %arg1: i32) -> (i32, i32, i32, i32) {
    %c0_i32 = arith.constant 0 : i32
    %c0_i32_0 = arith.constant 0 : i32
    %c0_i32_1 = arith.constant 0 : i32
    %c0_i32_2 = arith.constant 0 : i32
    return %arg0, %c0_i32, %c0_i32_0, %c0_i32_1 : i32, i32, i32, i32
  }
  func.func @transform_1(%arg0: i32, %arg1: i32) -> (i32, i32, i32, i32) {
    %c0_i32 = arith.constant 0 : i32
    %c0_i32_0 = arith.constant 0 : i32
    %c0_i32_1 = arith.constant 0 : i32
    %c0_i32_2 = arith.constant 0 : i32
    %c0_i32_3 = arith.constant 0 : i32
    return %c0_i32, %c0_i32_0, %c0_i32_1, %c0_i32_2 : i32, i32, i32, i32
  }
  func.func @transform_2(%arg0: i32, %arg1: i32) -> (i32, i32) {
    %c0_i32 = arith.constant 0 : i32
    %c0_i32_0 = arith.constant 0 : i32
    %c0_i32_1 = arith.constant 0 : i32
    return %c0_i32, %c0_i32_0 : i32, i32
  }
  func.func @transform_3(%arg0: i32, %arg1: i32) -> (i32, i32, i32, i32) {
    %c0_i32 = arith.constant 0 : i32
    %c0_i32_0 = arith.constant 0 : i32
    %c0_i32_1 = arith.constant 0 : i32
    return %arg0, %arg1, %c0_i32, %c0_i32_0 : i32, i32, i32, i32
  }
}

module attributes {stable_mosaic.version = 11 : i64} {
  func.func @_conv3x3_kernel(%arg0: i32, %arg1: i32, %arg2: memref<1x10x10x128xbf16, #tpu.memory_space<vmem>>, %arg3: memref<3x3x128x128xbf16, #tpu.memory_space<vmem>>, %arg4: memref<1x128xf32, #tpu.memory_space<vmem>>, %arg5: memref<1x4x4x128xbf16, #tpu.memory_space<vmem>>) attributes {dimension_semantics = [#tpu.dimension_semantics<parallel>, #tpu.dimension_semantics<arbitrary>], iteration_bounds = array<i64: 2, 1>, scalar_prefetch = 0 : i64, scratch_operands = 0 : i64, tpu.core_type = #tpu.core_type<tc>, window_params = [{transform_indices = @transform_0, window_bounds = array<i64: 1, 10, 10, 128>}, {pipeline_mode = #tpu.pipeline_mode<synchronous>, transform_indices = @transform_1, window_bounds = array<i64: 3, 3, 128, 128>}, {pipeline_mode = #tpu.pipeline_mode<synchronous>, transform_indices = @transform_2, window_bounds = array<i64: 1, 128>}, {transform_indices = @transform_3, window_bounds = array<i64: 1, 4, 4, 128>}]} {
    %c8_i32 = arith.constant 8 : i32
    %0 = arith.muli %arg1, %c8_i32 : i32
    %1 = tpu.assume_multiple %0, 8 : i32
    %c0 = arith.constant 0 : index
    %2 = arith.index_cast %1 : i32 to index
    %c0_0 = arith.constant 0 : index
    %c0_1 = arith.constant 0 : index
    %3 = vector.load %arg2[%c0, %2, %c0_0, %c0_1] : memref<1x10x10x128xbf16, #tpu.memory_space<vmem>>, vector<1x10x10x128xbf16>
    %4 = vector.shape_cast %3 : vector<1x10x10x128xbf16> to vector<10x10x128xbf16>
    %cst = arith.constant 0.000000e+00 : f32
    %5 = vector.broadcast %cst : f32 to vector<64x128xf32>
    %6 = vector.extract_strided_slice %4 {offsets = [0, 0, 0], sizes = [8, 10, 128], strides = [1, 1, 1]} : vector<10x10x128xbf16> to vector<8x10x128xbf16>
    %7 = vector.extract_strided_slice %6 {offsets = [0, 0, 0], sizes = [8, 8, 128], strides = [1, 1, 1]} : vector<8x10x128xbf16> to vector<8x8x128xbf16>
    %8 = vector.shape_cast %7 : vector<8x8x128xbf16> to vector<64x128xbf16>
    %c0_2 = arith.constant 0 : index
    %c0_3 = arith.constant 0 : index
    %c0_4 = arith.constant 0 : index
    %c0_5 = arith.constant 0 : index
    %9 = vector.load %arg3[%c0_2, %c0_3, %c0_4, %c0_5] : memref<3x3x128x128xbf16, #tpu.memory_space<vmem>>, vector<1x1x128x128xbf16>
    %10 = vector.shape_cast %9 : vector<1x1x128x128xbf16> to vector<128x128xbf16>
    %cst_6 = arith.constant dense<0.000000e+00> : vector<64x128xf32>
    %11 = tpu.matmul %8, %10, %cst_6 {dimension_numbers = #tpu.dot_dimension_numbers<[1], [0], [0], [1], [0, 0, 1, 1], [], []>} : vector<64x128xbf16>, vector<128x128xbf16>, vector<64x128xf32> -> vector<64x128xf32>
    %12 = arith.addf %5, %11 : vector<64x128xf32>
    %13 = vector.extract_strided_slice %6 {offsets = [0, 1, 0], sizes = [8, 8, 128], strides = [1, 1, 1]} : vector<8x10x128xbf16> to vector<8x8x128xbf16>
    %14 = vector.shape_cast %13 : vector<8x8x128xbf16> to vector<64x128xbf16>
    %c0_7 = arith.constant 0 : index
    %c1 = arith.constant 1 : index
    %c0_8 = arith.constant 0 : index
    %c0_9 = arith.constant 0 : index
    %15 = vector.load %arg3[%c0_7, %c1, %c0_8, %c0_9] : memref<3x3x128x128xbf16, #tpu.memory_space<vmem>>, vector<1x1x128x128xbf16>
    %16 = vector.shape_cast %15 : vector<1x1x128x128xbf16> to vector<128x128xbf16>
    %cst_10 = arith.constant dense<0.000000e+00> : vector<64x128xf32>
    %17 = tpu.matmul %14, %16, %cst_10 {dimension_numbers = #tpu.dot_dimension_numbers<[1], [0], [0], [1], [0, 0, 1, 1], [], []>} : vector<64x128xbf16>, vector<128x128xbf16>, vector<64x128xf32> -> vector<64x128xf32>
    %18 = arith.addf %12, %17 : vector<64x128xf32>
    %19 = vector.extract_strided_slice %6 {offsets = [0, 2, 0], sizes = [8, 8, 128], strides = [1, 1, 1]} : vector<8x10x128xbf16> to vector<8x8x128xbf16>
    %20 = vector.shape_cast %19 : vector<8x8x128xbf16> to vector<64x128xbf16>
    %c0_11 = arith.constant 0 : index
    %c2 = arith.constant 2 : index
    %c0_12 = arith.constant 0 : index
    %c0_13 = arith.constant 0 : index
    %21 = vector.load %arg3[%c0_11, %c2, %c0_12, %c0_13] : memref<3x3x128x128xbf16, #tpu.memory_space<vmem>>, vector<1x1x128x128xbf16>
    %22 = vector.shape_cast %21 : vector<1x1x128x128xbf16> to vector<128x128xbf16>
    %cst_14 = arith.constant dense<0.000000e+00> : vector<64x128xf32>
    %23 = tpu.matmul %20, %22, %cst_14 {dimension_numbers = #tpu.dot_dimension_numbers<[1], [0], [0], [1], [0, 0, 1, 1], [], []>} : vector<64x128xbf16>, vector<128x128xbf16>, vector<64x128xf32> -> vector<64x128xf32>
    %24 = arith.addf %18, %23 : vector<64x128xf32>
    %25 = vector.extract_strided_slice %4 {offsets = [1, 0, 0], sizes = [8, 10, 128], strides = [1, 1, 1]} : vector<10x10x128xbf16> to vector<8x10x128xbf16>
    %26 = vector.extract_strided_slice %25 {offsets = [0, 0, 0], sizes = [8, 8, 128], strides = [1, 1, 1]} : vector<8x10x128xbf16> to vector<8x8x128xbf16>
    %27 = vector.shape_cast %26 : vector<8x8x128xbf16> to vector<64x128xbf16>
    %c1_15 = arith.constant 1 : index
    %c0_16 = arith.constant 0 : index
    %c0_17 = arith.constant 0 : index
    %c0_18 = arith.constant 0 : index
    %28 = vector.load %arg3[%c1_15, %c0_16, %c0_17, %c0_18] : memref<3x3x128x128xbf16, #tpu.memory_space<vmem>>, vector<1x1x128x128xbf16>
    %29 = vector.shape_cast %28 : vector<1x1x128x128xbf16> to vector<128x128xbf16>
    %cst_19 = arith.constant dense<0.000000e+00> : vector<64x128xf32>
    %30 = tpu.matmul %27, %29, %cst_19 {dimension_numbers = #tpu.dot_dimension_numbers<[1], [0], [0], [1], [0, 0, 1, 1], [], []>} : vector<64x128xbf16>, vector<128x128xbf16>, vector<64x128xf32> -> vector<64x128xf32>
    %31 = arith.addf %24, %30 : vector<64x128xf32>
    %32 = vector.extract_strided_slice %25 {offsets = [0, 1, 0], sizes = [8, 8, 128], strides = [1, 1, 1]} : vector<8x10x128xbf16> to vector<8x8x128xbf16>
    %33 = vector.shape_cast %32 : vector<8x8x128xbf16> to vector<64x128xbf16>
    %c1_20 = arith.constant 1 : index
    %c1_21 = arith.constant 1 : index
    %c0_22 = arith.constant 0 : index
    %c0_23 = arith.constant 0 : index
    %34 = vector.load %arg3[%c1_20, %c1_21, %c0_22, %c0_23] : memref<3x3x128x128xbf16, #tpu.memory_space<vmem>>, vector<1x1x128x128xbf16>
    %35 = vector.shape_cast %34 : vector<1x1x128x128xbf16> to vector<128x128xbf16>
    %cst_24 = arith.constant dense<0.000000e+00> : vector<64x128xf32>
    %36 = tpu.matmul %33, %35, %cst_24 {dimension_numbers = #tpu.dot_dimension_numbers<[1], [0], [0], [1], [0, 0, 1, 1], [], []>} : vector<64x128xbf16>, vector<128x128xbf16>, vector<64x128xf32> -> vector<64x128xf32>
    %37 = arith.addf %31, %36 : vector<64x128xf32>
    %38 = vector.extract_strided_slice %25 {offsets = [0, 2, 0], sizes = [8, 8, 128], strides = [1, 1, 1]} : vector<8x10x128xbf16> to vector<8x8x128xbf16>
    %39 = vector.shape_cast %38 : vector<8x8x128xbf16> to vector<64x128xbf16>
    %c1_25 = arith.constant 1 : index
    %c2_26 = arith.constant 2 : index
    %c0_27 = arith.constant 0 : index
    %c0_28 = arith.constant 0 : index
    %40 = vector.load %arg3[%c1_25, %c2_26, %c0_27, %c0_28] : memref<3x3x128x128xbf16, #tpu.memory_space<vmem>>, vector<1x1x128x128xbf16>
    %41 = vector.shape_cast %40 : vector<1x1x128x128xbf16> to vector<128x128xbf16>
    %cst_29 = arith.constant dense<0.000000e+00> : vector<64x128xf32>
    %42 = tpu.matmul %39, %41, %cst_29 {dimension_numbers = #tpu.dot_dimension_numbers<[1], [0], [0], [1], [0, 0, 1, 1], [], []>} : vector<64x128xbf16>, vector<128x128xbf16>, vector<64x128xf32> -> vector<64x128xf32>
    %43 = arith.addf %37, %42 : vector<64x128xf32>
    %44 = vector.extract_strided_slice %4 {offsets = [2, 0, 0], sizes = [8, 10, 128], strides = [1, 1, 1]} : vector<10x10x128xbf16> to vector<8x10x128xbf16>
    %45 = vector.extract_strided_slice %44 {offsets = [0, 0, 0], sizes = [8, 8, 128], strides = [1, 1, 1]} : vector<8x10x128xbf16> to vector<8x8x128xbf16>
    %46 = vector.shape_cast %45 : vector<8x8x128xbf16> to vector<64x128xbf16>
    %c2_30 = arith.constant 2 : index
    %c0_31 = arith.constant 0 : index
    %c0_32 = arith.constant 0 : index
    %c0_33 = arith.constant 0 : index
    %47 = vector.load %arg3[%c2_30, %c0_31, %c0_32, %c0_33] : memref<3x3x128x128xbf16, #tpu.memory_space<vmem>>, vector<1x1x128x128xbf16>
    %48 = vector.shape_cast %47 : vector<1x1x128x128xbf16> to vector<128x128xbf16>
    %cst_34 = arith.constant dense<0.000000e+00> : vector<64x128xf32>
    %49 = tpu.matmul %46, %48, %cst_34 {dimension_numbers = #tpu.dot_dimension_numbers<[1], [0], [0], [1], [0, 0, 1, 1], [], []>} : vector<64x128xbf16>, vector<128x128xbf16>, vector<64x128xf32> -> vector<64x128xf32>
    %50 = arith.addf %43, %49 : vector<64x128xf32>
    %51 = vector.extract_strided_slice %44 {offsets = [0, 1, 0], sizes = [8, 8, 128], strides = [1, 1, 1]} : vector<8x10x128xbf16> to vector<8x8x128xbf16>
    %52 = vector.shape_cast %51 : vector<8x8x128xbf16> to vector<64x128xbf16>
    %c2_35 = arith.constant 2 : index
    %c1_36 = arith.constant 1 : index
    %c0_37 = arith.constant 0 : index
    %c0_38 = arith.constant 0 : index
    %53 = vector.load %arg3[%c2_35, %c1_36, %c0_37, %c0_38] : memref<3x3x128x128xbf16, #tpu.memory_space<vmem>>, vector<1x1x128x128xbf16>
    %54 = vector.shape_cast %53 : vector<1x1x128x128xbf16> to vector<128x128xbf16>
    %cst_39 = arith.constant dense<0.000000e+00> : vector<64x128xf32>
    %55 = tpu.matmul %52, %54, %cst_39 {dimension_numbers = #tpu.dot_dimension_numbers<[1], [0], [0], [1], [0, 0, 1, 1], [], []>} : vector<64x128xbf16>, vector<128x128xbf16>, vector<64x128xf32> -> vector<64x128xf32>
    %56 = arith.addf %50, %55 : vector<64x128xf32>
    %57 = vector.extract_strided_slice %44 {offsets = [0, 2, 0], sizes = [8, 8, 128], strides = [1, 1, 1]} : vector<8x10x128xbf16> to vector<8x8x128xbf16>
    %58 = vector.shape_cast %57 : vector<8x8x128xbf16> to vector<64x128xbf16>
    %c2_40 = arith.constant 2 : index
    %c2_41 = arith.constant 2 : index
    %c0_42 = arith.constant 0 : index
    %c0_43 = arith.constant 0 : index
    %59 = vector.load %arg3[%c2_40, %c2_41, %c0_42, %c0_43] : memref<3x3x128x128xbf16, #tpu.memory_space<vmem>>, vector<1x1x128x128xbf16>
    %60 = vector.shape_cast %59 : vector<1x1x128x128xbf16> to vector<128x128xbf16>
    %cst_44 = arith.constant dense<0.000000e+00> : vector<64x128xf32>
    %61 = tpu.matmul %58, %60, %cst_44 {dimension_numbers = #tpu.dot_dimension_numbers<[1], [0], [0], [1], [0, 0, 1, 1], [], []>} : vector<64x128xbf16>, vector<128x128xbf16>, vector<64x128xf32> -> vector<64x128xf32>
    %62 = arith.addf %56, %61 : vector<64x128xf32>
    %c0_45 = arith.constant 0 : index
    %c0_46 = arith.constant 0 : index
    %63 = vector.load %arg4[%c0_45, %c0_46] : memref<1x128xf32, #tpu.memory_space<vmem>>, vector<1x128xf32>
    %64 = vector.broadcast %63 : vector<1x128xf32> to vector<64x128xf32>
    %65 = arith.addf %62, %64 : vector<64x128xf32>
    %cst_47 = arith.constant 0.000000e+00 : f32
    %66 = vector.broadcast %cst_47 : f32 to vector<64x128xf32>
    %67 = arith.maximumf %65, %66 : vector<64x128xf32>
    %68 = vector.shape_cast %67 : vector<64x128xf32> to vector<8x8x128xf32>
    %69 = vector.shape_cast %68 : vector<8x8x128xf32> to vector<4x2x4x2x128xf32>
    %70 = vector.extract_strided_slice %69 {offsets = [0, 0, 0, 0, 0], sizes = [4, 1, 4, 2, 128], strides = [1, 1, 1, 1, 1]} : vector<4x2x4x2x128xf32> to vector<4x1x4x2x128xf32>
    %71 = vector.shape_cast %70 : vector<4x1x4x2x128xf32> to vector<4x4x2x128xf32>
    %72 = vector.extract_strided_slice %69 {offsets = [0, 1, 0, 0, 0], sizes = [4, 1, 4, 2, 128], strides = [1, 1, 1, 1, 1]} : vector<4x2x4x2x128xf32> to vector<4x1x4x2x128xf32>
    %73 = vector.shape_cast %72 : vector<4x1x4x2x128xf32> to vector<4x4x2x128xf32>
    %74 = arith.maximumf %71, %73 : vector<4x4x2x128xf32>
    %75 = vector.extract_strided_slice %74 {offsets = [0, 0, 0, 0], sizes = [4, 4, 1, 128], strides = [1, 1, 1, 1]} : vector<4x4x2x128xf32> to vector<4x4x1x128xf32>
    %76 = vector.shape_cast %75 : vector<4x4x1x128xf32> to vector<4x4x128xf32>
    %77 = vector.extract_strided_slice %74 {offsets = [0, 0, 1, 0], sizes = [4, 4, 1, 128], strides = [1, 1, 1, 1]} : vector<4x4x2x128xf32> to vector<4x4x1x128xf32>
    %78 = vector.shape_cast %77 : vector<4x4x1x128xf32> to vector<4x4x128xf32>
    %79 = arith.maximumf %76, %78 : vector<4x4x128xf32>
    %80 = arith.truncf %79 : vector<4x4x128xf32> to vector<4x4x128xbf16>
    %c0_48 = arith.constant 0 : index
    %c0_49 = arith.constant 0 : index
    %c0_50 = arith.constant 0 : index
    %c0_51 = arith.constant 0 : index
    %81 = vector.load %arg5[%c0_48, %c0_49, %c0_50, %c0_51] : memref<1x4x4x128xbf16, #tpu.memory_space<vmem>>, vector<1x4x4x128xbf16>
    %82 = vector.shape_cast %81 : vector<1x4x4x128xbf16> to vector<4x4x128xbf16>
    %83 = vector.shape_cast %80 : vector<4x4x128xbf16> to vector<1x4x4x128xbf16>
    tpu.vector_store %arg5[%c0_48, %c0_49, %c0_50, %c0_51], %83 {strides = array<i32>} : memref<1x4x4x128xbf16, #tpu.memory_space<vmem>>, vector<1x4x4x128xbf16>,
    return
  }
  func.func @transform_0(%arg0: i32, %arg1: i32) -> (i32, i32, i32, i32) {
    %c0_i32 = arith.constant 0 : i32
    %c0_i32_0 = arith.constant 0 : i32
    %c0_i32_1 = arith.constant 0 : i32
    %c0_i32_2 = arith.constant 0 : i32
    return %arg0, %c0_i32, %c0_i32_0, %c0_i32_1 : i32, i32, i32, i32
  }
  func.func @transform_1(%arg0: i32, %arg1: i32) -> (i32, i32, i32, i32) {
    %c0_i32 = arith.constant 0 : i32
    %c0_i32_0 = arith.constant 0 : i32
    %c0_i32_1 = arith.constant 0 : i32
    %c0_i32_2 = arith.constant 0 : i32
    %c0_i32_3 = arith.constant 0 : i32
    return %c0_i32, %c0_i32_0, %c0_i32_1, %c0_i32_2 : i32, i32, i32, i32
  }
  func.func @transform_2(%arg0: i32, %arg1: i32) -> (i32, i32) {
    %c0_i32 = arith.constant 0 : i32
    %c0_i32_0 = arith.constant 0 : i32
    %c0_i32_1 = arith.constant 0 : i32
    return %c0_i32, %c0_i32_0 : i32, i32
  }
  func.func @transform_3(%arg0: i32, %arg1: i32) -> (i32, i32, i32, i32) {
    %c0_i32 = arith.constant 0 : i32
    %c0_i32_0 = arith.constant 0 : i32
    %c0_i32_1 = arith.constant 0 : i32
    return %arg0, %arg1, %c0_i32, %c0_i32_0 : i32, i32, i32, i32
  }
}

module attributes {stable_mosaic.version = 11 : i64} {
  func.func @_mm_bias_act_kernel(%arg0: i32, %arg1: i32, %arg2: i32, %arg3: memref<8x2048xbf16, #tpu.memory_space<vmem>>, %arg4: memref<2048x128xbf16, #tpu.memory_space<vmem>>, %arg5: memref<1x128xf32, #tpu.memory_space<vmem>>, %arg6: memref<8x128xbf16, #tpu.memory_space<vmem>>, %arg7: memref<8x128xf32, #tpu.memory_space<vmem>>) attributes {dimension_semantics = [#tpu.dimension_semantics<parallel>, #tpu.dimension_semantics<parallel>, #tpu.dimension_semantics<arbitrary>], iteration_bounds = array<i64: 1, 1, 1>, scalar_prefetch = 0 : i64, scratch_operands = 1 : i64, tpu.core_type = #tpu.core_type<tc>, window_params = [{transform_indices = @transform_0, window_bounds = array<i64: 8, 2048>}, {transform_indices = @transform_1, window_bounds = array<i64: 2048, 128>}, {transform_indices = @transform_2, window_bounds = array<i64: 1, 128>}, {transform_indices = @transform_3, window_bounds = array<i64: 8, 128>}]} {
    %c0_i32 = arith.constant 0 : i32
    %0 = arith.cmpi eq, %arg2, %c0_i32 : i32
    %1 = arith.extui %0 : i1 to i32
    %c0_i32_0 = arith.constant 0 : i32
    %2 = arith.cmpi ne, %1, %c0_i32_0 : i32
    scf.if %2 {
      %cst_10 = arith.constant 0.000000e+00 : f32
      %12 = vector.broadcast %cst_10 : f32 to vector<8x128xf32>
      %c0_11 = arith.constant 0 : index
      %c0_12 = arith.constant 0 : index
      %13 = vector.load %arg7[%c0_11, %c0_12] : memref<8x128xf32, #tpu.memory_space<vmem>>, vector<8x128xf32>
      tpu.vector_store %arg7[%c0_11, %c0_12], %12 {strides = array<i32>} : memref<8x128xf32, #tpu.memory_space<vmem>>, vector<8x128xf32>,
    } else {
    }
    %c0 = arith.constant 0 : index
    %c0_1 = arith.constant 0 : index
    %3 = vector.load %arg7[%c0, %c0_1] : memref<8x128xf32, #tpu.memory_space<vmem>>, vector<8x128xf32>
    %c0_2 = arith.constant 0 : index
    %c0_3 = arith.constant 0 : index
    %4 = vector.load %arg3[%c0_2, %c0_3] : memref<8x2048xbf16, #tpu.memory_space<vmem>>, vector<8x2048xbf16>
    %c0_4 = arith.constant 0 : index
    %c0_5 = arith.constant 0 : index
    %5 = vector.load %arg4[%c0_4, %c0_5] : memref<2048x128xbf16, #tpu.memory_space<vmem>>, vector<2048x128xbf16>
    %cst = arith.constant dense<0.000000e+00> : vector<8x128xf32>
    %6 = tpu.matmul %4, %5, %cst {dimension_numbers = #tpu.dot_dimension_numbers<[1], [0], [0], [1], [0, 0, 1, 1], [], []>} : vector<8x2048xbf16>, vector<2048x128xbf16>, vector<8x128xf32> -> vector<8x128xf32>
    %7 = arith.addf %3, %6 : vector<8x128xf32>
    %c0_6 = arith.constant 0 : index
    %c0_7 = arith.constant 0 : index
    %8 = vector.load %arg7[%c0_6, %c0_7] : memref<8x128xf32, #tpu.memory_space<vmem>>, vector<8x128xf32>
    tpu.vector_store %arg7[%c0_6, %c0_7], %7 {strides = array<i32>} : memref<8x128xf32, #tpu.memory_space<vmem>>, vector<8x128xf32>,
    %c0_i32_8 = arith.constant 0 : i32
    %9 = arith.cmpi eq, %arg2, %c0_i32_8 : i32
    %10 = arith.extui %9 : i1 to i32
    %c0_i32_9 = arith.constant 0 : i32
    %11 = arith.cmpi ne, %10, %c0_i32_9 : i32
    scf.if %11 {
      %c0_10 = arith.constant 0 : index
      %c0_11 = arith.constant 0 : index
      %12 = vector.load %arg7[%c0_10, %c0_11] : memref<8x128xf32, #tpu.memory_space<vmem>>, vector<8x128xf32>
      %c0_12 = arith.constant 0 : index
      %c0_13 = arith.constant 0 : index
      %13 = vector.load %arg5[%c0_12, %c0_13] : memref<1x128xf32, #tpu.memory_space<vmem>>, vector<1x128xf32>
      %14 = vector.broadcast %13 : vector<1x128xf32> to vector<8x128xf32>
      %15 = arith.addf %12, %14 : vector<8x128xf32>
      %cst_14 = arith.constant 0.000000e+00 : f32
      %16 = vector.broadcast %cst_14 : f32 to vector<8x128xf32>
      %17 = arith.maximumf %15, %16 : vector<8x128xf32>
      %18 = arith.truncf %17 : vector<8x128xf32> to vector<8x128xbf16>
      %c0_15 = arith.constant 0 : index
      %c0_16 = arith.constant 0 : index
      %19 = vector.load %arg6[%c0_15, %c0_16] : memref<8x128xbf16, #tpu.memory_space<vmem>>, vector<8x128xbf16>
      tpu.vector_store %arg6[%c0_15, %c0_16], %18 {strides = array<i32>} : memref<8x128xbf16, #tpu.memory_space<vmem>>, vector<8x128xbf16>,
    } else {
    }
    return
  }
  func.func @transform_0(%arg0: i32, %arg1: i32, %arg2: i32) -> (i32, i32) {
    %c0_i32 = arith.constant 0 : i32
    return %arg0, %arg2 : i32, i32
  }
  func.func @transform_1(%arg0: i32, %arg1: i32, %arg2: i32) -> (i32, i32) {
    %c0_i32 = arith.constant 0 : i32
    return %arg2, %arg1 : i32, i32
  }
  func.func @transform_2(%arg0: i32, %arg1: i32, %arg2: i32) -> (i32, i32) {
    %c0_i32 = arith.constant 0 : i32
    %c0_i32_0 = arith.constant 0 : i32
    return %c0_i32, %arg1 : i32, i32
  }
  func.func @transform_3(%arg0: i32, %arg1: i32, %arg2: i32) -> (i32, i32) {
    %c0_i32 = arith.constant 0 : i32
    return %arg0, %arg1 : i32, i32
  }
}

module attributes {stable_mosaic.version = 11 : i64} {
  func.func @_mm_bias_act_kernel(%arg0: i32, %arg1: i32, %arg2: i32, %arg3: memref<8x128xbf16, #tpu.memory_space<vmem>>, %arg4: memref<128x128xbf16, #tpu.memory_space<vmem>>, %arg5: memref<1x128xf32, #tpu.memory_space<vmem>>, %arg6: memref<8x128xbf16, #tpu.memory_space<vmem>>, %arg7: memref<8x128xf32, #tpu.memory_space<vmem>>) attributes {dimension_semantics = [#tpu.dimension_semantics<parallel>, #tpu.dimension_semantics<parallel>, #tpu.dimension_semantics<arbitrary>], iteration_bounds = array<i64: 1, 1, 1>, scalar_prefetch = 0 : i64, scratch_operands = 1 : i64, tpu.core_type = #tpu.core_type<tc>, window_params = [{transform_indices = @transform_0, window_bounds = array<i64: 8, 128>}, {transform_indices = @transform_1, window_bounds = array<i64: 128, 128>}, {transform_indices = @transform_2, window_bounds = array<i64: 1, 128>}, {transform_indices = @transform_3, window_bounds = array<i64: 8, 128>}]} {
    %c0_i32 = arith.constant 0 : i32
    %0 = arith.cmpi eq, %arg2, %c0_i32 : i32
    %1 = arith.extui %0 : i1 to i32
    %c0_i32_0 = arith.constant 0 : i32
    %2 = arith.cmpi ne, %1, %c0_i32_0 : i32
    scf.if %2 {
      %cst_10 = arith.constant 0.000000e+00 : f32
      %12 = vector.broadcast %cst_10 : f32 to vector<8x128xf32>
      %c0_11 = arith.constant 0 : index
      %c0_12 = arith.constant 0 : index
      %13 = vector.load %arg7[%c0_11, %c0_12] : memref<8x128xf32, #tpu.memory_space<vmem>>, vector<8x128xf32>
      tpu.vector_store %arg7[%c0_11, %c0_12], %12 {strides = array<i32>} : memref<8x128xf32, #tpu.memory_space<vmem>>, vector<8x128xf32>,
    } else {
    }
    %c0 = arith.constant 0 : index
    %c0_1 = arith.constant 0 : index
    %3 = vector.load %arg7[%c0, %c0_1] : memref<8x128xf32, #tpu.memory_space<vmem>>, vector<8x128xf32>
    %c0_2 = arith.constant 0 : index
    %c0_3 = arith.constant 0 : index
    %4 = vector.load %arg3[%c0_2, %c0_3] : memref<8x128xbf16, #tpu.memory_space<vmem>>, vector<8x128xbf16>
    %c0_4 = arith.constant 0 : index
    %c0_5 = arith.constant 0 : index
    %5 = vector.load %arg4[%c0_4, %c0_5] : memref<128x128xbf16, #tpu.memory_space<vmem>>, vector<128x128xbf16>
    %cst = arith.constant dense<0.000000e+00> : vector<8x128xf32>
    %6 = tpu.matmul %4, %5, %cst {dimension_numbers = #tpu.dot_dimension_numbers<[1], [0], [0], [1], [0, 0, 1, 1], [], []>} : vector<8x128xbf16>, vector<128x128xbf16>, vector<8x128xf32> -> vector<8x128xf32>
    %7 = arith.addf %3, %6 : vector<8x128xf32>
    %c0_6 = arith.constant 0 : index
    %c0_7 = arith.constant 0 : index
    %8 = vector.load %arg7[%c0_6, %c0_7] : memref<8x128xf32, #tpu.memory_space<vmem>>, vector<8x128xf32>
    tpu.vector_store %arg7[%c0_6, %c0_7], %7 {strides = array<i32>} : memref<8x128xf32, #tpu.memory_space<vmem>>, vector<8x128xf32>,
    %c0_i32_8 = arith.constant 0 : i32
    %9 = arith.cmpi eq, %arg2, %c0_i32_8 : i32
    %10 = arith.extui %9 : i1 to i32
    %c0_i32_9 = arith.constant 0 : i32
    %11 = arith.cmpi ne, %10, %c0_i32_9 : i32
    scf.if %11 {
      %c0_10 = arith.constant 0 : index
      %c0_11 = arith.constant 0 : index
      %12 = vector.load %arg7[%c0_10, %c0_11] : memref<8x128xf32, #tpu.memory_space<vmem>>, vector<8x128xf32>
      %c0_12 = arith.constant 0 : index
      %c0_13 = arith.constant 0 : index
      %13 = vector.load %arg5[%c0_12, %c0_13] : memref<1x128xf32, #tpu.memory_space<vmem>>, vector<1x128xf32>
      %14 = vector.broadcast %13 : vector<1x128xf32> to vector<8x128xf32>
      %15 = arith.addf %12, %14 : vector<8x128xf32>
      %cst_14 = arith.constant 0.000000e+00 : f32
      %16 = vector.broadcast %cst_14 : f32 to vector<8x128xf32>
      %17 = arith.maximumf %15, %16 : vector<8x128xf32>
      %18 = arith.truncf %17 : vector<8x128xf32> to vector<8x128xbf16>
      %c0_15 = arith.constant 0 : index
      %c0_16 = arith.constant 0 : index
      %19 = vector.load %arg6[%c0_15, %c0_16] : memref<8x128xbf16, #tpu.memory_space<vmem>>, vector<8x128xbf16>
      tpu.vector_store %arg6[%c0_15, %c0_16], %18 {strides = array<i32>} : memref<8x128xbf16, #tpu.memory_space<vmem>>, vector<8x128xbf16>,
    } else {
    }
    return
  }
  func.func @transform_0(%arg0: i32, %arg1: i32, %arg2: i32) -> (i32, i32) {
    %c0_i32 = arith.constant 0 : i32
    return %arg0, %arg2 : i32, i32
  }
  func.func @transform_1(%arg0: i32, %arg1: i32, %arg2: i32) -> (i32, i32) {
    %c0_i32 = arith.constant 0 : i32
    return %arg2, %arg1 : i32, i32
  }
  func.func @transform_2(%arg0: i32, %arg1: i32, %arg2: i32) -> (i32, i32) {
    %c0_i32 = arith.constant 0 : i32
    %c0_i32_0 = arith.constant 0 : i32
    return %c0_i32, %arg1 : i32, i32
  }
  func.func @transform_3(%arg0: i32, %arg1: i32, %arg2: i32) -> (i32, i32) {
    %c0_i32 = arith.constant 0 : i32
    return %arg0, %arg1 : i32, i32
  }
}

module attributes {stable_mosaic.version = 11 : i64} {
  func.func @_mm_bias_act_kernel(%arg0: i32, %arg1: i32, %arg2: i32, %arg3: memref<8x128xbf16, #tpu.memory_space<vmem>>, %arg4: memref<128x128xbf16, #tpu.memory_space<vmem>>, %arg5: memref<1x128xf32, #tpu.memory_space<vmem>>, %arg6: memref<8x128xf32, #tpu.memory_space<vmem>>, %arg7: memref<8x128xf32, #tpu.memory_space<vmem>>) attributes {dimension_semantics = [#tpu.dimension_semantics<parallel>, #tpu.dimension_semantics<parallel>, #tpu.dimension_semantics<arbitrary>], iteration_bounds = array<i64: 1, 1, 1>, scalar_prefetch = 0 : i64, scratch_operands = 1 : i64, tpu.core_type = #tpu.core_type<tc>, window_params = [{transform_indices = @transform_0, window_bounds = array<i64: 8, 128>}, {transform_indices = @transform_1, window_bounds = array<i64: 128, 128>}, {transform_indices = @transform_2, window_bounds = array<i64: 1, 128>}, {transform_indices = @transform_3, window_bounds = array<i64: 8, 128>}]} {
    %c0_i32 = arith.constant 0 : i32
    %0 = arith.cmpi eq, %arg2, %c0_i32 : i32
    %1 = arith.extui %0 : i1 to i32
    %c0_i32_0 = arith.constant 0 : i32
    %2 = arith.cmpi ne, %1, %c0_i32_0 : i32
    scf.if %2 {
      %cst_10 = arith.constant 0.000000e+00 : f32
      %12 = vector.broadcast %cst_10 : f32 to vector<8x128xf32>
      %c0_11 = arith.constant 0 : index
      %c0_12 = arith.constant 0 : index
      %13 = vector.load %arg7[%c0_11, %c0_12] : memref<8x128xf32, #tpu.memory_space<vmem>>, vector<8x128xf32>
      tpu.vector_store %arg7[%c0_11, %c0_12], %12 {strides = array<i32>} : memref<8x128xf32, #tpu.memory_space<vmem>>, vector<8x128xf32>,
    } else {
    }
    %c0 = arith.constant 0 : index
    %c0_1 = arith.constant 0 : index
    %3 = vector.load %arg7[%c0, %c0_1] : memref<8x128xf32, #tpu.memory_space<vmem>>, vector<8x128xf32>
    %c0_2 = arith.constant 0 : index
    %c0_3 = arith.constant 0 : index
    %4 = vector.load %arg3[%c0_2, %c0_3] : memref<8x128xbf16, #tpu.memory_space<vmem>>, vector<8x128xbf16>
    %c0_4 = arith.constant 0 : index
    %c0_5 = arith.constant 0 : index
    %5 = vector.load %arg4[%c0_4, %c0_5] : memref<128x128xbf16, #tpu.memory_space<vmem>>, vector<128x128xbf16>
    %cst = arith.constant dense<0.000000e+00> : vector<8x128xf32>
    %6 = tpu.matmul %4, %5, %cst {dimension_numbers = #tpu.dot_dimension_numbers<[1], [0], [0], [1], [0, 0, 1, 1], [], []>} : vector<8x128xbf16>, vector<128x128xbf16>, vector<8x128xf32> -> vector<8x128xf32>
    %7 = arith.addf %3, %6 : vector<8x128xf32>
    %c0_6 = arith.constant 0 : index
    %c0_7 = arith.constant 0 : index
    %8 = vector.load %arg7[%c0_6, %c0_7] : memref<8x128xf32, #tpu.memory_space<vmem>>, vector<8x128xf32>
    tpu.vector_store %arg7[%c0_6, %c0_7], %7 {strides = array<i32>} : memref<8x128xf32, #tpu.memory_space<vmem>>, vector<8x128xf32>,
    %c0_i32_8 = arith.constant 0 : i32
    %9 = arith.cmpi eq, %arg2, %c0_i32_8 : i32
    %10 = arith.extui %9 : i1 to i32
    %c0_i32_9 = arith.constant 0 : i32
    %11 = arith.cmpi ne, %10, %c0_i32_9 : i32
    scf.if %11 {
      %c0_10 = arith.constant 0 : index
      %c0_11 = arith.constant 0 : index
      %12 = vector.load %arg7[%c0_10, %c0_11] : memref<8x128xf32, #tpu.memory_space<vmem>>, vector<8x128xf32>
      %c0_12 = arith.constant 0 : index
      %c0_13 = arith.constant 0 : index
      %13 = vector.load %arg5[%c0_12, %c0_13] : memref<1x128xf32, #tpu.memory_space<vmem>>, vector<1x128xf32>
      %14 = vector.broadcast %13 : vector<1x128xf32> to vector<8x128xf32>
      %15 = arith.addf %12, %14 : vector<8x128xf32>
      %c0_14 = arith.constant 0 : index
      %c0_15 = arith.constant 0 : index
      %16 = vector.load %arg6[%c0_14, %c0_15] : memref<8x128xf32, #tpu.memory_space<vmem>>, vector<8x128xf32>
      tpu.vector_store %arg6[%c0_14, %c0_15], %15 {strides = array<i32>} : memref<8x128xf32, #tpu.memory_space<vmem>>, vector<8x128xf32>,
    } else {
    }
    return
  }
  func.func @transform_0(%arg0: i32, %arg1: i32, %arg2: i32) -> (i32, i32) {
    %c0_i32 = arith.constant 0 : i32
    return %arg0, %arg2 : i32, i32
  }
  func.func @transform_1(%arg0: i32, %arg1: i32, %arg2: i32) -> (i32, i32) {
    %c0_i32 = arith.constant 0 : i32
    return %arg2, %arg1 : i32, i32
  }
  func.func @transform_2(%arg0: i32, %arg1: i32, %arg2: i32) -> (i32, i32) {
    %c0_i32 = arith.constant 0 : i32
    %c0_i32_0 = arith.constant 0 : i32
    return %c0_i32, %arg1 : i32, i32
  }
  func.func @transform_3(%arg0: i32, %arg1: i32, %arg2: i32) -> (i32, i32) {
    %c0_i32 = arith.constant 0 : i32
    return %arg0, %arg1 : i32, i32
  }
}

</mosaic_0001>

<bundles_post_ra>
// kernel: vgg_forward.6
= control target key start
LH: loop header
LB: loop body
LE: loop exit
PB: predicated region body
PF: predicated region fallthrough
CT: control target
= control target key end

     0   :  { %s2704_s12 = smov 0   ;;  %s2706_s13 = smov 0   ;;  %s3314_s0 = inlined_call_operand.vmem [shape: bf16[2,18,18,3], index: 0, kind: input, shape index: {}]   ;;  %s3315_s1 = inlined_call_operand.vmem [shape: bf16[3,3,3,128], index: 1, kind: input, shape index: {}]   ;;  %s3316_s2 = inlined_call_operand.vmem [shape: f32[1,128], index: 2, kind: input, shape index: {}]   ;;  %s3317_s3 = inlined_call_operand.vmem [shape: bf16[2,16,16,128], index: 3, kind: output, shape index: {}]  }
   0x1   :  { %s2708_s14 = smov 0   ;;  %s2710_s15 = smov 0  }
   0x2   :  { %s2712_s16 = smov 0  }
   0x3 LB: > { %s22_s17 = sadd.s32 1, %s2673_s14  ;;  %s25_s18 = sadd.s32 1, %s2677_s15  ;;  %s2681_s16 = sphi %s2712_s16, %s13_s16   ;;  %s2677_s15 = sphi %s2710_s15, %s3325_s15   ;;  %s2673_s14 = sphi %s2708_s14, %s3324_s14   ;;  %s2669_s13 = sphi %s2706_s13, %s3323_s13   ;;  %s2665_s12 = sphi %s2704_s12, %s3322_s12  }
   0x4   : > { %p23_p0 = scmp.ge.s32.totalorder %s22_s17, 2  ;;  %p2006_p1 = scmp.ge.s32.totalorder %s2681_s16, 1 }
   0x5   : > { %p151_p2 = scmp.lt.s32.totalorder %s2681_s16, 5 }
   0x6   : > { %s3327_s17 = smov (%p23_p0, %s22_s17), 0  ;;  %s3329_s18 = smov (!%p23_p0, %s25_s18), %s2677_s15 }
   0x7   : > { %p152_p3 = pnand %p2006_p1, %p151_p2  ;;  %p27_p4 = scmp.ge.s32.totalorder %s3329_s18, 2 }
   0x8   : > { %v2015_v0 = vld [vmem:[%s3315_s1 + $0x2] sm:$0x3] (!%p152_p3)  ;;  %vm478_vm0 = vcmask (!%p152_p3), 1040384   ;;  %vm479_vm1 = vcmask (!%p152_p3), 1041408   ;;  %p180_p5 = scmp.lt.s32.totalorder (!%p152_p3), %s2669_s13, 1  ;;  %v2683_v1 = vmov (!%p152_p3), 65535  }
   0x9   : > { %s3331_s18 = smov (%p27_p4, %s3329_s18), 0  ;;  %155 = sbr.rel (%p152_p3) target bundleno = 404 (0x194), region = 32 }
   0xa   : > { %v480_v2 = vsel (!%p152_p3), %vm478_vm0, 4294967295, %v2683_v1  ;;  %v2083_v3 = vld [vmem:[%s3315_s1 + $0x8] sm:$0x3] (!%p152_p3)  ;;  %s2154_s23 = smul.u32 (!%p152_p3), 96, %s2665_s12  ;;  %v231_v7 = vld [vmem:[%s3315_s1] sm:$0x3] (!%p152_p3) }
   0xb   : > { %v2742_v4 = vsel (!%p152_p3), %vm479_vm1, %v480_v2, 0  ;;  %v2094_v8 = vld [vmem:[%s3315_s1 + $0xa] sm:$0x3] (!%p152_p3)  ;;  %vm232_vm2 = vsmask.f32 (!%p152_p3), 3328  ;;  %vm453_vm4 = vcmask (!%p152_p3), 23552  }
   0xc   : > { %v483_v5 = vand.u32 (!%p152_p3), %v2015_v0, %v2742_v4  ;;  %v2748_v6 = vand.u32 (!%p152_p3), %v2083_v3, %v2742_v4  ;;  %v2759_v9 = vand.u32 (!%p152_p3), %v2742_v4, %v231_v7  ;;  %v2762_v10 = vand.u32 (!%p152_p3), %v2094_v8, %v2742_v4  ;;  %v2104_v11 = vld [vmem:[%s3315_s1 + $0xc] sm:$0x3] (!%p152_p3)  ;;  %v2056_v12 = vld [vmem:[%s3315_s1 + $0x4] sm:$0x3] (!%p152_p3)  ;;  %v2114_v30 = vld [vmem:[%s3315_s1 + $0xe] sm:$0x3] (!%p152_p3) }
   0xd   : > { %vm233_vm3 = vsmask.f32 (!%p152_p3), 7440  ;;  %v2803_v24 = vand.u32 (!%p152_p3), %v2104_v11, %v2742_v4  ;;  %v2806_v25 = vand.u32 (!%p152_p3), %v2056_v12, %v2742_v4  ;;  %v2829_v45 = vand.u32 (!%p152_p3), %v2114_v30, %v2742_v4 }
   0xe   : > { %2299 = vmatprep.subr.bf16.mxu1 (!%p152_p3), %v483_v5  ;;  %2371 = vmatprep.subr.bf16.mxu0 (!%p152_p3), %v2748_v6  ;;  %vm2821_vm5 = vmor (!%p152_p3), %vm232_vm2, %vm233_vm3  ;;  %vm754_vm6 = vcmask (!%p152_p3), 1042432   ;;  %vm755_vm7 = vcmask (!%p152_p3), 1046532  }
   0xf   : > { %2300 = vmatpush3.bf16.msra.mxu1 (!%p152_p3), %v483_v5  ;;  %2372 = vmatpush3.bf16.msra.mxu0 (!%p152_p3), %v2748_v6  ;;  %vm2897_vm8 = vmor (!%p152_p3), %vm754_vm6, %vm755_vm7 }
  0x10   : > { %s3333_s13 = smov (!%p180_p5, %s2669_s13), 1  ;;  %2317 = vmatprep.subr.bf16.mxu1 %v2759_v9  ;;  %2389 = vmatprep.subr.bf16.mxu0 %v2762_v10 }
  0x11   : > { %s2591_s28 = smul.u32 216, %s3333_s13  ;;  %s2010_s25 = sshll.u32 %s3333_s13, 5 }
  0x13   : > { %s184_s4 = scalar_lea.vmem %s3314_s0, %s2591_s28 }
  0x14   : > { %s2769_s5 = scalar_lea.vmem %s184_s4, %s2154_s23  ;;  %s2008_s23 = sshll.u32 %s2665_s12, 3 }
  0x15   : > { %v2780_v13 = vld [vmem:[%s2769_s5] sm:$0xf]  ;;  %v2783_v14 = vld [vmem:[%s2769_s5 + $0x4] sm:$0xf]  ;;  %v2786_v15 = vld [vmem:[%s2769_s5 + $0x8] sm:$0x1] }
  0x16   : > { %v236_v16 = vshrl.u32 %v2780_v13, 16  ;;  %v239_v17 = vshll.u32 %v2780_v13, 16  ;;  %v245_v18 = vshll.u32 %v2783_v14, 16  ;;  %v249_v19 = vshrl.u32 %v2783_v14, 16  ;;  %v2793_v20 = vld [vmem:[%s2769_s5 + $0xc] sm:$0xf] }
  0x17   : > { %v255_v21 = vshll.u32 %v2786_v15, 16  ;;  %v2797_v22 = vld [vmem:[%s2769_s5 + $0x10] sm:$0xf]  ;;  %v2800_v23 = vld [vmem:[%s2769_s5 + $0x14] sm:$0x1]  ;;  %v260_v32 = vshrl.u32 %v2793_v20, 16 }
  0x18   : > { %v238_v26 = vrot.slane %v236_v16, 4  ;;  %v241_v27 = vrot.slane %v239_v17, 5  ;;  %v247_v28 = vrot.slane %v245_v18, 5  ;;  %v251_v29 = vrot.slane %v249_v19, 4  ;;  %v2817_v39 = vld [vmem:[%s2769_s5 + $0x18] sm:$0xf] }
  0x19   : > { %v257_v31 = vrot.slane %v255_v21, 5  ;;  %v263_v33 = vshll.u32 %v2793_v20, 16  ;;  %v269_v34 = vshll.u32 %v2797_v22, 16  ;;  %v273_v37 = vshrl.u32 %v2797_v22, 16  ;;  %v2826_v44 = vld [vmem:[%s2769_s5 + $0x1c] sm:$0xf] }
  0x1a   : > { %v242_v35 = vor.u32 %v241_v27, %v238_v26  ;;  %v252_v36 = vor.u32 %v251_v29, %v247_v28  ;;  %v279_v38 = vshll.u32 %v2800_v23, 16  ;;  %v262_v41 = vrot.slane %v260_v32, 4  ;;  %v2833_v52 = vld [vmem:[%s2769_s5 + $0x20] sm:$0x1]  ;;  %v2843_v63 = vld [vmem:[%s2769_s5 + $0x24] sm:$0xf] }
  0x1b   : > { %v265_v42 = vrot.slane %v263_v33, 5  ;;  %v271_v43 = vrot.slane %v269_v34, 5  ;;  %v275_v48 = vrot.slane %v273_v37, 4  ;;  %v769_v51 = vrot.slane %v2800_v23, 5  ;;  %v2848_v5 = vld [vmem:[%s2769_s5 + $0x28] sm:$0xf] }
  0x1c   : > { %v243_v46 = vrot.slane %v242_v35, 4  ;;  %v253_v47 = vrot.slane %v252_v36, 4  ;;  %v281_v49 = vrot.slane %v279_v38, 5  ;;  %v284_v53 = vshrl.u32 %v2817_v39, 16  ;;  %v2856_v16 = vld [vmem:[%s2769_s5 + $0x2c] sm:$0x1] }
  0x1d   : > { %v266_v50 = vor.u32 %v265_v42, %v262_v41  ;;  %v287_v54 = vshll.u32 %v2817_v39, 16  ;;  %v276_v57 = vor.u32 %v275_v48, %v271_v43  ;;  %v293_v58 = vshll.u32 %v2826_v44, 16  ;;  %v2862_v26 = vld [vmem:[%s2769_s5 + $0x30] sm:$0xf]  ;;  %v2869_v35 = vld [vmem:[%s2769_s5 + $0x34] sm:$0xf] }
  0x1e   : > { %v248_v55 = vsel %vm2821_vm5, %v243_v46, %v247_v28  ;;  %v258_v56 = vsel %vm2821_vm5, %v253_v47, %v257_v31  ;;  %v286_v61 = vrot.slane %v284_v53, 4  ;;  %v297_v2 = vshrl.u32 %v2826_v44, 16  ;;  %v2876_v41 = vld [vmem:[%s2769_s5 + $0x38] sm:$0x1]  ;;  %p188_p6 = scmp.lt.s32.totalorder %s2008_s23, 15 }
  0x1f   : > { %v2016_v59 = vcombine.low %v248_v55, %v258_v56  ;;  %v267_v60 = vrot.slane %v266_v50, 4  ;;  %v289_v62 = vrot.slane %v287_v54, 5  ;;  %v277_v0 = vrot.slane %v276_v57, 4 }
  0x20   : > { %v295_v1 = vrot.slane %v293_v58, 5  ;;  %v303_v3 = vshll.u32 %v2833_v52, 16  ;;  %v773_v11 = vrot.slane %v2826_v44, 5  ;;  %v776_v12 = vrot.slane %v2833_v52, 5  ;;  %v2888_v58 = vld [vmem:[%s2769_s5 + $0x3c] sm:$0xf] }
  0x21   : > { %2301 = vmatprep.mubr.msk.bf16.mxu1 %vm453_vm4, %v2016_v59  ;;  %v272_v7 = vsel %vm2821_vm5, %v267_v60, %v271_v43  ;;  %v290_v8 = vor.u32 %v289_v62, %v286_v61  ;;  %v282_v17 = vsel %vm2821_vm5, %v277_v0, %v281_v49  ;;  %v299_v18 = vrot.slane %v297_v2, 4  ;;  %v2893_v0 = vld [vmem:[%s2769_s5 + $0x40] sm:$0xf]  ;;  %s3335_s23 = smov (!%p188_p6, %s2008_s23), 15 }
  0x22   : > { %v305_v19 = vrot.slane %v303_v3, 5  ;;  %v308_v21 = vshrl.u32 %v2843_v63, 16  ;;  %v2017_v27 = vcombine.low %v272_v7, %v282_v17  ;;  %v311_v29 = vshll.u32 %v2843_v63, 16  ;;  %v2125_v7 = vld [vmem:[%s3315_s1 + $0x10] sm:$0x3]  ;;  %s2009_s24 = sshll.u32 %s3335_s23, 1 }
  0x23   : > { %v291_v28 = vrot.slane %v290_v8, 4  ;;  %v317_v30 = vshll.u32 %v2848_v5, 16  ;;  %v300_v31 = vor.u32 %v299_v18, %v295_v1  ;;  %v321_v33 = vshrl.u32 %v2848_v5, 16  ;;  %s192_s28 = sadd.s32 %s2010_s25, %s2009_s24 }
  0x24   : > { %v310_v32 = vrot.slane %v308_v21, 4  ;;  %v327_v34 = vshll.u32 %v2856_v16, 16  ;;  %2373 = vmatprep.mubr.msk.bf16.mxu0 %vm453_vm4, %v2017_v27  ;;  %2302 = vmatmul.mubr.msk.bf16.vlgmr.msra.gmra.mrb[0].mxu1 %vm453_vm4, %v2017_v27  ;;  %v313_v37 = vrot.slane %v311_v29, 5  ;;  %v332_v42 = vshrl.u32 %v2862_v26, 16  ;;  %v2914_v29 = vld [vmem:[%s2769_s5 + $0x44] sm:$0x1] }
  0x25   : > { %v296_v36 = vsel %vm2821_vm5, %v291_v28, %v295_v1  ;;  %v319_v38 = vrot.slane %v317_v30, 5  ;;  %2318 = vmatpush3.bf16.msra.mxu1 %v2759_v9  ;;  %v301_v43 = vrot.slane %v300_v31, 4  ;;  %v323_v46 = vrot.slane %v321_v33, 4  ;;  %s2011_s12 = sshll.u32 %s192_s28, 2 }
  0x26   : > { %v329_v47 = vrot.slane %v327_v34, 5  ;;  %v335_v48 = vshll.u32 %v2862_v26, 16  ;;  %v314_v49 = vor.u32 %v313_v37, %v310_v32  ;;  %v334_v50 = vrot.slane %v332_v42, 4  ;;  %2335 = vmatprep.subr.bf16.mxu1 %v2806_v25  ;;  %s3277_s30 = scalar_lea.vmem %s3317_s3, %s2011_s12 }
  0x27   : > { %v341_v53 = vshll.u32 %v2869_v35, 16  ;;  %v345_v54 = vshrl.u32 %v2869_v35, 16  ;;  %v306_v55 = vsel %vm2821_vm5, %v301_v43, %v305_v19  ;;  %v324_v56 = vor.u32 %v323_v46, %v319_v38  ;;  %v2926_v43 = vld [vmem:[%s2769_s5 + $0x48] sm:$0xf] }
  0x28   : > { %v337_v57 = vrot.slane %v335_v48, 5  ;;  %v351_v9 = vshll.u32 %v2876_v41, 16  ;;  %v2890_v59 = vcombine.low %v296_v36, %v306_v55  ;;  %v315_v60 = vrot.slane %v314_v49, 4 }
  0x29   : > { %v343_v61 = vrot.slane %v341_v53, 5  ;;  %v347_v62 = vrot.slane %v345_v54, 4  ;;  %v325_v1 = vrot.slane %v324_v56, 4  ;;  %v2049_v8 = vrot.slane %v2793_v20, 9 }
  0x2a   : > { %v338_v2 = vor.u32 %v337_v57, %v334_v50  ;;  %v353_v3 = vrot.slane %v351_v9, 5  ;;  %2374 = vmatmul.mubr.msk.bf16.vlgmr.msra.gmra.mrb[0].mxu0 %vm453_vm4, %v2890_v59  ;;  %2305 = vmatprep.mubr.msk.bf16.mxu1 %vm453_vm4, %v2890_v59  ;;  %v320_v17 = vsel %vm2821_vm5, %v315_v60, %v319_v38  ;;  %v766_v19 = vrot.slane %v2797_v22, 5  ;;  %v2941_v50 = vld [vmem:[%s2769_s5 + $0x4c] sm:$0xf] }
  0x2b   : > { %v348_v18 = vor.u32 %v347_v62, %v343_v61  ;;  %v356_v21 = vshrl.u32 %v2888_v58, 16  ;;  %2390 = vmatpush3.bf16.msra.mxu0 %v2762_v10  ;;  %v330_v27 = vsel %vm2821_vm5, %v325_v1, %v329_v47  ;;  %v359_v30 = vshll.u32 %v2888_v58, 16  ;;  %v2958_v62 = vld [vmem:[%s2769_s5 + $0x50] sm:$0x1] }
  0x2c   : > { %v339_v28 = vrot.slane %v338_v2, 4  ;;  %v365_v31 = vshll.u32 %v2893_v0, 16  ;;  %v2918_v32 = vcombine.low %v320_v17, %v330_v27  ;;  %v767_v34 = vsel %vm2897_vm8, %v2049_v8, %v766_v19  ;;  %2407 = vmatprep.subr.bf16.mxu0 %v2803_v24 }
  0x2d   : > { %v349_v33 = vrot.slane %v348_v18, 4  ;;  %v768_v36 = vrot.slane %v766_v19, 4  ;;  %v358_v37 = vrot.slane %v356_v21, 4  ;;  %v361_v38 = vrot.slane %v359_v30, 5 }
  0x2e   : > { %v344_v10 = vsel %vm2821_vm5, %v339_v28, %v343_v61  ;;  %v367_v42 = vrot.slane %v365_v31, 5  ;;  %2377 = vmatprep.mubr.msk.bf16.mxu0 %vm453_vm4, %v2918_v32  ;;  %2306 = vmatmul.mubr.msk.bf16.gmra.mrb[4].mxu1 %vm453_vm4, %v2918_v32  ;;  %v369_v48 = vshrl.u32 %v2893_v0, 16  ;;  %v375_v49 = vshll.u32 %v2914_v29, 16 }
  0x2f   : > { %v354_v46 = vsel %vm2821_vm5, %v349_v33, %v353_v3  ;;  %v770_v47 = vsel %vm2897_vm8, %v768_v36, %v769_v51  ;;  %v362_v55 = vor.u32 %v361_v38, %v358_v37  ;;  %v2050_v56 = vrot.slane %v2817_v39, 9 }
  0x30   : > { %v2943_v53 = vcombine.low %v344_v10, %v354_v46  ;;  %v2945_v54 = vcombine.low %v767_v34, %v770_v47  ;;  %v371_v57 = vrot.slane %v369_v48, 4  ;;  %v377_v23 = vrot.slane %v375_v49, 5  ;;  %v2983_v10 = vld [vmem:[%s2769_s5 + $0x58] sm:$0xf]  ;;  %v2989_v47 = vld [vmem:[%s2769_s5 + $0x5c] sm:$0x1] }
  0x31   : > { %v775_v9 = vrot.slane %v773_v11, 4  ;;  %v380_v51 = vshrl.u32 %v2926_v43, 16  ;;  %v363_v60 = vrot.slane %v362_v55, 4  ;;  %v774_v61 = vsel %vm2897_vm8, %v2050_v56, %v773_v11  ;;  %v2970_v11 = vld [vmem:[%s2769_s5 + $0x54] sm:$0xf] }
  0x32   : > { %2309 = vmatprep.mubr.msk.bf16.mxu1 %vm453_vm4, %v2943_v53  ;;  %v383_v1 = vshll.u32 %v2926_v43, 16  ;;  %v389_v2 = vshll.u32 %v2941_v50, 16  ;;  %2378 = vmatmul.mubr.msk.bf16.gmra.mrb[4].mxu0 %vm453_vm4, %v2943_v53  ;;  %v372_v3 = vor.u32 %v371_v57, %v367_v42  ;;  %v393_v18 = vshrl.u32 %v2941_v50, 16 }
  0x33   : > { %v777_v8 = vsel %vm2897_vm8, %v775_v9, %v776_v12  ;;  %v382_v17 = vrot.slane %v380_v51, 4  ;;  %2391 = vmatprep.mubr.msk.bf16.mxu0 %vm453_vm4, %v2945_v54  ;;  %v368_v19 = vsel %vm2821_vm5, %v363_v60, %v367_v42  ;;  %v399_v12 = vshll.u32 %v2958_v62, 16 }
  0x34   : > { %v2976_v21 = vcombine.low %v774_v61, %v777_v8  ;;  %v385_v27 = vrot.slane %v383_v1, 5  ;;  %v391_v52 = vrot.slane %v389_v2, 5  ;;  %v373_v28 = vrot.slane %v372_v3, 4 }
  0x35   : > { %v395_v30 = vrot.slane %v393_v18, 4  ;;  %v2051_v31 = vrot.slane %v2843_v63, 9  ;;  %v780_v34 = vrot.slane %v2848_v5, 5  ;;  %v783_v36 = vrot.slane %v2856_v16, 5 }
  0x36   : > { %v386_v33 = vor.u32 %v385_v27, %v382_v17  ;;  %v404_v37 = vshrl.u32 %v2970_v11, 16  ;;  %v378_v38 = vsel %vm2821_vm5, %v373_v28, %v377_v23  ;;  %v401_v46 = vrot.slane %v399_v12, 5 }
  0x37   : > { %v396_v42 = vor.u32 %v395_v30, %v391_v52  ;;  %v407_v48 = vshll.u32 %v2970_v11, 16  ;;  %v2992_v49 = vcombine.low %v368_v19, %v378_v38  ;;  %v781_v56 = vsel %vm2897_vm8, %v2051_v31, %v780_v34 }
  0x38   : > { %v387_v55 = vrot.slane %v386_v33, 4  ;;  %v782_v16 = vrot.slane %v780_v34, 4  ;;  %v406_v9 = vrot.slane %v404_v37, 4  ;;  %v413_v60 = vshll.u32 %v2983_v10, 16 }
  0x39   : > { %v397_v57 = vrot.slane %v396_v42, 4  ;;  %v409_v51 = vrot.slane %v407_v48, 5  ;;  %2310 = vmatmul.mubr.msk.bf16.gmra.mrb[8].mxu1 %vm453_vm4, %v2992_v49  ;;  %v417_v1 = vshrl.u32 %v2983_v10, 16  ;;  %v423_v2 = vshll.u32 %v2989_v47, 16 }
  0x3a   : > { %v392_v23 = vsel %vm2821_vm5, %v387_v55, %v391_v52  ;;  %v784_v61 = vsel %vm2897_vm8, %v782_v16, %v783_v36  ;;  %2392 = vmatmul.mubr.msk.bf16.vlgmr.msra.gmra.mrb[0].mxu0 %vm453_vm4, %v2976_v21  ;;  %v415_v18 = vrot.slane %v413_v60, 5  ;;  %v2052_v52 = vrot.slane %v2862_v26, 9 }
  0x3b   : > { %v402_v3 = vsel %vm2821_vm5, %v397_v57, %v401_v46  ;;  %v3009_v8 = vcombine.low %v781_v56, %v784_v61  ;;  %v410_v17 = vor.u32 %v409_v51, %v406_v9  ;;  %2408 = vmatpush3.bf16.msra.mxu0 %v2803_v24  ;;  %v419_v27 = vrot.slane %v417_v1, 4  ;;  %v3046_v1 = vld [vmem:[%s2769_s5 + $0x64] sm:$0xf] }
  0x3c   : > { %v3012_v19 = vcombine.low %v392_v23, %v402_v3  ;;  %v787_v30 = vrot.slane %v2869_v35, 5  ;;  %v790_v12 = vrot.slane %v2876_v41, 5  ;;  %v2053_v31 = vrot.slane %v2888_v58, 9  ;;  %2425 = vmatprep.subr.bf16.mxu0 %v2829_v45 }
  0x3d   : > { %2395 = vmatprep.mubr.msk.bf16.mxu0 %vm453_vm4, %v3009_v8  ;;  %v411_v28 = vrot.slane %v410_v17, 4  ;;  %v420_v24 = vor.u32 %v419_v27, %v415_v18  ;;  %v425_v33 = vrot.slane %v423_v2, 5  ;;  %v794_v34 = vrot.slane %v2893_v0, 5 }
  0x3e   : > { %2313 = vmatprep.mubr.msk.bf16.mxu1 %vm453_vm4, %v3012_v19  ;;  %v797_v36 = vrot.slane %v2914_v29, 5  ;;  %v788_v37 = vsel %vm2897_vm8, %v2052_v52, %v787_v30  ;;  %v789_v38 = vrot.slane %v787_v30, 4  ;;  %v2032_v41 = vcombine.low %v2780_v13, %v2783_v14  ;;  %v3068_v30 = vld [vmem:[%s2769_s5 + $0x68] sm:$0x1] }
  0x3f   : > { %v801_v42 = vrot.slane %v2941_v50, 5  ;;  %v416_v46 = vsel %vm2821_vm5, %v411_v28, %v415_v18  ;;  %v421_v48 = vrot.slane %v420_v24, 4  ;;  %v795_v55 = vsel %vm2897_vm8, %v2053_v31, %v794_v34  ;;  %v3057_v18 = vld [vmem:[%s2769_s5 + $0x60] sm:$0xf] }
  0x40   : > { %v796_v56 = vrot.slane %v794_v34, 4  ;;  %v791_v29 = vsel %vm2897_vm8, %v789_v38, %v790_v12  ;;  %v2054_v16 = vrot.slane %v2926_v43, 9  ;;  %v804_v9 = vrot.slane %v2958_v62, 5 }
  0x41   : > { %v803_v57 = vrot.slane %v801_v42, 4  ;;  %v426_v51 = vsel %vm2821_vm5, %v421_v48, %v425_v33  ;;  %v3040_v60 = vcombine.low %v788_v37, %v791_v29  ;;  %v2055_v61 = vrot.slane %v2970_v11, 9 }
  0x42   : > { %v798_v23 = vsel %vm2897_vm8, %v796_v56, %v797_v36  ;;  %v3048_v2 = vcombine.low %v416_v46, %v426_v51  ;;  %v808_v17 = vrot.slane %v2983_v10, 5  ;;  %v811_v62 = vrot.slane %v2989_v47, 5  ;;  %v2073_v36 = vld [vmem:[%s3315_s1 + $0x6] sm:$0x3] }
  0x43   : > { %v3050_v3 = vcombine.low %v795_v55, %v798_v23  ;;  %2396 = vmatmul.mubr.msk.bf16.gmra.mrb[4].mxu0 %vm453_vm4, %v3040_v60  ;;  %v802_v27 = vsel %vm2897_vm8, %v2054_v16, %v801_v42  ;;  %v805_v52 = vsel %vm2897_vm8, %v803_v57, %v804_v9  ;;  %v1256_v47 = vrot.slane %v3046_v1, 5 }
  0x44   : > { %2314 = vmatmul.mubr.msk.bf16.gmra.mrb[12].mxu1 %vm453_vm4, %v3048_v2  ;;  %v810_v28 = vrot.slane %v808_v17, 4  ;;  %v809_v12 = vsel %vm2897_vm8, %v2055_v61, %v808_v17  ;;  %v762_v31 = vrot.slane %v2786_v15, 5  ;;  %v2093_v33 = vrot.slane %v3057_v18, 9  ;;  %v3087_v15 = vld [vmem:[%s2769_s5 + $0x6c] sm:$0xf] }
  0x45   : > { %2399 = vmatprep.mubr.msk.bf16.mxu0 %vm453_vm4, %v3050_v3  ;;  %2319 = vmatprep.mubr.msk.bf16.mxu1 %vm453_vm4, %v2032_v41  ;;  %v2048_v34 = vrot.slane %v2780_v13, 9  ;;  %v3082_v37 = vcombine.low %v802_v27, %v805_v52  ;;  %v1258_v38 = vrot.slane %v1256_v47, 4  ;;  %v1259_v41 = vrot.slane %v3068_v30, 5  ;;  %v3096_v13 = vld [vmem:[%s2769_s5 + $0x70] sm:$0xf] }
  0x46   : > { %v812_v24 = vsel %vm2897_vm8, %v810_v28, %v811_v62  ;;  %v759_v42 = vrot.slane %v2783_v14, 5  ;;  %v3091_v46 = vcombine.low %v2793_v20, %v2797_v22  ;;  %v1512_v55 = vshrl.u32 %v3087_v15, 16 }
  0x47   : > { %v3093_v48 = vcombine.low %v809_v12, %v812_v24  ;;  %v1515_v56 = vshll.u32 %v3087_v15, 16  ;;  %v3102_v29 = vcombine.low %v2817_v39, %v2826_v44  ;;  %v1525_v57 = vshrl.u32 %v3096_v13, 16  ;;  %v230_v44 = vld [vmem:[%s2769_s5 + $0x74] sm:$0x1] }
  0x48   : > { %v760_v14 = vsel %vm2897_vm8, %v2048_v34, %v759_v42  ;;  %v761_v16 = vrot.slane %v759_v42, 4  ;;  %v1257_v20 = vsel %vm2897_vm8, %v2093_v33, %v1256_v47  ;;  %v990_v22 = vand.u32 %v2073_v36, %v2742_v4 }
  0x49   : > { %v1260_v9 = vsel %vm2897_vm8, %v1258_v38, %v1259_v41  ;;  %v1514_v51 = vrot.slane %v1512_v55, 4  ;;  %v1517_v23 = vrot.slane %v1515_v56, 5  ;;  %v1521_v62 = vshll.u32 %v3096_v13, 16 }
  0x4a   : > { %v763_v39 = vsel %vm2897_vm8, %v761_v16, %v762_v31  ;;  %v1527_v27 = vrot.slane %v1525_v57, 4  ;;  %v3125_v52 = vcombine.low %v1257_v20, %v1260_v9  ;;  %v1531_v28 = vshll.u32 %v230_v44, 16 }
  0x4b   : > { %2400 = vmatmul.mubr.msk.bf16.gmra.mrb[8].mxu0 %vm453_vm4, %v3082_v37  ;;  %v2057_v61 = vcombine.low %v760_v14, %v763_v39  ;;  %v1518_v17 = vor.u32 %v1517_v23, %v1514_v51  ;;  %v2124_v47 = vrot.slane %v3087_v15, 9  ;;  %v1523_v31 = vrot.slane %v1521_v62, 5 }
  0x4c   : > { %2320 = vmatmul.mubr.msk.bf16.vlgmr.msra.gmra.mrb[0].mxu1 %vm453_vm4, %v3091_v46  ;;  %2403 = vmatprep.mubr.msk.bf16.mxu0 %vm453_vm4, %v3093_v48  ;;  %v1662_v24 = vrot.slane %v3096_v13, 5  ;;  %v1665_v33 = vrot.slane %v230_v44, 5  ;;  %v3135_v34 = vcombine.low %v2862_v26, %v2869_v35  ;;  %v1533_v36 = vrot.slane %v1531_v28, 5 }
  0x4d   : > { %2336 = vmatpush3.bf16.msra.mxu1 %v2806_v25  ;;  %2323 = vmatprep.mubr.msk.bf16.mxu1 %vm453_vm4, %v3102_v29  ;;  %v1519_v12 = vrot.slane %v1518_v17, 4  ;;  %v3131_v25 = vcombine.low %v2843_v63, %v2848_v5  ;;  %v1528_v41 = vor.u32 %v1527_v27, %v1523_v31  ;;  %v2037_v14 = vcombine.low %v2888_v58, %v2893_v0 }
  0x4e   : > { %2353 = vmatprep.subr.bf16.mxu1 %v990_v22  ;;  %v3141_v42 = vsel %vm2897_vm8, %v2124_v47, %v1662_v24  ;;  %v1664_v55 = vrot.slane %v1662_v24, 4  ;;  %v2038_v16 = vcombine.low %v2926_v43, %v2941_v50  ;;  %v1676_v57 = vand.u32 %v2125_v7, %v2742_v4 }
  0x4f   : > { %v1524_v38 = vsel %vm2821_vm5, %v1519_v12, %v1523_v31  ;;  %v1529_v56 = vrot.slane %v1528_v41, 4  ;;  %v2039_v58 = vcombine.low %v2970_v11, %v2983_v10  ;;  %v2074_v4 = vcombine.low %v3057_v18, %v3046_v1 }
  0x50   : > { %v3147_v63 = vsel %vm2897_vm8, %v1664_v55, %v1665_v33  ;;  %v1106_v0 = vshrl.u32 %v3057_v18, 16  ;;  %v1109_v43 = vshll.u32 %v3057_v18, 16  ;;  %v1115_v50 = vshll.u32 %v3046_v1, 16 }
  0x51   : > { %v2126_v5 = vcombine.low %v3141_v42, %v3147_v63  ;;  %v1534_v26 = vsel %vm2821_vm5, %v1529_v56, %v1533_v36 }
  0x52   : > { %v2115_v35 = vcombine.low %v1524_v38, %v1534_v26  ;;  %v1108_v11 = vrot.slane %v1106_v0, 4  ;;  %v1111_v10 = vrot.slane %v1109_v43, 5 }
  0x53   : > { %2404 = vmatmul.mubr.msk.bf16.gmra.mrb[12].mxu0 %vm453_vm4, %v3125_v52 }
  0x54   : > { %2324 = vmatmul.mubr.msk.bf16.gmra.mrb[4].mxu1 %vm453_vm4, %v3131_v25  ;;  %2409 = vmatprep.mubr.msk.bf16.mxu0 %vm453_vm4, %v3102_v29 }
  0x55   : > { %2327 = vmatprep.mubr.msk.bf16.mxu1 %vm453_vm4, %v3135_v34 }
  0x5b   : > { %2410 = vmatmul.mubr.msk.bf16.vlgmr.msra.gmra.mrb[0].mxu0 %vm453_vm4, %v3131_v25 }
  0x5c   : > { %2328 = vmatmul.mubr.msk.bf16.gmra.mrb[8].mxu1 %vm453_vm4, %v2037_v14  ;;  %2426 = vmatpush3.bf16.msra.mxu0 %v2829_v45  ;;  %v2105_v45 = vcombine.low %v3087_v15, %v3096_v13  ;;  %v1117_v15 = vrot.slane %v1115_v50, 5 }
  0x5d   : > { %2331 = vmatprep.mubr.msk.bf16.mxu1 %vm453_vm4, %v2038_v16  ;;  %2413 = vmatprep.mubr.msk.bf16.mxu0 %vm453_vm4, %v3135_v34 }
  0x5e   : > { %2443 = vmatprep.subr.bf16.mxu0 %v1676_v57 }
  0x63   : > { %2414 = vmatmul.mubr.msk.bf16.gmra.mrb[4].mxu0 %vm453_vm4, %v2037_v14 }
  0x64   : > { %2332 = vmatmul.mubr.msk.bf16.gmra.mrb[12].mxu1 %vm453_vm4, %v2039_v58  ;;  %2417 = vmatprep.mubr.msk.bf16.mxu0 %vm453_vm4, %v2038_v16 }
  0x65   : > { %2337 = vmatprep.mubr.msk.bf16.mxu1 %vm453_vm4, %v2057_v61 }
  0x6b   : > { %2418 = vmatmul.mubr.msk.bf16.gmra.mrb[8].mxu0 %vm453_vm4, %v2039_v58 }
  0x6c   : > { %2338 = vmatmul.mubr.msk.bf16.vlgmr.msra.gmra.mrb[0].mxu1 %vm453_vm4, %v2945_v54  ;;  %2421 = vmatprep.mubr.msk.bf16.mxu0 %vm453_vm4, %v2074_v4  ;;  %v1119_v54 = vshrl.u32 %v3046_v1, 16  ;;  %v1125_v1 = vshll.u32 %v3068_v30, 16 }
  0x6d   : > { %2354 = vmatpush3.bf16.msra.mxu1 %v990_v22  ;;  %2341 = vmatprep.mubr.msk.bf16.mxu1 %vm453_vm4, %v2976_v21 }
  0x6e   : > { %2461 = vmatprep.subr.bf16.mxu1 %v2748_v6  ;;  %v1121_v13 = vrot.slane %v1119_v54, 4  ;;  %v1127_v9 = vrot.slane %v1125_v1, 5 }
  0x70   : > { %v1122_v18 = vor.u32 %v1121_v13, %v1117_v15 }
  0x72   : > { %v1123_v22 = vrot.slane %v1122_v18, 4 }
  0x73   : > { %2422 = vmatmul.mubr.msk.bf16.gmra.mrb[12].mxu0 %vm453_vm4, %v2105_v45 }
  0x74   : > { %2342 = vmatmul.mubr.msk.bf16.gmra.mrb[4].mxu1 %vm453_vm4, %v3009_v8  ;;  %2427 = vmatprep.mubr.msk.bf16.mxu0 %vm453_vm4, %v2890_v59  ;;  %v1112_v59 = vor.u32 %v1111_v10, %v1108_v11 }
  0x75   : > { %2345 = vmatprep.mubr.msk.bf16.mxu1 %vm453_vm4, %v3040_v60 }
  0x76   : > { %v1113_v20 = vrot.slane %v1112_v59, 4 }
  0x7b   : > { %2428 = vmatmul.mubr.msk.bf16.vlgmr.msra.gmra.mrb[0].mxu0 %vm453_vm4, %v2918_v32  ;;  %v1118_v32 = vsel %vm2821_vm5, %v1113_v20, %v1117_v15 }
  0x7c   : > { %2346 = vmatmul.mubr.msk.bf16.gmra.mrb[8].mxu1 %vm453_vm4, %v3050_v3  ;;  %2444 = vmatpush3.bf16.msra.mxu0 %v1676_v57 }
  0x7d   : > { %2349 = vmatprep.mubr.msk.bf16.mxu1 %vm453_vm4, %v3082_v37  ;;  %2431 = vmatprep.mubr.msk.bf16.mxu0 %vm453_vm4, %v2943_v53  ;;  %v1128_v53 = vsel %vm2821_vm5, %v1123_v22, %v1127_v9 }
  0x7e   : > { %v2084_v30 = vcombine.low %v1118_v32, %v1128_v53 }
  0x83   : > { %2432 = vmatmul.mubr.msk.bf16.gmra.mrb[4].mxu0 %vm453_vm4, %v2992_v49 }
  0x84   : > { %2350 = vmatmul.mubr.msk.bf16.gmra.mrb[12].mxu1 %vm453_vm4, %v3093_v48  ;;  %2435 = vmatprep.mubr.msk.bf16.mxu0 %vm453_vm4, %v3012_v19 }
  0x85   : > { %2355 = vmatprep.mubr.msk.bf16.mxu1 %vm453_vm4, %v3091_v46 }
  0x8b   : > { %2436 = vmatmul.mubr.msk.bf16.gmra.mrb[8].mxu0 %vm453_vm4, %v3048_v2 }
  0x8c   : > { %2356 = vmatmul.mubr.msk.bf16.vlgmr.msra.gmra.mrb[0].mxu1 %vm453_vm4, %v3102_v29  ;;  %2439 = vmatprep.mubr.msk.bf16.mxu0 %vm453_vm4, %v2084_v30 }
  0x8d   : > { %2462 = vmatpush3.bf16.msra.mxu1 %v2748_v6  ;;  %2359 = vmatprep.mubr.msk.bf16.mxu1 %vm453_vm4, %v3131_v25 }
  0x93   : > { %2440 = vmatmul.mubr.msk.bf16.gmra.mrb[12].mxu0 %vm453_vm4, %v2115_v35 }
  0x94   : > { %2360 = vmatmul.mubr.msk.bf16.gmra.mrb[4].mxu1 %vm453_vm4, %v3135_v34  ;;  %2445 = vmatprep.mubr.msk.bf16.mxu0 %vm453_vm4, %v2976_v21 }
  0x95   : > { %2363 = vmatprep.mubr.msk.bf16.mxu1 %vm453_vm4, %v2037_v14 }
  0x9b   : > { %2446 = vmatmul.mubr.msk.bf16.vlgmr.msra.gmra.mrb[0].mxu0 %vm453_vm4, %v3009_v8 }
  0x9c   : > { %2364 = vmatmul.mubr.msk.bf16.gmra.mrb[8].mxu1 %vm453_vm4, %v2038_v16  ;;  %2449 = vmatprep.mubr.msk.bf16.mxu0 %vm453_vm4, %v3040_v60 }
  0x9d   : > { %2367 = vmatprep.mubr.msk.bf16.mxu1 %vm453_vm4, %v2039_v58 }
  0xa3   : > { %2450 = vmatmul.mubr.msk.bf16.gmra.mrb[4].mxu0 %vm453_vm4, %v3050_v3 }
  0xa4   : > { %2368 = vmatmul.mubr.msk.bf16.gmra.mrb[12].mxu1 %vm453_vm4, %v2074_v4  ;;  %2453 = vmatprep.mubr.msk.bf16.mxu0 %vm453_vm4, %v3082_v37  ;;  %v3268_v37 = vld [vmem:[%s3316_s2] ss:$0 sm:$0xff] }
  0xa5   : > { %2381 = vmatprep.mubr.msk.bf16.mxu1 %vm453_vm4, %v2992_v49 }
  0xab   : > { %2454 = vmatmul.mubr.msk.bf16.gmra.mrb[8].mxu0 %vm453_vm4, %v3093_v48 }
  0xac   : > { %2382 = vmatmul.mubr.msk.bf16.vlgmr.msra.gmra.mrb[8].mxu1 %vm453_vm4, %v3012_v19  ;;  %2457 = vmatprep.mubr.msk.bf16.mxu0 %vm453_vm4, %v3125_v52 }
  0xad   : > { %2385 = vmatprep.mubr.msk.bf16.mxu1 %vm453_vm4, %v3048_v2 }
  0xb3   : > { %2458 = vmatmul.mubr.msk.bf16.gmra.mrb[12].mxu0 %vm453_vm4, %v2126_v5 }
  0xb4   : > { %2386 = vmatmul.mubr.msk.bf16.gmra.mrb[12].mxu1 %vm453_vm4, %v2084_v30 }
 0x15f   : > { %v2357_v6 = vpop.f32.mrb[0].mxu1 }
 0x160   : > { %v1026_v40 = vpop.f32.mrb[1].mxu1 }
 0x161   : > { %v2358_v21 = vpop.f32.mrb[2].mxu1 }
 0x162   : > { %v1029_v49 = vpop.f32.mrb[3].mxu1 }
 0x167   : > { %v2361_v8 = vpop.f32.mrb[4].mxu1 }
 0x168   : > { %v1042_v19 = vpop.f32.mrb[5].mxu1 }
 0x169   : > { %v2362_v60 = vpop.f32.mrb[6].mxu1 }
 0x16a   : > { %v1045_v3 = vpop.f32.mrb[7].mxu1 }
 0x16e   : > { %v2447_v2 = vpop.f32.mrb[0].mxu0 }
 0x16f   : > { %v2463_v46 = vadd.f32 %v2447_v2, %v2357_v6  ;;  %v1712_v48 = vpop.f32.mrb[1].mxu0 }
 0x170   : > { %v2464_v29 = vadd.f32 %v1712_v48, %v1026_v40  ;;  %v2448_v39 = vpop.f32.mrb[2].mxu0 }
 0x171   : > { %v1800_v44 = vadd.f32 %v2463_v46, %v3268_v37  ;;  %v2465_v51 = vadd.f32 %v2448_v39, %v2358_v21  ;;  %v1715_v23 = vpop.f32.mrb[3].mxu0 }
 0x172   : > { %v1798_v61 = vadd.f32 %v2464_v29, %v3268_v37  ;;  %v2466_v17 = vadd.f32 %v1715_v23, %v1029_v49 }
 0x173   : > { %v1801_v62 = vadd.f32 %v2465_v51, %v3268_v37  ;;  %v1816_v52 = vmax.f32 %v1800_v44, 0.0 }
 0x174   : > { %v1799_v27 = vadd.f32 %v2466_v17, %v3268_v37  ;;  %v1814_v47 = vmax.f32 %v1798_v61, 0.0 }
 0x175   : > { %v1817_v28 = vmax.f32 %v1801_v62, 0.0 }
 0x176   : > { %v1815_v12 = vmax.f32 %v1799_v27, 0.0  ;;  %v2451_v31 = vpop.f32.mrb[4].mxu0 }
 0x177   : > { %v2179_v24 = vpack.c.bf16 %v1817_v28, %v1816_v52  ;;  %v2467_v33 = vadd.f32 %v2451_v31, %v2361_v8  ;;  %v1728_v25 = vpop.f32.mrb[5].mxu0 }
 0x178   : > { %v2174_v34 = vpack.c.bf16 %v1815_v12, %v1814_v47  ;;  %v2468_v36 = vadd.f32 %v1728_v25, %v1042_v19  ;;  %v2452_v38 = vpop.f32.mrb[6].mxu0 }
 0x179   : > { %2211 = vst [vmem:[%s3277_s30 + $0x8] sm:$0xff] %v2179_v24   ;;  %v1804_v41 = vadd.f32 %v2467_v33, %v3268_v37  ;;  %v2469_v42 = vadd.f32 %v2452_v38, %v2362_v60  ;;  %v1731_v55 = vpop.f32.mrb[7].mxu0 }
 0x17a   : > { %2175 = vst [vmem:[%s3277_s30] sm:$0xff] %v2174_v34   ;;  %v1802_v56 = vadd.f32 %v2468_v36, %v3268_v37  ;;  %v2470_v63 = vadd.f32 %v1731_v55, %v1045_v3 }
 0x17b   : > { %v1805_v5 = vadd.f32 %v2469_v42, %v3268_v37  ;;  %v1820_v35 = vmax.f32 %v1804_v41, 0.0 }
 0x17c   : > { %v1803_v26 = vadd.f32 %v2470_v63, %v3268_v37  ;;  %v1818_v14 = vmax.f32 %v1802_v56, 0.0 }
 0x17d   : > { %v1821_v7 = vmax.f32 %v1805_v5, 0.0 }
 0x17e   : > { %v1819_v16 = vmax.f32 %v1803_v26, 0.0  ;;  %v2455_v57 = vpop.f32.mrb[8].mxu0 }
 0x17f   : > { %v2189_v58 = vpack.c.bf16 %v1821_v7, %v1820_v35  ;;  %v2383_v4 = vpop.f32.mrb[8].mxu1  ;;  %v1744_v45 = vpop.f32.mrb[9].mxu0 }
 0x180   : > { %v2184_v0 = vpack.c.bf16 %v1819_v16, %v1818_v14  ;;  %v2471_v43 = vadd.f32 %v2455_v57, %v2383_v4  ;;  %v1206_v50 = vpop.f32.mrb[9].mxu1  ;;  %v2456_v54 = vpop.f32.mrb[10].mxu0 }
 0x181   : > { %2213 = vst [vmem:[%s3277_s30 + $0x18] sm:$0xff] %v2189_v58   ;;  %v2472_v11 = vadd.f32 %v1744_v45, %v1206_v50  ;;  %v2384_v10 = vpop.f32.mrb[10].mxu1  ;;  %v1747_v15 = vpop.f32.mrb[11].mxu0 }
 0x182   : > { %2212 = vst [vmem:[%s3277_s30 + $0x10] sm:$0xff] %v2184_v0   ;;  %v1808_v13 = vadd.f32 %v2471_v43, %v3268_v37  ;;  %v2473_v59 = vadd.f32 %v2456_v54, %v2384_v10  ;;  %v1209_v18 = vpop.f32.mrb[11].mxu1 }
 0x183   : > { %v1806_v1 = vadd.f32 %v2472_v11, %v3268_v37  ;;  %v2474_v20 = vadd.f32 %v1747_v15, %v1209_v18 }
 0x184   : > { %v1809_v22 = vadd.f32 %v2473_v59, %v3268_v37  ;;  %v1824_v32 = vmax.f32 %v1808_v13, 0.0 }
 0x185   : > { %v1807_v9 = vadd.f32 %v2474_v20, %v3268_v37  ;;  %v1822_v6 = vmax.f32 %v1806_v1, 0.0 }
 0x186   : > { %v1825_v53 = vmax.f32 %v1809_v22, 0.0  ;;  %v2459_v30 = vpop.f32.mrb[12].mxu0 }
 0x187   : > { %v1823_v40 = vmax.f32 %v1807_v9, 0.0  ;;  %v2387_v21 = vpop.f32.mrb[12].mxu1  ;;  %v1760_v49 = vpop.f32.mrb[13].mxu0 }
 0x188   : > { %v2199_v8 = vpack.c.bf16 %v1825_v53, %v1824_v32  ;;  %v2475_v19 = vadd.f32 %v2459_v30, %v2387_v21  ;;  %v1222_v60 = vpop.f32.mrb[13].mxu1  ;;  %v2460_v3 = vpop.f32.mrb[14].mxu0 }
 0x189   : > { %v2194_v2 = vpack.c.bf16 %v1823_v40, %v1822_v6  ;;  %v2476_v46 = vadd.f32 %v1760_v49, %v1222_v60  ;;  %v2388_v48 = vpop.f32.mrb[14].mxu1  ;;  %v1763_v29 = vpop.f32.mrb[15].mxu0 }
 0x18a   : > { %2215 = vst [vmem:[%s3277_s30 + $0x28] sm:$0xff] %v2199_v8   ;;  %v1812_v39 = vadd.f32 %v2475_v19, %v3268_v37  ;;  %v2477_v44 = vadd.f32 %v2460_v3, %v2388_v48  ;;  %v1225_v51 = vpop.f32.mrb[15].mxu1 }
 0x18b   : > { %2214 = vst [vmem:[%s3277_s30 + $0x20] sm:$0xff] %v2194_v2   ;;  %v1810_v23 = vadd.f32 %v2476_v46, %v3268_v37  ;;  %v2478_v61 = vadd.f32 %v1763_v29, %v1225_v51 }
 0x18c   : > { %v1813_v17 = vadd.f32 %v2477_v44, %v3268_v37  ;;  %v1828_v27 = vmax.f32 %v1812_v39, 0.0 }
 0x18d   : > { %v1811_v62 = vadd.f32 %v2478_v61, %v3268_v37  ;;  %v1826_v28 = vmax.f32 %v1810_v23, 0.0 }
 0x18e   : > { %v1829_v52 = vmax.f32 %v1813_v17, 0.0 }
 0x18f   : > { %v1827_v47 = vmax.f32 %v1811_v62, 0.0 }
 0x190   : > { %v2209_v12 = vpack.c.bf16 %v1829_v52, %v1828_v27 }
 0x191   : > { %v2204_v31 = vpack.c.bf16 %v1827_v47, %v1826_v28 }
 0x192   : > { %2217 = vst [vmem:[%s3277_s30 + $0x38] sm:$0xff] %v2209_v12  }
 0x193   : > { %2216 = vst [vmem:[%s3277_s30 + $0x30] sm:$0xff] %v2204_v31  }
 0x194 PF: > { %s13_s16 = sadd.s32 1, %s2681_s16   ;;  %s3322_s12 = smov %s2673_s14 }
 0x195   : > { %p10_p7 = scmp.ge.s32.totalorder %s13_s16, 6   ;;  %s3323_s13 = smov %s2677_s15 }
 0x196   : > { %s3324_s14 = smov %s3327_s17  ;;  %s3325_s15 = smov %s3331_s18 }
 0x197   :  { %12 = sbr.rel (!%p10_p7) target bundleno = 3 (0x3), region = 71 }

// kernel: vgg_forward.8
= control target key start
LH: loop header
LB: loop body
LE: loop exit
PB: predicated region body
PF: predicated region fallthrough
CT: control target
= control target key end

     0   :  { %s3276_s12 = smov 0   ;;  %s3278_s13 = smov 0   ;;  %s3921_s0 = inlined_call_operand.vmem [shape: bf16[2,10,10,128], index: 0, kind: input, shape index: {}]   ;;  %s3922_s1 = inlined_call_operand.vmem [shape: bf16[3,3,128,128], index: 1, kind: input, shape index: {}]   ;;  %s3923_s2 = inlined_call_operand.vmem [shape: f32[1,128], index: 2, kind: input, shape index: {}]   ;;  %s3924_s3 = inlined_call_operand.vmem [shape: bf16[2,4,4,128], index: 3, kind: output, shape index: {}]  }
   0x1   :  { %s3280_s14 = smov 0  }
   0x2 LB: > { %s25_s15 = sadd.s32 1, %s3249_s13  ;;  %p2455_p0 = scmp.ge.s32.totalorder %s3253_s14, 1  ;;  %s3253_s14 = sphi %s3280_s14, %s13_s14   ;;  %s3249_s13 = sphi %s3278_s13, %s3930_s13   ;;  %s3245_s12 = sphi %s3276_s12, %s3929_s12  }
   0x3   : > { %p27_p1 = scmp.ge.s32.totalorder %s25_s15, 2  ;;  %p151_p2 = scmp.lt.s32.totalorder %s3253_s14, 3 }
   0x5   : > { %s3932_s15 = smov (%p27_p1, %s25_s15), 0  ;;  %p152_p3 = pnand %p2455_p0, %p151_p2 }
   0x6   : > { %v3150_v0 = vld [vmem:[%s3922_s1 + $0x40] sm:$0xff] (!%p152_p3)   ;;  %p179_p4 = scmp.lt.s32.totalorder (!%p152_p3), %s3245_s12, 1  ;;  %v3152_v2 = vld [vmem:[%s3922_s1 + $0x48] sm:$0xff] (!%p152_p3)   ;;  %v3154_v4 = vld [vmem:[%s3922_s1 + $0x50] sm:$0xff] (!%p152_p3)   ;;  %vm235_vm0 = vsmask.f32 (!%p152_p3), 3328 }
   0x7   : > { %155 = sbr.rel (%p152_p3) target bundleno = 438 (0x1b6), region = 32  ;;  %v3151_v1 = vld [vmem:[%s3922_s1 + $0x100] sm:$0xff] (!%p152_p3)   ;;  %2828 = vmatprep.subr.bf16.mxu1 (!%p152_p3), %v3150_v0  ;;  %v3153_v3 = vld [vmem:[%s3922_s1 + $0x108] sm:$0xff] (!%p152_p3)   ;;  %v3155_v5 = vld [vmem:[%s3922_s1 + $0x110] sm:$0xff] (!%p152_p3)   ;;  %vm236_vm1 = vsmask.f32 (!%p152_p3), 7440 }
   0x8   : > { %2924 = vmatprep.subr.bf16.mxu0 (!%p152_p3), %v3151_v1  ;;  %2829 = vmatpush3.bf16.msra.mxu1 (!%p152_p3), %v3150_v0  ;;  %v3156_v6 = vld [vmem:[%s3922_s1 + $0x58] sm:$0xff] (!%p152_p3)   ;;  %v3158_v8 = vld [vmem:[%s3922_s1 + $0x60] sm:$0xff] (!%p152_p3)   ;;  %v3160_v10 = vld [vmem:[%s3922_s1 + $0x68] sm:$0xff] (!%p152_p3)   ;;  %vm641_vm3 = vcmask (!%p152_p3), 1042432   ;;  %vm642_vm4 = vcmask (!%p152_p3), 1046532   ;;  %vm2302_vm6 = vcmask (!%p152_p3), 1041409  }
   0x9   : > { %2925 = vmatpush3.bf16.msra.mxu0 (!%p152_p3), %v3151_v1  ;;  %2830 = vmatprep.subr.bf16.mxu1 (!%p152_p3), %v3152_v2  ;;  %v3157_v7 = vld [vmem:[%s3922_s1 + $0x118] sm:$0xff] (!%p152_p3)   ;;  %v3159_v9 = vld [vmem:[%s3922_s1 + $0x120] sm:$0xff] (!%p152_p3)   ;;  %v3161_v14 = vld [vmem:[%s3922_s1 + $0x128] sm:$0xff] (!%p152_p3)   ;;  %vm2305_vm7 = vcmask (!%p152_p3), 1042434   ;;  %vm2308_vm8 = vcmask (!%p152_p3), 1043459  }
   0xa   : > { %2926 = vmatprep.subr.bf16.mxu0 (!%p152_p3), %v3153_v3  ;;  %v3162_v22 = vld [vmem:[%s3922_s1 + $0x70] sm:$0xff] (!%p152_p3)   ;;  %v3164_v38 = vld [vmem:[%s3922_s1 + $0x78] sm:$0xff] (!%p152_p3)   ;;  %vm3383_vm2 = vmor (!%p152_p3), %vm235_vm0, %vm236_vm1 }
   0xb   : > { %v3163_v23 = vld [vmem:[%s3922_s1 + $0x130] sm:$0xff] (!%p152_p3)   ;;  %v3165_v48 = vld [vmem:[%s3922_s1 + $0x138] sm:$0xff] (!%p152_p3)   ;;  %v3166_v62 = vld [vmem:[%s3922_s1] sm:$0xff] (!%p152_p3)  }
   0xc   : > { %2831 = vmatpush3.bf16.msra.mxu1 (!%p152_p3), %v3152_v2  ;;  %vm3496_vm5 = vmor (!%p152_p3), %vm641_vm3, %vm642_vm4  ;;  %v3194_v39 = vld [vmem:[%s3922_s1 + $0xa8] sm:$0xff] (!%p152_p3)  }
   0xd   : > { %2927 = vmatpush3.bf16.msra.mxu0 (!%p152_p3), %v3153_v3  ;;  %2832 = vmatprep.subr.bf16.mxu1 (!%p152_p3), %v3154_v4  ;;  %v3167_v3 = vld [vmem:[%s3922_s1 + $0x140] sm:$0xff] (!%p152_p3)  }
   0xe   : > { %s3934_s12 = smov (!%p179_p4, %s3245_s12), 1  ;;  %2928 = vmatprep.subr.bf16.mxu0 %v3155_v5 }
   0xf   : > { %s3124_s5 = smul.u32 80, %s3934_s12  ;;  %s2719_s29 = sshll.u32 %s3934_s12, 3 }
  0x10   : > { %2833 = vmatpush3.bf16.msra.mxu1 %v3154_v4  ;;  %s3866_s4 = scalar_lea.vmem %s3924_s3, %s2719_s29 }
  0x11   : > { %2929 = vmatpush3.bf16.msra.mxu0 %v3155_v5  ;;  %2834 = vmatprep.subr.bf16.mxu1 %v3156_v6  ;;  %s3330_s16 = scalar_lea.vmem %s3921_s0, %s3124_s5 }
  0x12   : > { %2930 = vmatprep.subr.bf16.mxu0 %v3157_v7  ;;  %v3336_v11 = vld [vmem:[%s3330_s16] sm:$0xf]  ;;  %v3339_v12 = vld [vmem:[%s3330_s16 + $0x4] sm:$0x1]  ;;  %v3342_v13 = vld [vmem:[%s3330_s16 + $0x8] sm:$0xf] }
  0x13   : > { %v3348_v15 = vld [vmem:[%s3330_s16 + $0xc] sm:$0x1]  ;;  %v239_v16 = vshrl.u32 %v3336_v11, 16  ;;  %v242_v17 = vshll.u32 %v3336_v11, 16  ;;  %v248_v18 = vshll.u32 %v3339_v12, 16  ;;  %v253_v19 = vshrl.u32 %v3342_v13, 16 }
  0x14   : > { %2835 = vmatpush3.bf16.msra.mxu1 %v3156_v6  ;;  %v256_v20 = vshll.u32 %v3342_v13, 16  ;;  %v262_v21 = vshll.u32 %v3348_v15, 16  ;;  %v3363_v30 = vld [vmem:[%s3330_s16 + $0x10] sm:$0xf]  ;;  %v3366_v31 = vld [vmem:[%s3330_s16 + $0x14] sm:$0x1] }
  0x15   : > { %2931 = vmatpush3.bf16.msra.mxu0 %v3157_v7  ;;  %2836 = vmatprep.subr.bf16.mxu1 %v3158_v8  ;;  %v241_v24 = vrot.slane %v239_v16, 4  ;;  %v244_v25 = vrot.slane %v242_v17, 5  ;;  %v250_v26 = vrot.slane %v248_v18, 5  ;;  %v255_v27 = vrot.slane %v253_v19, 4  ;;  %v3369_v33 = vld [vmem:[%s3330_s16 + $0x18] sm:$0xf] }
  0x16   : > { %2932 = vmatprep.subr.bf16.mxu0 %v3159_v9  ;;  %v258_v28 = vrot.slane %v256_v20, 5  ;;  %v264_v29 = vrot.slane %v262_v21, 5  ;;  %v3372_v34 = vld [vmem:[%s3330_s16 + $0x1c] sm:$0x1]  ;;  %v267_v35 = vshrl.u32 %v3363_v30, 16  ;;  %v270_v36 = vshll.u32 %v3363_v30, 16 }
  0x17   : > { %v245_v32 = vor.u32 %v244_v25, %v241_v24  ;;  %v2551_v37 = vcombine.low %v3342_v13, %v3363_v30  ;;  %v276_v41 = vshll.u32 %v3366_v31, 16  ;;  %v281_v42 = vshrl.u32 %v3369_v33, 16  ;;  %v3395_v52 = vld [vmem:[%s3330_s16 + $0x20] sm:$0xf]  ;;  %v3400_v56 = vld [vmem:[%s3330_s16 + $0x24] sm:$0x1] }
  0x18   : > { %2837 = vmatpush3.bf16.msra.mxu1 %v3158_v8  ;;  %v259_v40 = vor.u32 %v258_v28, %v255_v27  ;;  %v284_v43 = vshll.u32 %v3369_v33, 16  ;;  %v269_v45 = vrot.slane %v267_v35, 4  ;;  %v272_v46 = vrot.slane %v270_v36, 5  ;;  %v3168_v17 = vld [vmem:[%s3922_s1 + $0x8] sm:$0xff]   ;;  %v3172_v35 = vld [vmem:[%s3922_s1 + $0x18] sm:$0xff]  }
  0x19   : > { %2933 = vmatpush3.bf16.msra.mxu0 %v3159_v9  ;;  %2838 = vmatprep.subr.bf16.mxu1 %v3160_v10  ;;  %v246_v44 = vrot.slane %v245_v32, 4  ;;  %v290_v47 = vshll.u32 %v3372_v34, 16  ;;  %v283_v50 = vrot.slane %v281_v42, 4  ;;  %v278_v55 = vrot.slane %v276_v41, 5  ;;  %v3169_v24 = vld [vmem:[%s3922_s1 + $0x148] sm:$0xff]   ;;  %v3171_v32 = vld [vmem:[%s3922_s1 + $0x150] sm:$0xff]  }
  0x1a   : > { %2934 = vmatprep.subr.bf16.mxu0 %v3161_v14  ;;  %v260_v49 = vrot.slane %v259_v40, 4  ;;  %v286_v51 = vrot.slane %v284_v43, 5  ;;  %v273_v54 = vor.u32 %v272_v46, %v269_v45  ;;  %v295_v60 = vshrl.u32 %v3395_v52, 16  ;;  %v3436_v25 = vld [vmem:[%s3330_s16 + $0x28] sm:$0xf] }
  0x1b   : > { %v251_v53 = vsel %vm3383_vm2, %v246_v44, %v250_v26  ;;  %v292_v59 = vrot.slane %v290_v47, 5  ;;  %v298_v0 = vshll.u32 %v3395_v52, 16  ;;  %v304_v1 = vshll.u32 %v3400_v56, 16  ;;  %v3440_v27 = vld [vmem:[%s3330_s16 + $0x2c] sm:$0x1] }
  0x1c   : > { %2839 = vmatpush3.bf16.msra.mxu1 %v3160_v10  ;;  %v265_v57 = vsel %vm3383_vm2, %v260_v49, %v264_v29  ;;  %v287_v58 = vor.u32 %v286_v51, %v283_v50  ;;  %v274_v63 = vrot.slane %v273_v54, 4  ;;  %v297_v4 = vrot.slane %v295_v60, 4  ;;  %v3455_v42 = vld [vmem:[%s3330_s16 + $0x34] sm:$0x1]  ;;  %v3173_v54 = vld [vmem:[%s3922_s1 + $0x158] sm:$0xff]  }
  0x1d   : > { %2935 = vmatpush3.bf16.msra.mxu0 %v3161_v14  ;;  %2840 = vmatprep.subr.bf16.mxu1 %v3162_v22  ;;  %v2475_v61 = vcombine.low %v251_v53, %v265_v57  ;;  %v300_v6 = vrot.slane %v298_v0, 5  ;;  %v2552_v7 = vcombine.low %v3369_v33, %v3395_v52  ;;  %v306_v16 = vrot.slane %v304_v1, 5  ;;  %v3464_v53 = vld [vmem:[%s3330_s16 + $0x38] sm:$0xf]  ;;  %v3479_v0 = vld [vmem:[%s3330_s16 + $0x40] sm:$0xf] }
  0x1e   : > { %2936 = vmatprep.subr.bf16.mxu0 %v3163_v23  ;;  %v288_v2 = vrot.slane %v287_v58, 4  ;;  %v279_v5 = vsel %vm3383_vm2, %v274_v63, %v278_v55  ;;  %v650_v19 = vrot.slane %v3348_v15, 5  ;;  %v654_v20 = vrot.slane %v3366_v31, 5  ;;  %v3174_v55 = vld [vmem:[%s3922_s1 + $0x20] sm:$0xff]   ;;  %v3473_v58 = vld [vmem:[%s3330_s16 + $0x3c] sm:$0x1] }
  0x1f   : > { %2844 = vmatprep.mubr.bf16.mxu1 %v2475_v61  ;;  %v2579_v9 = vcombine.low %v265_v57, %v279_v5  ;;  %v301_v14 = vor.u32 %v300_v6, %v297_v4  ;;  %v2500_v26 = vrot.slane %v3342_v13, 9  ;;  %v309_v28 = vshrl.u32 %v3436_v25, 16  ;;  %v3482_v1 = vld [vmem:[%s3330_s16 + $0x44] sm:$0x1]  ;;  %v3177_v15 = vld [vmem:[%s3922_s1 + $0x168] sm:$0xff]  }
  0x20   : > { %2841 = vmatpush3.bf16.msra.mxu1 %v3162_v22  ;;  %v293_v8 = vsel %vm3383_vm2, %v288_v2, %v292_v59  ;;  %v3170_v22 = vld [vmem:[%s3922_s1 + $0x10] sm:$0xff]   ;;  %v312_v29 = vshll.u32 %v3436_v25, 16  ;;  %v318_v36 = vshll.u32 %v3440_v27, 16  ;;  %v332_v45 = vshll.u32 %v3455_v42, 16 }
  0x21   : > { %2937 = vmatpush3.bf16.msra.mxu0 %v3163_v23  ;;  %2842 = vmatprep.subr.bf16.mxu1 %v3164_v38  ;;  %v3419_v10 = vcombine.low %v279_v5, %v293_v8  ;;  %v302_v18 = vrot.slane %v301_v14, 4  ;;  %v311_v40 = vrot.slane %v309_v28, 4  ;;  %v2501_v46 = vrot.slane %v3363_v30, 9  ;;  %v3176_v28 = vld [vmem:[%s3922_s1 + $0x28] sm:$0xff]  }
  0x22   : > { %2938 = vmatprep.subr.bf16.mxu0 %v3165_v48  ;;  %2940 = vmatprep.mubr.bf16.mxu0 %v2579_v9  ;;  %v314_v41 = vrot.slane %v312_v29, 5  ;;  %v320_v49 = vrot.slane %v318_v36, 5  ;;  %v334_v57 = vrot.slane %v332_v45, 5  ;;  %v337_v59 = vshrl.u32 %v3464_v53, 16 }
  0x23   : > { %v307_v21 = vsel %vm3383_vm2, %v302_v18, %v306_v16  ;;  %v340_v60 = vshll.u32 %v3464_v53, 16  ;;  %v346_v63 = vshll.u32 %v3473_v58, 16  ;;  %v979_v4 = vshrl.u32 %v3479_v0, 16  ;;  %v3175_v16 = vld [vmem:[%s3922_s1 + $0x160] sm:$0xff]  }
  0x24   : > { %2843 = vmatpush3.bf16.msra.mxu1 %v3164_v38  ;;  %v2580_v23 = vcombine.low %v293_v8, %v307_v21  ;;  %v3452_v38 = vld [vmem:[%s3330_s16 + $0x30] sm:$0xf]  ;;  %v339_v2 = vrot.slane %v337_v59, 4  ;;  %v982_v5 = vshll.u32 %v3479_v0, 16  ;;  %v988_v14 = vshll.u32 %v3482_v1, 16  ;;  %v3183_v59 = vld [vmem:[%s3922_s1 + $0x80] sm:$0xff]  }
  0x25   : > { %2939 = vmatpush3.bf16.msra.mxu0 %v3165_v48  ;;  %2852 = vmatprep.subr.bf16.mxu1 %v3166_v62  ;;  %v323_v43 = vshrl.u32 %v3452_v38, 16  ;;  %v326_v44 = vshll.u32 %v3452_v38, 16  ;;  %v2553_v47 = vcombine.low %v3436_v25, %v3452_v38  ;;  %v315_v48 = vor.u32 %v314_v41, %v311_v40 }
  0x26   : > { %2948 = vmatprep.subr.bf16.mxu0 %v3167_v3  ;;  %v348_v9 = vrot.slane %v346_v63, 5  ;;  %v990_v41 = vrot.slane %v988_v14, 5  ;;  %v3518_v45 = vsel %vm3496_vm5, %v2500_v26, %v650_v19  ;;  %v646_v26 = vrot.slane %v3339_v12, 5  ;;  %v3564_v63 = vld [vmem:[%s3330_s16 + $0x48] sm:$0xf]  ;;  %v3184_v14 = vld [vmem:[%s3922_s1 + $0x180] sm:$0xff]  }
  0x27   : > { %2845 = vmatmul.mubr.bf16.vlgmr.msra.gmra.mrb[0].mxu1 %v3419_v10  ;;  %v325_v50 = vrot.slane %v323_v43, 4  ;;  %v328_v51 = vrot.slane %v326_v44, 5  ;;  %v316_v61 = vrot.slane %v315_v48, 4  ;;  %v3524_v48 = vsel %vm3496_vm5, %v2501_v46, %v654_v20 }
  0x28   : > { %2853 = vmatpush3.bf16.msra.mxu1 %v3166_v62  ;;  %2941 = vmatmul.mubr.bf16.vlgmr.msra.gmra.mrb[0].mxu0 %v2580_v23  ;;  %v984_v23 = vrot.slane %v982_v5, 5  ;;  %v2608_v20 = vcombine.low %v3518_v45, %v3524_v48  ;;  %v658_v46 = vrot.slane %v3372_v34, 5  ;;  %v2502_v12 = vrot.slane %v3369_v33, 9  ;;  %v218_v5 = vld [vmem:[%s3330_s16 + $0x4c] sm:$0x1] }
  0x29   : > { %2854 = vmatprep.subr.bf16.mxu1 %v3168_v17  ;;  %2949 = vmatpush3.bf16.msra.mxu0 %v3167_v3  ;;  %v329_v62 = vor.u32 %v328_v51, %v325_v50  ;;  %v342_v3 = vrot.slane %v340_v60, 5  ;;  %v321_v6 = vsel %vm3383_vm2, %v316_v61, %v320_v49  ;;  %v3178_v49 = vld [vmem:[%s3922_s1 + $0x30] sm:$0xff]   ;;  %v662_v51 = vrot.slane %v3400_v56, 5 }
  0x2a   : > { %2950 = vmatprep.subr.bf16.mxu0 %v3169_v24  ;;  %v2503_v34 = vrot.slane %v3395_v52, 9  ;;  %v2499_v56 = vrot.slane %v3336_v11, 9  ;;  %v2504_v60 = vrot.slane %v3436_v25, 9  ;;  %v666_v61 = vrot.slane %v3440_v27, 5  ;;  %v3186_v27 = vld [vmem:[%s3922_s1 + $0x88] sm:$0xff]  }
  0x2b   : > { %v330_v8 = vrot.slane %v329_v62, 4  ;;  %v343_v18 = vor.u32 %v342_v3, %v339_v2  ;;  %v2505_v62 = vrot.slane %v3452_v38, 9  ;;  %v1142_v2 = vrot.slane %v3482_v1, 5 }
  0x2c   : > { %2855 = vmatpush3.bf16.msra.mxu1 %v3168_v17  ;;  %v3492_v17 = vcombine.low %v307_v21, %v321_v6  ;;  %v2554_v21 = vcombine.low %v3464_v53, %v3479_v0  ;;  %v3570_v3 = vcombine.low %v3363_v30, %v3369_v33  ;;  %v3584_v1 = vsel %vm3496_vm5, %v2502_v12, %v658_v46  ;;  %v3211_v30 = vld [vmem:[%s3922_s1 + $0x1e0] sm:$0xff]   ;;  %v3226_v33 = vld [vmem:[%s3922_s1 + $0x218] sm:$0xff]  }
  0x2d   : > { %2856 = vmatprep.subr.bf16.mxu1 %v3170_v22  ;;  %2951 = vmatpush3.bf16.msra.mxu0 %v3169_v24  ;;  %v335_v29 = vsel %vm3383_vm2, %v330_v8, %v334_v57  ;;  %v344_v36 = vrot.slane %v343_v18, 4  ;;  %v3181_v57 = vld [vmem:[%s3922_s1 + $0x178] sm:$0xff]   ;;  %v3580_v8 = vcombine.low %v3395_v52, %v3436_v25  ;;  %v3631_v46 = vcombine.low %v3452_v38, %v3464_v53  ;;  %v3192_v24 = vld [vmem:[%s3922_s1 + $0xa0] sm:$0xff]   ;;  %v3229_v25 = vld [vmem:[%s3922_s1 + $0x230] sm:$0xff]  }
  0x2e   : > { %2952 = vmatprep.subr.bf16.mxu0 %v3171_v32  ;;  %2848 = vmatprep.mubr.bf16.mxu1 %v3492_v17  ;;  %v3227_v52 = vld [vmem:[%s3922_s1 + $0x220] sm:$0xff]   ;;  %v3230_v38 = vld [vmem:[%s3922_s1 + $0x238] sm:$0xff]  }
  0x2f   : > { %v349_v43 = vsel %vm3383_vm2, %v344_v36, %v348_v9  ;;  %v1591_v9 = vrot.slane %v218_v5, 5  ;;  %v1437_v36 = vshll.u32 %v3564_v63, 16 }
  0x30   : > { %2857 = vmatpush3.bf16.msra.mxu1 %v3170_v22  ;;  %v981_v22 = vrot.slane %v979_v4, 4  ;;  %v3529_v50 = vcombine.low %v335_v29, %v349_v43  ;;  %v670_v4 = vrot.slane %v3455_v42, 5  ;;  %v3588_v42 = vsel %vm3496_vm5, %v2503_v34, %v662_v51  ;;  %v3189_v34 = vld [vmem:[%s3922_s1 + $0x190] sm:$0xff]  }
  0x31   : > { %2858 = vmatprep.subr.bf16.mxu1 %v3172_v35  ;;  %2953 = vmatpush3.bf16.msra.mxu0 %v3171_v32  ;;  %v2487_v32 = vcombine.low %v3336_v11, %v3342_v13  ;;  %v2591_v11 = vrot.slane %v3479_v0, 9  ;;  %v3212_v13 = vld [vmem:[%s3922_s1 + $0xe8] sm:$0xff]  }
  0x32   : > { %2954 = vmatprep.subr.bf16.mxu0 %v3173_v54  ;;  %v985_v40 = vor.u32 %v984_v23, %v981_v22  ;;  %2849 = vmatmul.mubr.bf16.gmra.mrb[4].mxu1 %v3529_v50  ;;  %v1434_v22 = vshrl.u32 %v3564_v63, 16  ;;  %v3188_v23 = vld [vmem:[%s3922_s1 + $0x90] sm:$0xff]  }
  0x33   : > { %2868 = vmatprep.mubr.bf16.mxu1 %v2487_v32 }
  0x34   : > { %2859 = vmatpush3.bf16.msra.mxu1 %v3172_v35  ;;  %v2581_v35 = vcombine.low %v321_v6, %v335_v29  ;;  %v986_v44 = vrot.slane %v985_v40, 4  ;;  %v2670_v6 = vrot.slane %v3564_v63, 9  ;;  %v3612_v29 = vsel %vm3496_vm5, %v2505_v62, %v670_v4  ;;  %v3200_v62 = vld [vmem:[%s3922_s1 + $0xb8] sm:$0xff]  }
  0x35   : > { %2860 = vmatprep.subr.bf16.mxu1 %v3174_v55  ;;  %2955 = vmatpush3.bf16.msra.mxu0 %v3173_v54  ;;  %v3180_v54 = vld [vmem:[%s3922_s1 + $0x38] sm:$0xff]   ;;  %v2609_v40 = vcombine.low %v3584_v1, %v3588_v42  ;;  %v1436_v32 = vrot.slane %v1434_v22, 4  ;;  %v3682_v4 = vcombine.low %v3524_v48, %v3584_v1  ;;  %v3206_v48 = vld [vmem:[%s3922_s1 + $0xd0] sm:$0xff]   ;;  %v3210_v22 = vld [vmem:[%s3922_s1 + $0xe0] sm:$0xff]  }
  0x36   : > { %2944 = vmatprep.mubr.bf16.mxu0 %v2581_v35  ;;  %2956 = vmatprep.subr.bf16.mxu0 %v3175_v16  ;;  %v3536_v31 = vsel %vm3383_vm2, %v986_v44, %v990_v41  ;;  %v3599_v18 = vsel %vm3496_vm5, %v2670_v6, %v1591_v9  ;;  %v2506_v41 = vrot.slane %v3464_v53, 9  ;;  %v647_v44 = vsel %vm3496_vm5, %v2499_v56, %v646_v26  ;;  %v3204_v6 = vld [vmem:[%s3922_s1 + $0xc8] sm:$0xff]  }
  0x37   : > { %v2582_v19 = vcombine.low %v349_v43, %v3536_v31  ;;  %v674_v43 = vrot.slane %v3473_v58, 5  ;;  %v2523_v58 = vcombine.low %v647_v44, %v3518_v45  ;;  %v3205_v9 = vld [vmem:[%s3922_s1 + $0x1c8] sm:$0xff]  }
  0x38   : > { %2861 = vmatpush3.bf16.msra.mxu1 %v3174_v55  ;;  %v3179_v55 = vld [vmem:[%s3922_s1 + $0x170] sm:$0xff]  }
  0x39   : > { %2862 = vmatprep.subr.bf16.mxu1 %v3176_v28  ;;  %2957 = vmatpush3.bf16.msra.mxu0 %v3175_v16  ;;  %v3595_v16 = vsel %vm3496_vm5, %v2591_v11, %v1142_v2  ;;  %v3198_v11 = vld [vmem:[%s3922_s1 + $0x1b0] sm:$0xff]   ;;  %v3202_v2 = vld [vmem:[%s3922_s1 + $0xc0] sm:$0xff]  }
  0x3a   : > { %2958 = vmatprep.subr.bf16.mxu0 %v3177_v15  ;;  %2945 = vmatmul.mubr.bf16.gmra.mrb[4].mxu0 %v2582_v19  ;;  %v2687_v35 = vcombine.low %v3595_v16, %v3599_v18 }
  0x3b   : > { %2964 = vmatprep.mubr.bf16.mxu0 %v2608_v20  ;;  %v1443_v20 = vshll.u32 %v218_v5, 16 }
  0x3c   : > { %2863 = vmatpush3.bf16.msra.mxu1 %v3176_v28  ;;  %v3608_v28 = vsel %vm3496_vm5, %v2504_v60, %v666_v61  ;;  %v3197_v60 = vld [vmem:[%s3922_s1 + $0xb0] sm:$0xff]   ;;  %v3195_v61 = vld [vmem:[%s3922_s1 + $0x1a8] sm:$0xff]  }
  0x3d   : > { %2864 = vmatprep.subr.bf16.mxu1 %v3178_v49  ;;  %2959 = vmatpush3.bf16.msra.mxu0 %v3177_v15  ;;  %v3187_v15 = vld [vmem:[%s3922_s1 + $0x188] sm:$0xff]   ;;  %v2610_v19 = vcombine.low %v3608_v28, %v3612_v29  ;;  %v1445_v26 = vrot.slane %v1443_v20, 5  ;;  %v3686_v5 = vcombine.low %v3588_v42, %v3608_v28  ;;  %v3208_v42 = vld [vmem:[%s3922_s1 + $0xd8] sm:$0xff]  }
  0x3e   : > { %2960 = vmatprep.subr.bf16.mxu0 %v3179_v55  ;;  %v3217_v28 = vld [vmem:[%s3922_s1 + $0xf8] sm:$0xff]  }
  0x40   : > { %2865 = vmatpush3.bf16.msra.mxu1 %v3178_v49  ;;  %v1439_v49 = vrot.slane %v1437_v36, 5  ;;  %v3218_v36 = vld [vmem:[%s3922_s1 + $0x1f8] sm:$0xff]  }
  0x41   : > { %2866 = vmatprep.subr.bf16.mxu1 %v3180_v54  ;;  %2961 = vmatpush3.bf16.msra.mxu0 %v3179_v55  ;;  %v675_v55 = vsel %vm3496_vm5, %v2506_v41, %v674_v43  ;;  %v3225_v41 = vld [vmem:[%s3922_s1 + $0x210] sm:$0xff]  }
  0x42   : > { %2962 = vmatprep.subr.bf16.mxu0 %v3181_v57  ;;  %v1440_v51 = vor.u32 %v1439_v49, %v1436_v32  ;;  %v2611_v56 = vcombine.low %v675_v55, %v3595_v16  ;;  %v3703_v1 = vcombine.low %v3612_v29, %v675_v55  ;;  %v3221_v29 = vld [vmem:[%s3922_s1 + $0x200] sm:$0xff]  }
  0x43   : > { %v3794_v55 = vld [vmem:[%s3923_s2] ss:$0 sm:$0xff] }
  0x44   : > { %2867 = vmatpush3.bf16.msra.mxu1 %v3180_v54  ;;  %v3190_v54 = vld [vmem:[%s3922_s1 + $0x98] sm:$0xff]   ;;  %v1441_v12 = vrot.slane %v1440_v51, 4 }
  0x45   : > { %2876 = vmatprep.subr.bf16.mxu1 %v3183_v59  ;;  %2963 = vmatpush3.bf16.msra.mxu0 %v3181_v57 }
  0x46   : > { %2972 = vmatprep.subr.bf16.mxu0 %v3184_v14  ;;  %v1446_v45 = vsel %vm3383_vm2, %v1441_v12, %v1445_v26 }
  0x47   : > { %2869 = vmatmul.mubr.bf16.vlgmr.msra.gmra.mrb[0].mxu1 %v3570_v3  ;;  %v3647_v57 = vcombine.low %v3536_v31, %v1446_v45  ;;  %v3193_v31 = vld [vmem:[%s3922_s1 + $0x1a0] sm:$0xff]  }
  0x48   : > { %2877 = vmatpush3.bf16.msra.mxu1 %v3183_v59  ;;  %2872 = vmatprep.mubr.bf16.mxu1 %v3580_v8  ;;  %v3191_v59 = vld [vmem:[%s3922_s1 + $0x198] sm:$0xff]  }
  0x49   : > { %2878 = vmatprep.subr.bf16.mxu1 %v3186_v27  ;;  %2965 = vmatmul.mubr.bf16.vlgmr.msra.gmra.mrb[0].mxu0 %v2609_v40  ;;  %v3222_v40 = vld [vmem:[%s3922_s1 + $0x208] sm:$0xff]  }
  0x4a   : > { %2973 = vmatpush3.bf16.msra.mxu0 %v3184_v14  ;;  %2968 = vmatprep.mubr.bf16.mxu0 %v2610_v19  ;;  %v3207_v14 = vld [vmem:[%s3922_s1 + $0x1d0] sm:$0xff]  }
  0x4b   : > { %2974 = vmatprep.subr.bf16.mxu0 %v3187_v15 }
  0x4c   : > { %2879 = vmatpush3.bf16.msra.mxu1 %v3186_v27  ;;  %v3203_v27 = vld [vmem:[%s3922_s1 + $0x1c0] sm:$0xff]  }
  0x4d   : > { %2880 = vmatprep.subr.bf16.mxu1 %v3188_v23 }
  0x4e   : > { %2975 = vmatpush3.bf16.msra.mxu0 %v3187_v15 }
  0x4f   : > { %2873 = vmatmul.mubr.bf16.gmra.mrb[4].mxu1 %v3631_v46  ;;  %2976 = vmatprep.subr.bf16.mxu0 %v3189_v34 }
  0x50   : > { %2881 = vmatpush3.bf16.msra.mxu1 %v3188_v23  ;;  %2892 = vmatprep.mubr.bf16.mxu1 %v2523_v58  ;;  %v3209_v23 = vld [vmem:[%s3922_s1 + $0x1d8] sm:$0xff]   ;;  %v1769_v58 = vlaneseq }
  0x51   : > { %2882 = vmatprep.subr.bf16.mxu1 %v3190_v54  ;;  %2969 = vmatmul.mubr.bf16.gmra.mrb[4].mxu0 %v2611_v56 }
  0x52   : > { %2977 = vmatpush3.bf16.msra.mxu0 %v3189_v34  ;;  %2988 = vmatprep.mubr.bf16.mxu0 %v3570_v3  ;;  %v3201_v3 = vld [vmem:[%s3922_s1 + $0x1b8] sm:$0xff]  }
  0x53   : > { %2978 = vmatprep.subr.bf16.mxu0 %v3191_v59 }
  0x54   : > { %2883 = vmatpush3.bf16.msra.mxu1 %v3190_v54  ;;  %v1770_v54 = vshrl.u32 %v1769_v58, 7 }
  0x55   : > { %2884 = vmatprep.subr.bf16.mxu1 %v3192_v24 }
  0x56   : > { %2979 = vmatpush3.bf16.msra.mxu0 %v3191_v59 }
  0x57   : > { %2980 = vmatprep.subr.bf16.mxu0 %v3193_v31 }
  0x58   : > { %2885 = vmatpush3.bf16.msra.mxu1 %v3192_v24 }
  0x59   : > { %2886 = vmatprep.subr.bf16.mxu1 %v3194_v39 }
  0x5a   : > { %2981 = vmatpush3.bf16.msra.mxu0 %v3193_v31 }
  0x5b   : > { %2982 = vmatprep.subr.bf16.mxu0 %v3195_v61 }
  0x5c   : > { %2887 = vmatpush3.bf16.msra.mxu1 %v3194_v39 }
  0x5d   : > { %2888 = vmatprep.subr.bf16.mxu1 %v3197_v60 }
  0x5e   : > { %2983 = vmatpush3.bf16.msra.mxu0 %v3195_v61 }
  0x5f   : > { %2984 = vmatprep.subr.bf16.mxu0 %v3198_v11 }
  0x60   : > { %2889 = vmatpush3.bf16.msra.mxu1 %v3197_v60 }
  0x61   : > { %2890 = vmatprep.subr.bf16.mxu1 %v3200_v62 }
  0x62   : > { %2985 = vmatpush3.bf16.msra.mxu0 %v3198_v11 }
  0x63   : > { %2986 = vmatprep.subr.bf16.mxu0 %v3201_v3 }
  0x64   : > { %2891 = vmatpush3.bf16.msra.mxu1 %v3200_v62 }
  0x65   : > { %2900 = vmatprep.subr.bf16.mxu1 %v3202_v2 }
  0x66   : > { %2987 = vmatpush3.bf16.msra.mxu0 %v3201_v3 }
  0x67   : > { %2893 = vmatmul.mubr.bf16.vlgmr.msra.gmra.mrb[0].mxu1 %v3682_v4  ;;  %2996 = vmatprep.subr.bf16.mxu0 %v3203_v27 }
  0x68   : > { %2901 = vmatpush3.bf16.msra.mxu1 %v3202_v2  ;;  %2896 = vmatprep.mubr.bf16.mxu1 %v3686_v5 }
  0x69   : > { %2902 = vmatprep.subr.bf16.mxu1 %v3204_v6  ;;  %2989 = vmatmul.mubr.bf16.vlgmr.msra.gmra.mrb[0].mxu0 %v3580_v8  ;;  %v2636_v8 = vcombine.low %v3479_v0, %v3564_v63  ;;  %v3213_v63 = vld [vmem:[%s3922_s1 + $0x1e8] sm:$0xff]  }
  0x6a   : > { %2997 = vmatpush3.bf16.msra.mxu0 %v3203_v27  ;;  %2992 = vmatprep.mubr.bf16.mxu0 %v3631_v46 }
  0x6b   : > { %2998 = vmatprep.subr.bf16.mxu0 %v3205_v9 }
  0x6c   : > { %2903 = vmatpush3.bf16.msra.mxu1 %v3204_v6 }
  0x6d   : > { %2904 = vmatprep.subr.bf16.mxu1 %v3206_v48 }
  0x6e   : > { %2999 = vmatpush3.bf16.msra.mxu0 %v3205_v9 }
  0x6f   : > { %2897 = vmatmul.mubr.bf16.gmra.mrb[4].mxu1 %v3703_v1  ;;  %3000 = vmatprep.subr.bf16.mxu0 %v3207_v14 }
  0x70   : > { %2905 = vmatpush3.bf16.msra.mxu1 %v3206_v48  ;;  %2916 = vmatprep.mubr.bf16.mxu1 %v2551_v37  ;;  %v3214_v37 = vld [vmem:[%s3922_s1 + $0xf0] sm:$0xff]  }
  0x71   : > { %2906 = vmatprep.subr.bf16.mxu1 %v3208_v42  ;;  %2993 = vmatmul.mubr.bf16.gmra.mrb[4].mxu0 %v2636_v8 }
  0x72   : > { %3001 = vmatpush3.bf16.msra.mxu0 %v3207_v14  ;;  %3012 = vmatprep.mubr.bf16.mxu0 %v3419_v10  ;;  %v3216_v10 = vld [vmem:[%s3922_s1 + $0x1f0] sm:$0xff]  }
  0x73   : > { %3002 = vmatprep.subr.bf16.mxu0 %v3209_v23 }
  0x74   : > { %2907 = vmatpush3.bf16.msra.mxu1 %v3208_v42 }
  0x75   : > { %2908 = vmatprep.subr.bf16.mxu1 %v3210_v22 }
  0x76   : > { %3003 = vmatpush3.bf16.msra.mxu0 %v3209_v23 }
  0x77   : > { %3004 = vmatprep.subr.bf16.mxu0 %v3211_v30 }
  0x78   : > { %2909 = vmatpush3.bf16.msra.mxu1 %v3210_v22 }
  0x79   : > { %2910 = vmatprep.subr.bf16.mxu1 %v3212_v13 }
  0x7a   : > { %3005 = vmatpush3.bf16.msra.mxu0 %v3211_v30 }
  0x7b   : > { %3006 = vmatprep.subr.bf16.mxu0 %v3213_v63 }
  0x7c   : > { %2911 = vmatpush3.bf16.msra.mxu1 %v3212_v13 }
  0x7d   : > { %2912 = vmatprep.subr.bf16.mxu1 %v3214_v37 }
  0x7e   : > { %3007 = vmatpush3.bf16.msra.mxu0 %v3213_v63 }
  0x7f   : > { %3008 = vmatprep.subr.bf16.mxu0 %v3216_v10 }
  0x80   : > { %2913 = vmatpush3.bf16.msra.mxu1 %v3214_v37 }
  0x81   : > { %2914 = vmatprep.subr.bf16.mxu1 %v3217_v28 }
  0x82   : > { %3009 = vmatpush3.bf16.msra.mxu0 %v3216_v10 }
  0x83   : > { %3010 = vmatprep.subr.bf16.mxu0 %v3218_v36 }
  0x84   : > { %2915 = vmatpush3.bf16.msra.mxu1 %v3217_v28 }
  0x85   : > { %3044 = vmatprep.subr.bf16.mxu1 %v3221_v29 }
  0x86   : > { %3011 = vmatpush3.bf16.msra.mxu0 %v3218_v36 }
  0x87   : > { %2917 = vmatmul.mubr.bf16.vlgmr.msra.gmra.mrb[0].mxu1 %v2552_v7  ;;  %3020 = vmatprep.subr.bf16.mxu0 %v3221_v29  ;;  %v3228_v7 = vld [vmem:[%s3922_s1 + $0x228] sm:$0xff]  }
  0x88   : > { %3052 = vmatpush3.bf16.msra.mxu1 %v3221_v29  ;;  %2920 = vmatprep.mubr.bf16.mxu1 %v2553_v47 }
  0x89   : > { %3045 = vmatprep.subr.bf16.mxu1 %v3222_v40  ;;  %3013 = vmatmul.mubr.bf16.vlgmr.msra.gmra.mrb[0].mxu0 %v3492_v17 }
  0x8a   : > { %3021 = vmatpush3.bf16.msra.mxu0 %v3221_v29  ;;  %3016 = vmatprep.mubr.bf16.mxu0 %v3529_v50 }
  0x8b   : > { %3022 = vmatprep.subr.bf16.mxu0 %v3222_v40 }
  0x8c   : > { %3053 = vmatpush3.bf16.msra.mxu1 %v3222_v40 }
  0x8d   : > { %3046 = vmatprep.subr.bf16.mxu1 %v3225_v41 }
  0x8e   : > { %3023 = vmatpush3.bf16.msra.mxu0 %v3222_v40 }
  0x8f   : > { %2921 = vmatmul.mubr.bf16.gmra.mrb[4].mxu1 %v2554_v21  ;;  %3024 = vmatprep.subr.bf16.mxu0 %v3225_v41 }
  0x90   : > { %3054 = vmatpush3.bf16.msra.mxu1 %v3225_v41  ;;  %3040 = vmatprep.mubr.bf16.mxu1 %v3703_v1 }
  0x91   : > { %3047 = vmatprep.subr.bf16.mxu1 %v3226_v33  ;;  %3017 = vmatmul.mubr.bf16.gmra.mrb[4].mxu0 %v3647_v57 }
  0x92   : > { %3025 = vmatpush3.bf16.msra.mxu0 %v3225_v41  ;;  %3036 = vmatprep.mubr.bf16.mxu0 %v3682_v4 }
  0x93   : > { %3026 = vmatprep.subr.bf16.mxu0 %v3226_v33 }
  0x94   : > { %3055 = vmatpush3.bf16.msra.mxu1 %v3226_v33 }
  0x95   : > { %3048 = vmatprep.subr.bf16.mxu1 %v3227_v52 }
  0x96   : > { %3027 = vmatpush3.bf16.msra.mxu0 %v3226_v33 }
  0x97   : > { %3028 = vmatprep.subr.bf16.mxu0 %v3227_v52 }
  0x98   : > { %3056 = vmatpush3.bf16.msra.mxu1 %v3227_v52 }
  0x99   : > { %3049 = vmatprep.subr.bf16.mxu1 %v3228_v7 }
  0x9a   : > { %3029 = vmatpush3.bf16.msra.mxu0 %v3227_v52 }
  0x9b   : > { %3030 = vmatprep.subr.bf16.mxu0 %v3228_v7 }
  0x9c   : > { %3057 = vmatpush3.bf16.msra.mxu1 %v3228_v7 }
  0x9d   : > { %3050 = vmatprep.subr.bf16.mxu1 %v3229_v25 }
  0x9e   : > { %3031 = vmatpush3.bf16.msra.mxu0 %v3228_v7 }
  0x9f   : > { %3032 = vmatprep.subr.bf16.mxu0 %v3229_v25 }
  0xa0   : > { %3058 = vmatpush3.bf16.msra.mxu1 %v3229_v25 }
  0xa1   : > { %3051 = vmatprep.subr.bf16.mxu1 %v3230_v38 }
  0xa2   : > { %3033 = vmatpush3.bf16.msra.mxu0 %v3229_v25 }
  0xa3   : > { %3034 = vmatprep.subr.bf16.mxu0 %v3230_v38 }
  0xa4   : > { %3059 = vmatpush3.bf16.msra.mxu1 %v3230_v38 }
  0xa6   : > { %3035 = vmatpush3.bf16.msra.mxu0 %v3230_v38 }
  0xa7   : > { %3041 = vmatmul.mubr.bf16.vlgmr.msra.gmra.mrb[8].mxu1 %v2687_v35  ;;  %v3255_v35 = vmov 1983009808  }
  0xa8   : > { %v1767_v51 = vunpack.c.l.s4 %v3255_v35 }
  0xa9   : > { %3037 = vmatmul.mubr.bf16.vlgmr.msra.gmra.mrb[0].mxu0 %v3686_v5 }
  0xaa   : > { %v1768_v26 = vunpack.c.0.s8 %v1767_v51 }
  0xac   : > { %v3796_v24 = vsub.s32 %v1768_v26, %v1770_v54 }
 0x15a   : > { %v2918_v47 = vpop.f32.mrb[0].mxu1 }
 0x15b   : > { %v939_v53 = vpop.f32.mrb[1].mxu1 }
 0x15c   : > { %v2919_v0 = vpop.f32.mrb[2].mxu1 }
 0x15d   : > { %v3789_v17 = vpop.f32.mrb[3].mxu1 }
 0x162   : > { %v2922_v21 = vpop.f32.mrb[4].mxu1 }
 0x163   : > { %v955_v50 = vpop.f32.mrb[5].mxu1 }
 0x164   : > { %v2923_v32 = vpop.f32.mrb[6].mxu1  ;;  %v3018_v44 = vpop.f32.mrb[4].mxu0 }
 0x165   : > { %v958_v43 = vpop.f32.mrb[7].mxu1  ;;  %v3064_v49 = vadd.f32 %v3018_v44, %v2922_v21  ;;  %v1565_v15 = vpop.f32.mrb[5].mxu0 }
 0x166   : > { %v3066_v19 = vadd.f32 %v1565_v15, %v955_v50  ;;  %v3019_v20 = vpop.f32.mrb[6].mxu0 }
 0x167   : > { %v3068_v46 = vadd.f32 %v3019_v20, %v2923_v32  ;;  %v1568_v16 = vpop.f32.mrb[7].mxu0 }
 0x168   : > { %v3070_v18 = vadd.f32 %v1568_v16, %v958_v43 }
 0x17a   : > { %v3042_v12 = vpop.f32.mrb[8].mxu1 }
 0x17b   : > { %v3065_v34 = vadd.f32 %v3064_v49, %v3042_v12  ;;  %v1711_v45 = vpop.f32.mrb[9].mxu1 }
 0x17c   : > { %v3067_v56 = vadd.f32 %v3066_v19, %v1711_v45  ;;  %v3043_v57 = vpop.f32.mrb[10].mxu1  ;;  %v3038_v62 = vpop.f32.mrb[0].mxu0 }
 0x17d   : > { %v1747_v59 = vadd.f32 %v3065_v34, %v3794_v55  ;;  %v3069_v39 = vadd.f32 %v3068_v46, %v3043_v57  ;;  %v1714_v31 = vpop.f32.mrb[11].mxu1  ;;  %v3060_v3 = vadd.f32 %v3038_v62, %v2918_v47  ;;  %v1695_v4 = vpop.f32.mrb[1].mxu0 }
 0x17e   : > { %v1745_v60 = vadd.f32 %v3067_v56, %v3794_v55  ;;  %v3071_v61 = vadd.f32 %v3070_v18, %v1714_v31  ;;  %v3061_v48 = vadd.f32 %v1695_v4, %v939_v53  ;;  %v3039_v9 = vpop.f32.mrb[2].mxu0 }
 0x17f   : > { %v1755_v11 = vmax.f32 %v1747_v59, 0.0  ;;  %v1748_v2 = vadd.f32 %v3069_v39, %v3794_v55  ;;  %v1743_v42 = vadd.f32 %v3060_v3, %v3794_v55  ;;  %v3062_v22 = vadd.f32 %v3039_v9, %v2919_v0  ;;  %v3806_v23 = vpop.f32.mrb[3].mxu0 }
 0x180   : > { %v1753_v5 = vmax.f32 %v1745_v60, 0.0  ;;  %v1741_v30 = vadd.f32 %v3061_v48, %v3794_v55  ;;  %v3811_v63 = vadd.f32 %v3071_v61, %v3794_v55 }
 0x181   : > { %v1867_v6 = vcombine.high %v1755_v11, %v1755_v11  ;;  %v1874_v27 = vrot.slane %v1755_v11, %v3796_v24  ;;  %v1756_v1 = vmax.f32 %v1748_v2, 0.0  ;;  %v1751_v28 = vmax.f32 %v1743_v42, 0.0 }
 0x182   : > { %v1833_v14 = vcombine.high %v1753_v5, %v1753_v5  ;;  %v3804_v8 = vrot.slane %v1753_v5, %v3796_v24  ;;  %v1744_v36 = vadd.f32 %v3062_v22, %v3794_v55  ;;  %v1749_v40 = vmax.f32 %v1741_v30, 0.0 }
 0x183   : > { %v1881_v13 = vrot.slane %v1867_v6, %v3796_v24  ;;  %v1884_v37 = vcombine.high %v1756_v1, %v1756_v1  ;;  %v1882_v10 = vcombine.high %v1874_v27, %v1874_v27  ;;  %v1891_v33 = vrot.slane %v1756_v1, %v3796_v24 }
 0x184   : > { %v3814_v29 = vrot.slane %v1833_v14, %v3796_v24  ;;  %v1848_v41 = vcombine.high %v3804_v8, %v3804_v8  ;;  %v1799_v7 = vcombine.high %v1751_v28, %v1751_v28  ;;  %v1806_v25 = vrot.slane %v1751_v28, %v3796_v24 }
 0x185   : > { %v1898_v52 = vrot.slane %v1884_v37, %v3796_v24  ;;  %v1883_v38 = vcombine.high %v1881_v13, %v1881_v13  ;;  %v1752_v47 = vmax.f32 %v1744_v36, 0.0  ;;  %v1765_v53 = vcombine.high %v1749_v40, %v1749_v40 }
 0x186   : > { %v3823_v0 = vrot.slane %v1749_v40, %v3796_v24  ;;  %v1899_v21 = vcombine.high %v1891_v33, %v1891_v33  ;;  %v1813_v32 = vrot.slane %v1799_v7, %v3796_v24  ;;  %v1849_v43 = vcombine.high %v3814_v29, %v3814_v29 }
 0x187   : > { %v1900_v50 = vcombine.high %v1898_v52, %v1898_v52  ;;  %v1816_v44 = vcombine.high %v1752_v47, %v1752_v47  ;;  %v1823_v49 = vrot.slane %v1752_v47, %v3796_v24  ;;  %v1814_v15 = vcombine.high %v1806_v25, %v1806_v25 }
 0x188   : > { %v3830_v19 = vrot.slane %v1765_v53, %v3796_v24  ;;  %v1945_v20 = vmax.f32 %v1874_v27, %v1891_v33  ;;  %v1946_v46 = vmax.f32 %v1882_v10, %v1899_v21  ;;  %v1780_v16 = vcombine.high %v3823_v0, %v3823_v0 }
 0x189   : > { %v1830_v18 = vrot.slane %v1816_v44, %v3796_v24  ;;  %v1831_v35 = vcombine.high %v1823_v49, %v1823_v49  ;;  %v1937_v51 = vmax.f32 %v1806_v25, %v1823_v49  ;;  %v1815_v58 = vcombine.high %v1813_v32, %v1813_v32 }
 0x18a   : > { %v1947_v26 = vmax.f32 %v1881_v13, %v1898_v52  ;;  %v1948_v54 = vmax.f32 %v1883_v38, %v1900_v50  ;;  %v2709_v12 = vrot.slane %v1945_v20, 9  ;;  %v2710_v59 = vrot.slane %v1946_v46, 9 }
 0x18b   : > { %v1832_v34 = vcombine.high %v1830_v18, %v1830_v18  ;;  %v1938_v45 = vmax.f32 %v1814_v15, %v1831_v35  ;;  %v1939_v56 = vmax.f32 %v1813_v32, %v1830_v18  ;;  %v2701_v57 = vrot.slane %v1937_v51, 9 }
 0x18c   : > { %v2711_v39 = vrot.slane %v1947_v26, 9  ;;  %v2712_v31 = vrot.slane %v1948_v54, 9  ;;  %v2025_v60 = vmax.f32 %v1945_v20, %v2709_v12  ;;  %v2026_v3 = vmax.f32 %v1946_v46, %v2710_v59 }
 0x18d   : > { %v1940_v61 = vmax.f32 %v1815_v58, %v1832_v34  ;;  %v2702_v62 = vrot.slane %v1938_v45, 9  ;;  %v2703_v11 = vrot.slane %v1939_v56, 9  ;;  %v2017_v2 = vmax.f32 %v1937_v51, %v2701_v57 }
 0x18e   : > { %v2027_v4 = vmax.f32 %v1947_v26, %v2711_v39  ;;  %v2028_v5 = vmax.f32 %v1948_v54, %v2712_v31  ;;  %v2041_v6 = vpack.c.bf16 %v2025_v60, %v2025_v60  ;;  %v2042_v42 = vpack.c.bf16 %v2026_v3, %v2026_v3 }
 0x18f   : > { %v2704_v27 = vrot.slane %v1940_v61, 9  ;;  %v2018_v48 = vmax.f32 %v1938_v45, %v2702_v62  ;;  %v2019_v9 = vmax.f32 %v1939_v56, %v2703_v11  ;;  %v2033_v1 = vpack.c.bf16 %v2017_v2, %v2017_v2 }
 0x190   : > { %v2043_v14 = vpack.c.bf16 %v2027_v4, %v2027_v4  ;;  %v2044_v22 = vpack.c.bf16 %v2028_v5, %v2028_v5  ;;  %v2151_v13 = vrot.slane %v2041_v6, %v3796_v24  ;;  %v2158_v36 = vrot.slane %v2042_v42, %v3796_v24 }
 0x191   : > { %v2020_v30 = vmax.f32 %v1940_v61, %v2704_v27  ;;  %v2034_v37 = vpack.c.bf16 %v2018_v48, %v2018_v48  ;;  %v2035_v28 = vpack.c.bf16 %v2019_v9, %v2019_v9  ;;  %v2095_v10 = vrot.slane %v2033_v1, %v3796_v24 }
 0x192   : > { %v2165_v40 = vrot.slane %v2043_v14, %v3796_v24  ;;  %v2172_v33 = vrot.slane %v2044_v22, %v3796_v24  ;;  %v2263_v52 = vrot.slane %v2151_v13, %v3796_v24  ;;  %v2270_v53 = vrot.slane %v2158_v36, %v3796_v24 }
 0x193   : > { %v2036_v7 = vpack.c.bf16 %v2020_v30, %v2020_v30  ;;  %v2102_v25 = vrot.slane %v2034_v37, %v3796_v24  ;;  %v2109_v38 = vrot.slane %v2035_v28, %v3796_v24  ;;  %v2207_v47 = vrot.slane %v2095_v10, %v3796_v24 }
 0x194   : > { %v2277_v21 = vrot.slane %v2165_v40, %v3796_v24  ;;  %v2284_v50 = vrot.slane %v2172_v33, %v3796_v24  ;;  %v2297_v32 = vunpack.c.l.b16 %v2263_v52  ;;  %v2298_v46 = vunpack.c.l.b16 %v2270_v53 }
 0x195   : > { %v2116_v44 = vrot.slane %v2036_v7, %v3796_v24  ;;  %v2214_v49 = vrot.slane %v2102_v25, %v3796_v24  ;;  %v2221_v15 = vrot.slane %v2109_v38, %v3796_v24  ;;  %v2289_v20 = vunpack.c.l.b16 %v2207_v47 }
 0x196   : > { %v2299_v18 = vunpack.c.l.b16 %v2277_v21  ;;  %v2300_v35 = vunpack.c.l.b16 %v2284_v50  ;;  %v3063_v51 = vadd.f32 %v3806_v23, %v3789_v17  ;;  %v1754_v12 = vmax.f32 %v3811_v63, 0.0 }
 0x197   : > { %v2228_v58 = vrot.slane %v2116_v44, %v3796_v24  ;;  %v2290_v26 = vunpack.c.l.b16 %v2214_v49  ;;  %v2291_v54 = vunpack.c.l.b16 %v2221_v15  ;;  %v2322_v34 = vrot.slane %v2298_v46, 7 }
 0x198   : > { %v2324_v45 = vrot.slane %v2299_v18, 6  ;;  %v2326_v56 = vrot.slane %v2300_v35, 5  ;;  %v1742_v57 = vadd.f32 %v3063_v51, %v3794_v55  ;;  %v1850_v60 = vcombine.high %v1754_v12, %v1754_v12 }
 0x199   : > { %v2292_v59 = vunpack.c.l.b16 %v2228_v58  ;;  %v2310_v39 = vrot.slane %v2290_v26, 7  ;;  %v2312_v31 = vrot.slane %v2291_v54, 6  ;;  %v1781_v61 = vcombine.high %v3830_v19, %v3830_v19 }
 0x19a   : > { %v2323_v17 = vsel %vm2302_vm6, %v2322_v34, %v2297_v32  ;;  %v1750_v23 = vmax.f32 %v1742_v57, 0.0  ;;  %v1857_v62 = vrot.slane %v1754_v12, %v3796_v24  ;;  %v1864_v55 = vrot.slane %v1850_v60, %v3796_v24 }
 0x19b   : > { %v2311_v63 = vsel %vm2302_vm6, %v2310_v39, %v2289_v20  ;;  %v2314_v11 = vrot.slane %v2292_v59, 5  ;;  %v2325_v2 = vsel %vm2305_vm7, %v2324_v45, %v2323_v17 }
 0x19c   : > { %v2313_v3 = vsel %vm2305_vm7, %v2312_v31, %v2311_v63  ;;  %v2327_v4 = vsel %vm2308_vm8, %v2326_v56, %v2325_v2  ;;  %v1782_v5 = vcombine.high %v1750_v23, %v1750_v23  ;;  %v1789_v6 = vrot.slane %v1750_v23, %v3796_v24 }
 0x19d   : > { %v2315_v27 = vsel %vm2308_vm8, %v2314_v11, %v2313_v3  ;;  %v2331_v48 = vpack.c.b16 %v2327_v4, %v2327_v4  ;;  %v1865_v9 = vcombine.high %v1857_v62, %v1857_v62  ;;  %v1866_v1 = vcombine.high %v1864_v55, %v1864_v55 }
 0x19e   : > { %v2329_v42 = vpack.c.b16 %v2315_v27, %v2315_v27  ;;  %v1796_v14 = vrot.slane %v1782_v5, %v3796_v24  ;;  %v1797_v22 = vcombine.high %v1789_v6, %v1789_v6  ;;  %v1933_v13 = vmax.f32 %v3823_v0, %v1789_v6 }
 0x19f   : > { %2716 = vst.sshfl [vmem:[%s3866_s4 + $0x6] sm:$0x3 pattern:$0x76325410] %v2331_v48  ;;  %v1941_v30 = vmax.f32 %v3804_v8, %v1857_v62  ;;  %v1942_v37 = vmax.f32 %v1848_v41, %v1865_v9  ;;  %v1943_v28 = vmax.f32 %v3814_v29, %v1864_v55  ;;  %v1944_v10 = vmax.f32 %v1849_v43, %v1866_v1 }
 0x1a0   : > { %2714 = vst.sshfl [vmem:[%s3866_s4 + $0x2] sm:$0x3 pattern:$0x76325410] %v2329_v42  ;;  %v1798_v36 = vcombine.high %v1796_v14, %v1796_v14  ;;  %v1934_v40 = vmax.f32 %v1780_v16, %v1797_v22  ;;  %v1935_v33 = vmax.f32 %v3830_v19, %v1796_v14  ;;  %v2697_v52 = vrot.slane %v1933_v13, 9 }
 0x1a1   : > { %v2705_v7 = vrot.slane %v1941_v30, 9  ;;  %v2706_v25 = vrot.slane %v1942_v37, 9  ;;  %v2707_v38 = vrot.slane %v1943_v28, 9  ;;  %v2708_v8 = vrot.slane %v1944_v10, 9 }
 0x1a2   : > { %v1936_v41 = vmax.f32 %v1781_v61, %v1798_v36  ;;  %v2698_v47 = vrot.slane %v1934_v40, 9  ;;  %v2699_v53 = vrot.slane %v1935_v33, 9  ;;  %v2013_v21 = vmax.f32 %v1933_v13, %v2697_v52 }
 0x1a3   : > { %v2021_v50 = vmax.f32 %v1941_v30, %v2705_v7  ;;  %v2022_v29 = vmax.f32 %v1942_v37, %v2706_v25  ;;  %v2023_v43 = vmax.f32 %v1943_v28, %v2707_v38  ;;  %v2024_v32 = vmax.f32 %v1944_v10, %v2708_v8 }
 0x1a4   : > { %v2700_v44 = vrot.slane %v1936_v41, 9  ;;  %v2014_v49 = vmax.f32 %v1934_v40, %v2698_v47  ;;  %v2015_v15 = vmax.f32 %v1935_v33, %v2699_v53  ;;  %v2029_v0 = vpack.c.bf16 %v2013_v21, %v2013_v21 }
 0x1a5   : > { %v2037_v16 = vpack.c.bf16 %v2021_v50, %v2021_v50  ;;  %v2038_v20 = vpack.c.bf16 %v2022_v29, %v2022_v29  ;;  %v2039_v19 = vpack.c.bf16 %v2023_v43, %v2023_v43  ;;  %v2040_v46 = vpack.c.bf16 %v2024_v32, %v2024_v32 }
 0x1a6   : > { %v2016_v18 = vmax.f32 %v1936_v41, %v2700_v44  ;;  %v2030_v35 = vpack.c.bf16 %v2014_v49, %v2014_v49  ;;  %v2031_v51 = vpack.c.bf16 %v2015_v15, %v2015_v15  ;;  %v2067_v58 = vrot.slane %v2029_v0, %v3796_v24 }
 0x1a7   : > { %v2123_v26 = vrot.slane %v2037_v16, %v3796_v24  ;;  %v2130_v54 = vrot.slane %v2038_v20, %v3796_v24  ;;  %v2137_v12 = vrot.slane %v2039_v19, %v3796_v24  ;;  %v2144_v34 = vrot.slane %v2040_v46, %v3796_v24 }
 0x1a8   : > { %v2032_v45 = vpack.c.bf16 %v2016_v18, %v2016_v18  ;;  %v2074_v56 = vrot.slane %v2030_v35, %v3796_v24  ;;  %v2081_v57 = vrot.slane %v2031_v51, %v3796_v24  ;;  %v2179_v17 = vrot.slane %v2067_v58, %v3796_v24 }
 0x1a9   : > { %v2235_v59 = vrot.slane %v2123_v26, %v3796_v24  ;;  %v2242_v39 = vrot.slane %v2130_v54, %v3796_v24  ;;  %v2249_v31 = vrot.slane %v2137_v12, %v3796_v24  ;;  %v2256_v60 = vrot.slane %v2144_v34, %v3796_v24 }
 0x1aa   : > { %v2088_v61 = vrot.slane %v2032_v45, %v3796_v24  ;;  %v2186_v23 = vrot.slane %v2074_v56, %v3796_v24  ;;  %v2193_v62 = vrot.slane %v2081_v57, %v3796_v24  ;;  %v2285_v9 = vunpack.c.l.b16 %v2179_v17 }
 0x1ab   : > { %v2294_v63 = vunpack.c.l.b16 %v2242_v39  ;;  %v2295_v11 = vunpack.c.l.b16 %v2249_v31  ;;  %v2296_v2 = vunpack.c.l.b16 %v2256_v60  ;;  %v2293_v5 = vunpack.c.l.b16 %v2235_v59 }
 0x1ac   : > { %v2200_v55 = vrot.slane %v2088_v61, %v3796_v24  ;;  %v2286_v3 = vunpack.c.l.b16 %v2186_v23  ;;  %v2287_v4 = vunpack.c.l.b16 %v2193_v62 }
 0x1ad   : > { %v2316_v6 = vrot.slane %v2294_v63, 7  ;;  %v2318_v27 = vrot.slane %v2295_v11, 6  ;;  %v2320_v48 = vrot.slane %v2296_v2, 5 }
 0x1ae   : > { %v2288_v1 = vunpack.c.l.b16 %v2200_v55  ;;  %v2301_v42 = vrot.slane %v2286_v3, 7  ;;  %v2304_v14 = vrot.slane %v2287_v4, 6 }
 0x1af   : > { %v2317_v22 = vsel %vm2302_vm6, %v2316_v6, %v2293_v5 }
 0x1b0   : > { %v2303_v13 = vsel %vm2302_vm6, %v2301_v42, %v2285_v9  ;;  %v2307_v30 = vrot.slane %v2288_v1, 5  ;;  %v2319_v37 = vsel %vm2305_vm7, %v2318_v27, %v2317_v22 }
 0x1b1   : > { %v2306_v24 = vsel %vm2305_vm7, %v2304_v14, %v2303_v13  ;;  %v2321_v28 = vsel %vm2308_vm8, %v2320_v48, %v2319_v37 }
 0x1b2   : > { %v2309_v10 = vsel %vm2308_vm8, %v2307_v30, %v2306_v24  ;;  %v2330_v36 = vpack.c.b16 %v2321_v28, %v2321_v28 }
 0x1b3   : > { %v2328_v40 = vpack.c.b16 %v2309_v10, %v2309_v10 }
 0x1b4   : > { %2715 = vst.sshfl [vmem:[%s3866_s4 + $0x4] sm:$0x3 pattern:$0x76325410] %v2330_v36 }
 0x1b5   : > { %2713 = vst.sshfl [vmem:[%s3866_s4] sm:$0x3 pattern:$0x76325410] %v2328_v40 }
 0x1b6 PF: > { %s13_s14 = sadd.s32 1, %s3253_s14   ;;  %s3929_s12 = smov %s3249_s13 }
 0x1b7   : > { %p10_p5 = scmp.ge.s32.totalorder %s13_s14, 4   ;;  %s3930_s13 = smov %s3932_s15 }
 0x1b9   :  { %12 = sbr.rel (!%p10_p5) target bundleno = 2 (0x2), region = 71 }

// kernel: vgg_forward.7
= control target key start
LH: loop header
LB: loop body
LE: loop exit
PB: predicated region body
PF: predicated region fallthrough
CT: control target
= control target key end

     0   :  { %s4281_s12 = smov 0   ;;  %s4283_s13 = smov 0   ;;  %s5136_s0 = inlined_call_operand.vmem [shape: bf16[2,18,18,128], index: 0, kind: input, shape index: {}]   ;;  %s5137_s1 = inlined_call_operand.vmem [shape: bf16[3,3,128,128], index: 1, kind: input, shape index: {}]   ;;  %s5138_s2 = inlined_call_operand.vmem [shape: f32[1,128], index: 2, kind: input, shape index: {}]   ;;  %s5139_s3 = inlined_call_operand.vmem [shape: bf16[2,8,8,128], index: 3, kind: output, shape index: {}]  }
   0x1   :  { %s4285_s14 = smov 0   ;;  %s4287_s15 = smov 0  }
   0x2   :  { %s4289_s16 = smov 0  }
   0x3 LB: > { %s22_s17 = sadd.s32 1, %s4250_s14  ;;  %s25_s18 = sadd.s32 1, %s4254_s15  ;;  %s4258_s16 = sphi %s4289_s16, %s13_s16   ;;  %s4254_s15 = sphi %s4287_s15, %s5148_s15   ;;  %s4250_s14 = sphi %s4285_s14, %s5147_s14   ;;  %s4246_s13 = sphi %s4283_s13, %s5146_s13   ;;  %s4242_s12 = sphi %s4281_s12, %s5145_s12  }
   0x4   : > { %p23_p0 = scmp.ge.s32.totalorder %s22_s17, 2  ;;  %p3172_p1 = scmp.ge.s32.totalorder %s4258_s16, 1 }
   0x5   : > { %p151_p2 = scmp.lt.s32.totalorder %s4258_s16, 5 }
   0x6   : > { %s5150_s17 = smov (%p23_p0, %s22_s17), 0  ;;  %s5152_s18 = smov (!%p23_p0, %s25_s18), %s4254_s15 }
   0x7   : > { %p152_p3 = pnand %p3172_p1, %p151_p2  ;;  %p27_p4 = scmp.ge.s32.totalorder %s5152_s18, 2 }
   0x8   : > { %v4138_v0 = vld [vmem:[%s5137_s1 + $0x40] sm:$0xff] (!%p152_p3)   ;;  %p179_p5 = scmp.lt.s32.totalorder (!%p152_p3), %s4246_s13, 1  ;;  %v4140_v2 = vld [vmem:[%s5137_s1 + $0x48] sm:$0xff] (!%p152_p3)   ;;  %v4142_v4 = vld [vmem:[%s5137_s1 + $0x50] sm:$0xff] (!%p152_p3)   ;;  %s3487_s9 = smul.u32 (!%p152_p3), 96, %s4242_s12  ;;  %vm835_vm3 = vcmask (!%p152_p3), 1042432  }
   0x9   : > { %s5154_s18 = smov (%p27_p4, %s5152_s18), 0  ;;  %155 = sbr.rel (%p152_p3) target bundleno = 478 (0x1de), region = 32 }
   0xa   : > { %v4139_v1 = vld [vmem:[%s5137_s1 + $0x100] sm:$0xff] (!%p152_p3)   ;;  %3664 = vmatprep.subr.bf16.mxu1 (!%p152_p3), %v4138_v0  ;;  %v4141_v3 = vld [vmem:[%s5137_s1 + $0x108] sm:$0xff] (!%p152_p3)   ;;  %v4143_v5 = vld [vmem:[%s5137_s1 + $0x110] sm:$0xff] (!%p152_p3)   ;;  %vm245_vm0 = vsmask.f32 (!%p152_p3), 3328  ;;  %vm836_vm4 = vcmask (!%p152_p3), 1046532  }
   0xb   : > { %3792 = vmatprep.subr.bf16.mxu0 (!%p152_p3), %v4139_v1  ;;  %3665 = vmatpush3.bf16.msra.mxu1 (!%p152_p3), %v4138_v0  ;;  %v4144_v6 = vld [vmem:[%s5137_s1 + $0x58] sm:$0xff] (!%p152_p3)   ;;  %v4146_v8 = vld [vmem:[%s5137_s1 + $0x60] sm:$0xff] (!%p152_p3)   ;;  %v4148_v10 = vld [vmem:[%s5137_s1 + $0x68] sm:$0xff] (!%p152_p3)   ;;  %vm246_vm1 = vsmask.f32 (!%p152_p3), 7440  ;;  %vm3008_vm6 = vcmask (!%p152_p3), 1041409  }
   0xc   : > { %3793 = vmatpush3.bf16.msra.mxu0 (!%p152_p3), %v4139_v1  ;;  %3666 = vmatprep.subr.bf16.mxu1 (!%p152_p3), %v4140_v2  ;;  %v4145_v7 = vld [vmem:[%s5137_s1 + $0x118] sm:$0xff] (!%p152_p3)   ;;  %v4147_v9 = vld [vmem:[%s5137_s1 + $0x120] sm:$0xff] (!%p152_p3)   ;;  %v4149_v11 = vld [vmem:[%s5137_s1 + $0x128] sm:$0xff] (!%p152_p3)   ;;  %vm3011_vm7 = vcmask (!%p152_p3), 1042434   ;;  %vm3014_vm8 = vcmask (!%p152_p3), 1043459   ;;  %vm3017_vm9 = vcmask (!%p152_p3), 1044484  }
   0xd   : > { %3794 = vmatprep.subr.bf16.mxu0 (!%p152_p3), %v4141_v3  ;;  %v4150_v17 = vld [vmem:[%s5137_s1 + $0x70] sm:$0xff] (!%p152_p3)   ;;  %v4152_v35 = vld [vmem:[%s5137_s1 + $0x78] sm:$0xff] (!%p152_p3)   ;;  %vm4396_vm2 = vmor (!%p152_p3), %vm245_vm0, %vm246_vm1  ;;  %vm3020_vm10 = vcmask (!%p152_p3), 1045509   ;;  %vm3023_vm11 = vcmask (!%p152_p3), 1046534   ;;  %vm3026_vm12 = vcmask (!%p152_p3), 1047559  }
   0xe   : > { %v4151_v30 = vld [vmem:[%s5137_s1 + $0x130] sm:$0xff] (!%p152_p3)   ;;  %v4153_v51 = vld [vmem:[%s5137_s1 + $0x138] sm:$0xff] (!%p152_p3)   ;;  %v4154_v0 = vld [vmem:[%s5137_s1] sm:$0xff] (!%p152_p3)  }
   0xf   : > { %3667 = vmatpush3.bf16.msra.mxu1 (!%p152_p3), %v4140_v2  ;;  %vm4597_vm5 = vmor (!%p152_p3), %vm835_vm3, %vm836_vm4 }
  0x10   : > { %s5156_s13 = smov (!%p179_p5, %s4246_s13), 1  ;;  %3795 = vmatpush3.bf16.msra.mxu0 %v4141_v3  ;;  %3668 = vmatprep.subr.bf16.mxu1 %v4142_v4 }
  0x11   : > { %s4096_s4 = smul.u32 216, %s5156_s13  ;;  %3796 = vmatprep.subr.bf16.mxu0 %v4143_v5  ;;  %s3175_s11 = sshll.u32 %s5156_s13, 3 }
  0x13   : > { %s183_s19 = scalar_lea.vmem %s5136_s0, %s4096_s4  ;;  %3669 = vmatpush3.bf16.msra.mxu1 %v4142_v4  ;;  %v4155_v4 = vld [vmem:[%s5137_s1 + $0x140] sm:$0xff]  }
  0x14   : > { %3797 = vmatpush3.bf16.msra.mxu0 %v4143_v5  ;;  %3670 = vmatprep.subr.bf16.mxu1 %v4144_v6  ;;  %s4350_s24 = scalar_lea.vmem %s183_s19, %s3487_s9  ;;  %s3174_s9 = sshll.u32 %s4242_s12, 2 }
  0x15   : > { %3798 = vmatprep.subr.bf16.mxu0 %v4145_v7  ;;  %v4359_v12 = vld [vmem:[%s4350_s24] sm:$0xf]  ;;  %v4362_v13 = vld [vmem:[%s4350_s24 + $0x4] sm:$0xf]  ;;  %v4365_v14 = vld [vmem:[%s4350_s24 + $0x8] sm:$0x1] }
  0x16   : > { %v249_v15 = vshrl.u32 %v4359_v12, 16  ;;  %v252_v16 = vshll.u32 %v4359_v12, 16  ;;  %v258_v18 = vshll.u32 %v4362_v13, 16  ;;  %v262_v19 = vshrl.u32 %v4362_v13, 16  ;;  %v4376_v21 = vld [vmem:[%s4350_s24 + $0xc] sm:$0xf] }
  0x17   : > { %3671 = vmatpush3.bf16.msra.mxu1 %v4144_v6  ;;  %v268_v20 = vshll.u32 %v4365_v14, 16  ;;  %v4379_v24 = vld [vmem:[%s4350_s24 + $0x10] sm:$0xf]  ;;  %v4382_v25 = vld [vmem:[%s4350_s24 + $0x14] sm:$0x1]  ;;  %v273_v29 = vshrl.u32 %v4376_v21, 16 }
  0x18   : > { %3799 = vmatpush3.bf16.msra.mxu0 %v4145_v7  ;;  %3672 = vmatprep.subr.bf16.mxu1 %v4146_v8  ;;  %v251_v22 = vrot.slane %v249_v15, 4  ;;  %v254_v23 = vrot.slane %v252_v16, 5  ;;  %v260_v26 = vrot.slane %v258_v18, 5  ;;  %v264_v27 = vrot.slane %v262_v19, 4  ;;  %v4402_v40 = vld [vmem:[%s4350_s24 + $0x18] sm:$0xf] }
  0x19   : > { %3800 = vmatprep.subr.bf16.mxu0 %v4147_v9  ;;  %v270_v28 = vrot.slane %v268_v20, 5  ;;  %v276_v32 = vshll.u32 %v4376_v21, 16  ;;  %v282_v33 = vshll.u32 %v4379_v24, 16  ;;  %v286_v34 = vshrl.u32 %v4379_v24, 16  ;;  %v4405_v41 = vld [vmem:[%s4350_s24 + $0x1c] sm:$0xf] }
  0x1a   : > { %v255_v31 = vor.u32 %v254_v23, %v251_v22  ;;  %v265_v37 = vor.u32 %v264_v27, %v260_v26  ;;  %v275_v38 = vrot.slane %v273_v29, 4  ;;  %v292_v39 = vshll.u32 %v4382_v25, 16  ;;  %v4408_v46 = vld [vmem:[%s4350_s24 + $0x20] sm:$0x1]  ;;  %v4433_v7 = vld [vmem:[%s4350_s24 + $0x24] sm:$0xf] }
  0x1b   : > { %3673 = vmatpush3.bf16.msra.mxu1 %v4146_v8  ;;  %v278_v43 = vrot.slane %v276_v32, 5  ;;  %v284_v44 = vrot.slane %v282_v33, 5  ;;  %v288_v45 = vrot.slane %v286_v34, 4  ;;  %v297_v49 = vshrl.u32 %v4402_v40, 16  ;;  %v4436_v8 = vld [vmem:[%s4350_s24 + $0x28] sm:$0xf] }
  0x1c   : > { %3801 = vmatpush3.bf16.msra.mxu0 %v4147_v9  ;;  %3674 = vmatprep.subr.bf16.mxu1 %v4148_v10  ;;  %v256_v42 = vrot.slane %v255_v31, 4  ;;  %v266_v47 = vrot.slane %v265_v37, 4  ;;  %v294_v48 = vrot.slane %v292_v39, 5  ;;  %v300_v50 = vshll.u32 %v4402_v40, 16  ;;  %v4439_v9 = vld [vmem:[%s4350_s24 + $0x2c] sm:$0x1] }
  0x1d   : > { %3802 = vmatprep.subr.bf16.mxu0 %v4149_v11  ;;  %v279_v53 = vor.u32 %v278_v43, %v275_v38  ;;  %v289_v54 = vor.u32 %v288_v45, %v284_v44  ;;  %v306_v55 = vshll.u32 %v4405_v41, 16  ;;  %v299_v57 = vrot.slane %v297_v49, 4  ;;  %v4449_v23 = vld [vmem:[%s4350_s24 + $0x30] sm:$0xf]  ;;  %v4455_v29 = vld [vmem:[%s4350_s24 + $0x34] sm:$0xf] }
  0x1e   : > { %v261_v52 = vsel %vm4396_vm2, %v256_v42, %v260_v26  ;;  %v271_v56 = vsel %vm4396_vm2, %v266_v47, %v270_v28  ;;  %v302_v58 = vrot.slane %v300_v50, 5  ;;  %v310_v59 = vshrl.u32 %v4405_v41, 16  ;;  %v4157_v37 = vld [vmem:[%s5137_s1 + $0x148] sm:$0xff]   ;;  %v4158_v47 = vld [vmem:[%s5137_s1 + $0x10] sm:$0xff]   ;;  %p5035_p6 = scmp.lt.s32.totalorder %s3174_s9, 7 }
  0x1f   : > { %3675 = vmatpush3.bf16.msra.mxu1 %v4148_v10  ;;  %v3196_v60 = vcombine.low %v261_v52, %v271_v56  ;;  %v280_v61 = vrot.slane %v279_v53, 4  ;;  %v290_v62 = vrot.slane %v289_v54, 4  ;;  %v308_v63 = vrot.slane %v306_v55, 5  ;;  %v4159_v56 = vld [vmem:[%s5137_s1 + $0x150] sm:$0xff]  }
  0x20   : > { %3803 = vmatpush3.bf16.msra.mxu0 %v4149_v11  ;;  %3676 = vmatprep.subr.bf16.mxu1 %v4150_v17  ;;  %v303_v1 = vor.u32 %v302_v58, %v299_v57  ;;  %v312_v2 = vrot.slane %v310_v59, 4  ;;  %v316_v3 = vshll.u32 %v4408_v46, 16  ;;  %v321_v18 = vshrl.u32 %v4433_v7, 16  ;;  %s5158_s9 = smov (!%p5035_p6, %s3174_s9), 7 }
  0x21   : > { %3804 = vmatprep.subr.bf16.mxu0 %v4151_v30  ;;  %3680 = vmatprep.mubr.bf16.mxu1 %v3196_v60  ;;  %v285_v5 = vsel %vm4396_vm2, %v280_v61, %v284_v44  ;;  %v295_v6 = vsel %vm4396_vm2, %v290_v62, %v294_v48  ;;  %v324_v19 = vshll.u32 %v4433_v7, 16  ;;  %v330_v20 = vshll.u32 %v4436_v8, 16  ;;  %v4481_v60 = vld [vmem:[%s4350_s24 + $0x3c] sm:$0xf]  ;;  %v4484_v61 = vld [vmem:[%s4350_s24 + $0x40] sm:$0xf]  ;;  %s190_s12 = sadd.s32 %s3175_s11, %s5158_s9 }
  0x22   : > { %v3197_v10 = vcombine.low %v285_v5, %v295_v6  ;;  %v304_v11 = vrot.slane %v303_v1, 4  ;;  %v313_v15 = vor.u32 %v312_v2, %v308_v63  ;;  %v318_v16 = vrot.slane %v316_v3, 5  ;;  %v4160_v6 = vld [vmem:[%s5137_s1 + $0x18] sm:$0xff]   ;;  %s3176_s13 = sshll.u32 %s190_s12, 2 }
  0x23   : > { %3677 = vmatpush3.bf16.msra.mxu1 %v4150_v17  ;;  %v4156_v17 = vld [vmem:[%s5137_s1 + $0x8] sm:$0xff]   ;;  %v334_v22 = vshrl.u32 %v4436_v8, 16  ;;  %v340_v28 = vshll.u32 %v4439_v9, 16  ;;  %v323_v31 = vrot.slane %v321_v18, 4  ;;  %v326_v32 = vrot.slane %v324_v19, 5  ;;  %s5064_s21 = scalar_lea.vmem %s5139_s3, %s3176_s13 }
  0x24   : > { %3805 = vmatpush3.bf16.msra.mxu0 %v4151_v30  ;;  %3678 = vmatprep.subr.bf16.mxu1 %v4152_v35  ;;  %v309_v26 = vsel %vm4396_vm2, %v304_v11, %v308_v63  ;;  %v314_v27 = vrot.slane %v313_v15, 4  ;;  %v4458_v30 = vld [vmem:[%s4350_s24 + $0x38] sm:$0x1]  ;;  %v332_v33 = vrot.slane %v330_v20, 5  ;;  %v345_v39 = vshrl.u32 %v4449_v23, 16 }
  0x25   : > { %3806 = vmatprep.subr.bf16.mxu0 %v4153_v51  ;;  %3808 = vmatprep.mubr.bf16.mxu0 %v3197_v10  ;;  %v336_v34 = vrot.slane %v334_v22, 4  ;;  %v342_v38 = vrot.slane %v340_v28, 5  ;;  %v348_v42 = vshll.u32 %v4449_v23, 16  ;;  %v327_v44 = vor.u32 %v326_v32, %v323_v31  ;;  %v4504_v18 = vld [vmem:[%s4350_s24 + $0x48] sm:$0xf]  ;;  %v4161_v28 = vld [vmem:[%s5137_s1 + $0x158] sm:$0xff]  }
  0x26   : > { %v354_v48 = vshll.u32 %v4455_v29, 16  ;;  %v347_v49 = vrot.slane %v345_v39, 4  ;;  %v364_v52 = vshll.u32 %v4458_v30, 16  ;;  %v369_v1 = vshrl.u32 %v4481_v60, 16 }
  0x27   : > { %3679 = vmatpush3.bf16.msra.mxu1 %v4152_v35  ;;  %v319_v35 = vsel %vm4396_vm2, %v314_v27, %v318_v16  ;;  %v337_v45 = vor.u32 %v336_v34, %v332_v33  ;;  %v350_v50 = vrot.slane %v348_v42, 5  ;;  %v328_v53 = vrot.slane %v327_v44, 4  ;;  %v4513_v27 = vld [vmem:[%s4350_s24 + $0x50] sm:$0x1] }
  0x28   : > { %3807 = vmatpush3.bf16.msra.mxu0 %v4153_v51  ;;  %3696 = vmatprep.subr.bf16.mxu1 %v4154_v0  ;;  %v4467_v43 = vcombine.low %v309_v26, %v319_v35  ;;  %v358_v51 = vshrl.u32 %v4455_v29, 16  ;;  %v356_v55 = vrot.slane %v354_v48, 5  ;;  %v366_v59 = vrot.slane %v364_v52, 5  ;;  %v4510_v26 = vld [vmem:[%s4350_s24 + $0x4c] sm:$0xf] }
  0x29   : > { %3824 = vmatprep.subr.bf16.mxu0 %v4155_v4  ;;  %v338_v54 = vrot.slane %v337_v45, 4  ;;  %v351_v57 = vor.u32 %v350_v50, %v347_v49  ;;  %v333_v62 = vsel %vm4396_vm2, %v328_v53, %v332_v33  ;;  %v372_v2 = vshll.u32 %v4481_v60, 16 }
  0x2a   : > { %3681 = vmatmul.mubr.bf16.vlgmr.msra.gmra.mrb[0].mxu1 %v3197_v10  ;;  %v360_v58 = vrot.slane %v358_v51, 4  ;;  %v378_v10 = vshll.u32 %v4484_v61, 16  ;;  %v371_v11 = vrot.slane %v369_v1, 4  ;;  %v382_v16 = vshrl.u32 %v4484_v61, 16 }
  0x2b   : > { %3697 = vmatpush3.bf16.msra.mxu1 %v4154_v0  ;;  %3809 = vmatmul.mubr.bf16.vlgmr.msra.gmra.mrb[0].mxu0 %v4467_v43  ;;  %v343_v63 = vsel %vm4396_vm2, %v338_v54, %v342_v38  ;;  %v4491_v0 = vld [vmem:[%s4350_s24 + $0x44] sm:$0x1]  ;;  %v374_v15 = vrot.slane %v372_v2, 5  ;;  %v393_v34 = vshrl.u32 %v4504_v18, 16  ;;  %v396_v38 = vshll.u32 %v4504_v18, 16 }
  0x2c   : > { %3698 = vmatprep.subr.bf16.mxu1 %v4156_v17  ;;  %3684 = vmatprep.mubr.bf16.mxu1 %v4467_v43  ;;  %v4495_v3 = vcombine.low %v333_v62, %v343_v63  ;;  %v361_v5 = vor.u32 %v360_v58, %v356_v55  ;;  %v380_v22 = vrot.slane %v378_v10, 5  ;;  %v384_v32 = vrot.slane %v382_v16, 4  ;;  %v4542_v62 = vld [vmem:[%s4350_s24 + $0x58] sm:$0xf]  ;;  %v4545_v63 = vld [vmem:[%s4350_s24 + $0x5c] sm:$0x1] }
  0x2d   : > { %3825 = vmatpush3.bf16.msra.mxu0 %v4155_v4  ;;  %v352_v4 = vrot.slane %v351_v57, 4  ;;  %v375_v31 = vor.u32 %v374_v15, %v371_v11  ;;  %v402_v39 = vshll.u32 %v4510_v26, 16  ;;  %v406_v42 = vshrl.u32 %v4510_v26, 16  ;;  %v4538_v57 = vld [vmem:[%s4350_s24 + $0x54] sm:$0xf] }
  0x2e   : > { %3826 = vmatprep.subr.bf16.mxu0 %v4157_v37  ;;  %3812 = vmatprep.mubr.bf16.mxu0 %v4495_v3  ;;  %v362_v20 = vrot.slane %v361_v5, 4  ;;  %v385_v48 = vor.u32 %v384_v32, %v380_v22  ;;  %v395_v49 = vrot.slane %v393_v34, 4  ;;  %v412_v52 = vshll.u32 %v4513_v27, 16 }
  0x2f   : > { %3699 = vmatpush3.bf16.msra.mxu1 %v4156_v17  ;;  %v388_v17 = vshll.u32 %v4491_v0, 16  ;;  %v357_v19 = vsel %vm4396_vm2, %v352_v4, %v356_v55  ;;  %v376_v45 = vrot.slane %v375_v31, 4  ;;  %v404_v50 = vrot.slane %v402_v39, 5  ;;  %v4163_v55 = vld [vmem:[%s5137_s1 + $0x160] sm:$0xff]   ;;  %v4164_v4 = vld [vmem:[%s5137_s1 + $0x28] sm:$0xff]  }
  0x30   : > { %3700 = vmatprep.subr.bf16.mxu1 %v4158_v47  ;;  %v367_v35 = vsel %vm4396_vm2, %v362_v20, %v366_v59  ;;  %v408_v51 = vrot.slane %v406_v42, 4  ;;  %v386_v54 = vrot.slane %v385_v48, 4  ;;  %v414_v59 = vrot.slane %v412_v52, 5  ;;  %v4578_v39 = vld [vmem:[%s4350_s24 + $0x68] sm:$0x1] }
  0x31   : > { %3827 = vmatpush3.bf16.msra.mxu0 %v4157_v37  ;;  %v390_v33 = vrot.slane %v388_v17, 5  ;;  %v4162_v37 = vld [vmem:[%s5137_s1 + $0x20] sm:$0xff]   ;;  %v4528_v44 = vcombine.low %v357_v19, %v367_v35  ;;  %v381_v53 = vsel %vm4396_vm2, %v376_v45, %v380_v22  ;;  %v417_v1 = vshrl.u32 %v4538_v57, 16  ;;  %v4165_v17 = vld [vmem:[%s5137_s1 + $0x168] sm:$0xff]   ;;  %v4166_v35 = vld [vmem:[%s5137_s1 + $0x30] sm:$0xff]  }
  0x32   : > { %3685 = vmatmul.mubr.bf16.gmra.mrb[4].mxu1 %v4495_v3  ;;  %3828 = vmatprep.subr.bf16.mxu0 %v4159_v56  ;;  %v409_v58 = vor.u32 %v408_v51, %v404_v50  ;;  %v420_v5 = vshll.u32 %v4538_v57, 16  ;;  %v430_v10 = vshrl.u32 %v4542_v62, 16  ;;  %v436_v32 = vshll.u32 %v4545_v63, 16  ;;  %v4167_v51 = vld [vmem:[%s5137_s1 + $0x170] sm:$0xff]  }
  0x33   : > { %3701 = vmatpush3.bf16.msra.mxu1 %v4158_v47  ;;  %v398_v47 = vrot.slane %v396_v38, 5  ;;  %3813 = vmatmul.mubr.bf16.gmra.mrb[4].mxu0 %v4528_v44  ;;  %v391_v2 = vsel %vm4396_vm2, %v386_v54, %v390_v33  ;;  %v419_v19 = vrot.slane %v417_v1, 4  ;;  %v4563_v33 = vld [vmem:[%s4350_s24 + $0x60] sm:$0xf]  ;;  %v4575_v38 = vld [vmem:[%s4350_s24 + $0x64] sm:$0xf] }
  0x34   : > { %3702 = vmatprep.subr.bf16.mxu1 %v4160_v6  ;;  %3688 = vmatprep.mubr.bf16.mxu1 %v4528_v44  ;;  %v4556_v11 = vcombine.low %v381_v53, %v391_v2  ;;  %v410_v16 = vrot.slane %v409_v58, 4  ;;  %v422_v20 = vrot.slane %v420_v5, 5  ;;  %v432_v31 = vrot.slane %v430_v10, 4 }
  0x35   : > { %3829 = vmatpush3.bf16.msra.mxu0 %v4159_v56  ;;  %v399_v56 = vor.u32 %v398_v47, %v395_v49  ;;  %v1289_v42 = vshrl.u32 %v4563_v33, 16  ;;  %v1292_v45 = vshll.u32 %v4563_v33, 16  ;;  %v1298_v54 = vshll.u32 %v4575_v38, 16 }
  0x36   : > { %3830 = vmatprep.subr.bf16.mxu0 %v4161_v28  ;;  %3816 = vmatprep.mubr.bf16.mxu0 %v4556_v11  ;;  %v415_v34 = vsel %vm4396_vm2, %v410_v16, %v414_v59  ;;  %v423_v49 = vor.u32 %v422_v20, %v419_v19  ;;  %v1308_v59 = vshll.u32 %v4578_v39, 16  ;;  %v3229_v1 = vrot.slane %v4376_v21, 9 }
  0x37   : > { %3703 = vmatpush3.bf16.msra.mxu1 %v4160_v6  ;;  %v426_v6 = vshll.u32 %v4542_v62, 16  ;;  %v400_v15 = vrot.slane %v399_v56, 4  ;;  %v1291_v52 = vrot.slane %v1289_v42, 4  ;;  %v1294_v53 = vrot.slane %v1292_v45, 5 }
  0x38   : > { %3704 = vmatprep.subr.bf16.mxu1 %v4162_v37  ;;  %v1302_v56 = vshrl.u32 %v4575_v38, 16  ;;  %v424_v58 = vrot.slane %v423_v49, 4  ;;  %v1310_v19 = vrot.slane %v1308_v59, 5  ;;  %v847_v20 = vrot.slane %v4379_v24, 5 }
  0x39   : > { %3831 = vmatpush3.bf16.msra.mxu0 %v4161_v28  ;;  %v428_v22 = vrot.slane %v426_v6, 5  ;;  %v405_v28 = vsel %vm4396_vm2, %v400_v15, %v404_v50  ;;  %v438_v50 = vrot.slane %v436_v32, 5  ;;  %v1295_v2 = vor.u32 %v1294_v53, %v1291_v52 }
  0x3a   : > { %3832 = vmatprep.subr.bf16.mxu0 %v4163_v55  ;;  %3689 = vmatmul.mubr.bf16.gmra.mrb[8].mxu1 %v4556_v11  ;;  %v4582_v48 = vcombine.low %v405_v28, %v415_v34  ;;  %v1304_v5 = vrot.slane %v1302_v56, 4  ;;  %v3212_v6 = vcombine.low %v4359_v12, %v4362_v13  ;;  %v4168_v34 = vld [vmem:[%s5137_s1 + $0x38] sm:$0xff]   ;;  %v848_v42 = vsel %vm4597_vm5, %v3229_v1, %v847_v20 }
  0x3b   : > { %3705 = vmatpush3.bf16.msra.mxu1 %v4162_v37  ;;  %v433_v47 = vor.u32 %v432_v31, %v428_v22  ;;  %v429_v15 = vsel %vm4396_vm2, %v424_v58, %v428_v22  ;;  %v1296_v32 = vrot.slane %v1295_v2, 4  ;;  %v4169_v22 = vld [vmem:[%s5137_s1 + $0x178] sm:$0xff]   ;;  %v854_v45 = vrot.slane %v4405_v41, 5 }
  0x3c   : > { %3706 = vmatprep.subr.bf16.mxu1 %v4164_v4  ;;  %3817 = vmatmul.mubr.bf16.gmra.mrb[8].mxu0 %v4582_v48  ;;  %v3230_v53 = vrot.slane %v4402_v40, 9  ;;  %v3231_v1 = vrot.slane %v4433_v7, 9  ;;  %v4647_v2 = vcombine.low %v4376_v21, %v4379_v24  ;;  %v4174_v21 = vld [vmem:[%s5137_s1 + $0x88] sm:$0xff]   ;;  %v868_v24 = vrot.slane %v4455_v29, 5 }
  0x3d   : > { %3833 = vmatpush3.bf16.msra.mxu0 %v4163_v55  ;;  %v434_v37 = vrot.slane %v433_v47, 4  ;;  %3692 = vmatprep.mubr.bf16.mxu1 %v4582_v48  ;;  %v1300_v55 = vrot.slane %v1298_v54, 5  ;;  %v856_v58 = vrot.slane %v854_v45, 4 }
  0x3e   : > { %3834 = vmatprep.subr.bf16.mxu0 %v4165_v17 }
  0x3f   : > { %3707 = vmatpush3.bf16.msra.mxu1 %v4164_v4  ;;  %v439_v16 = vsel %vm4396_vm2, %v434_v37, %v438_v50  ;;  %v1305_v28 = vor.u32 %v1304_v5, %v1300_v55  ;;  %v850_v4 = vrot.slane %v4382_v25, 5  ;;  %v1301_v49 = vsel %vm4396_vm2, %v1296_v32, %v1300_v55 }
  0x40   : > { %v4606_v31 = vcombine.low %v429_v15, %v439_v16  ;;  %3708 = vmatprep.subr.bf16.mxu1 %v4166_v35  ;;  %v4624_v25 = vcombine.low %v4563_v33, %v4575_v38  ;;  %v857_v50 = vrot.slane %v4408_v46, 5  ;;  %v861_v37 = vrot.slane %v4436_v8, 5  ;;  %v4172_v46 = vld [vmem:[%s5137_s1 + $0x80] sm:$0xff]  }
  0x41   : > { %3835 = vmatpush3.bf16.msra.mxu0 %v4165_v17  ;;  %v849_v17 = vrot.slane %v847_v20, 4  ;;  %v1306_v47 = vrot.slane %v1305_v28, 4  ;;  %v4652_v5 = vcombine.low %v4402_v40, %v4405_v41  ;;  %v875_v15 = vrot.slane %v4484_v61, 5 }
  0x42   : > { %3836 = vmatprep.subr.bf16.mxu0 %v4167_v51  ;;  %3820 = vmatprep.mubr.bf16.mxu0 %v4606_v31  ;;  %v863_v55 = vrot.slane %v861_v37, 4  ;;  %v862_v40 = vsel %vm4597_vm5, %v3231_v1, %v861_v37  ;;  %v3232_v20 = vrot.slane %v4449_v23, 9  ;;  %v870_v28 = vrot.slane %v868_v24, 4  ;;  %v4181_v37 = vld [vmem:[%s5137_s1 + $0x198] sm:$0xff]  }
  0x43   : > { %3693 = vmatmul.mubr.bf16.gmra.mrb[12].mxu1 %v4606_v31  ;;  %v851_v52 = vsel %vm4597_vm5, %v849_v17, %v850_v4  ;;  %v1311_v54 = vsel %vm4396_vm2, %v1306_v47, %v1310_v19  ;;  %v4175_v19 = vld [vmem:[%s5137_s1 + $0x188] sm:$0xff]   ;;  %v4178_v4 = vld [vmem:[%s5137_s1 + $0x90] sm:$0xff]   ;;  %v878_v17 = vrot.slane %v4491_v0, 5  ;;  %v882_v47 = vrot.slane %v4510_v26, 5  ;;  %v4180_v0 = vld [vmem:[%s5137_s1 + $0x98] sm:$0xff]  }
  0x44   : > { %3709 = vmatpush3.bf16.msra.mxu1 %v4166_v35  ;;  %3712 = vmatprep.mubr.bf16.mxu1 %v3212_v6  ;;  %v4632_v56 = vcombine.low %v848_v42, %v851_v52  ;;  %v4635_v59 = vcombine.low %v1301_v49, %v1311_v54  ;;  %v4173_v35 = vld [vmem:[%s5137_s1 + $0x180] sm:$0xff]   ;;  %v855_v6 = vsel %vm4597_vm5, %v3230_v53, %v854_v45  ;;  %v877_v42 = vrot.slane %v875_v15, 4 }
  0x45   : > { %3837 = vmatpush3.bf16.msra.mxu0 %v4167_v51  ;;  %3710 = vmatprep.subr.bf16.mxu1 %v4168_v34  ;;  %v864_v51 = vrot.slane %v4439_v9, 5  ;;  %v858_v9 = vsel %vm4597_vm5, %v856_v58, %v857_v50  ;;  %v4686_v45 = vcombine.low %v4433_v7, %v4436_v8  ;;  %v4694_v49 = vcombine.low %v4449_v23, %v4455_v29 }
  0x46   : > { %3838 = vmatprep.subr.bf16.mxu0 %v4169_v22  ;;  %3821 = vmatmul.mubr.bf16.gmra.mrb[12].mxu0 %v4635_v59  ;;  %v4669_v16 = vcombine.low %v855_v6, %v858_v9  ;;  %v843_v50 = vrot.slane %v4365_v14, 5  ;;  %v869_v7 = vsel %vm4597_vm5, %v3232_v20, %v868_v24  ;;  %v879_v14 = vsel %vm4597_vm5, %v877_v42, %v878_v17  ;;  %v4192_v17 = vld [vmem:[%s5137_s1 + $0xb8] sm:$0xff]  }
  0x47   : > { %3840 = vmatprep.mubr.bf16.mxu0 %v4632_v56  ;;  %v865_v41 = vsel %vm4597_vm5, %v863_v55, %v864_v51  ;;  %v889_v29 = vrot.slane %v4542_v62, 5  ;;  %v3228_v52 = vrot.slane %v4359_v12, 9  ;;  %v3234_v53 = vrot.slane %v4504_v18, 9 }
  0x48   : > { %3711 = vmatpush3.bf16.msra.mxu1 %v4168_v34  ;;  %v4676_v32 = vcombine.low %v862_v40, %v865_v41  ;;  %v871_v34 = vrot.slane %v4458_v30, 5  ;;  %v4179_v30 = vld [vmem:[%s5137_s1 + $0x190] sm:$0xff]   ;;  %v840_v54 = vrot.slane %v4362_v13, 5  ;;  %v884_v12 = vrot.slane %v882_v47, 4 }
  0x49   : > { %3839 = vmatpush3.bf16.msra.mxu0 %v4169_v22  ;;  %3728 = vmatprep.subr.bf16.mxu1 %v4172_v46  ;;  %v3233_v22 = vrot.slane %v4481_v60, 9  ;;  %v3235_v13 = vrot.slane %v4538_v57, 9  ;;  %v891_v6 = vrot.slane %v889_v29, 4  ;;  %v892_v9 = vrot.slane %v4545_v63, 5 }
  0x4a   : > { %3856 = vmatprep.subr.bf16.mxu0 %v4173_v35  ;;  %v872_v8 = vsel %vm4597_vm5, %v870_v28, %v871_v34  ;;  %v841_v51 = vsel %vm4597_vm5, %v3228_v52, %v840_v54  ;;  %v842_v55 = vrot.slane %v840_v54, 4  ;;  %v4740_v24 = vcombine.low %v4504_v18, %v4510_v26  ;;  %v4185_v18 = vld [vmem:[%s5137_s1 + $0x1a0] sm:$0xff]   ;;  %v4204_v52 = vld [vmem:[%s5137_s1 + $0xe8] sm:$0xff]  }
  0x4b   : > { %3713 = vmatmul.mubr.bf16.vlgmr.msra.gmra.mrb[0].mxu1 %v4647_v2  ;;  %v876_v23 = vsel %vm4597_vm5, %v3233_v22, %v875_v15  ;;  %v4715_v58 = vcombine.low %v869_v7, %v872_v8  ;;  %v883_v63 = vsel %vm4597_vm5, %v3234_v53, %v882_v47  ;;  %v1497_v41 = vrot.slane %v4575_v38, 5  ;;  %v4187_v38 = vld [vmem:[%s5137_s1 + $0x1a8] sm:$0xff]   ;;  %v4190_v22 = vld [vmem:[%s5137_s1 + $0xb0] sm:$0xff]   ;;  %v4194_v47 = vld [vmem:[%s5137_s1 + $0xc0] sm:$0xff]  }
  0x4c   : > { %3729 = vmatpush3.bf16.msra.mxu1 %v4172_v46  ;;  %3716 = vmatprep.mubr.bf16.mxu1 %v4652_v5  ;;  %v4184_v46 = vld [vmem:[%s5137_s1 + $0xa0] sm:$0xff]   ;;  %v4725_v1 = vcombine.low %v876_v23, %v879_v14  ;;  %v890_v26 = vsel %vm4597_vm5, %v3235_v13, %v889_v29  ;;  %v893_v15 = vsel %vm4597_vm5, %v891_v6, %v892_v9  ;;  %v3318_v20 = vrot.slane %v4563_v33, 9  ;;  %v4197_v8 = vld [vmem:[%s5137_s1 + $0x1c8] sm:$0xff]   ;;  %v4199_v23 = vld [vmem:[%s5137_s1 + $0x1d0] sm:$0xff]  }
  0x4d   : > { %3730 = vmatprep.subr.bf16.mxu1 %v4174_v21  ;;  %v4766_v28 = vcombine.low %v890_v26, %v893_v15  ;;  %v1499_v34 = vrot.slane %v1497_v41, 4  ;;  %v4774_v42 = vcombine.low %v4538_v57, %v4542_v62  ;;  %v4191_v57 = vld [vmem:[%s5137_s1 + $0x1b0] sm:$0xff]   ;;  %v4195_v7 = vld [vmem:[%s5137_s1 + $0x1c0] sm:$0xff]   ;;  %v4201_v14 = vld [vmem:[%s5137_s1 + $0x1d8] sm:$0xff]  }
  0x4e   : > { %3841 = vmatmul.mubr.bf16.vlgmr.msra.gmra.mrb[0].mxu0 %v4669_v16  ;;  %v1498_v33 = vsel %vm4597_vm5, %v3318_v20, %v1497_v41  ;;  %v4202_v29 = vld [vmem:[%s5137_s1 + $0xe0] sm:$0xff]   ;;  %v4205_v54 = vld [vmem:[%s5137_s1 + $0x1e8] sm:$0xff]   ;;  %v4209_v13 = vld [vmem:[%s5137_s1 + $0x1f0] sm:$0xff]  }
  0x4f   : > { %3857 = vmatpush3.bf16.msra.mxu0 %v4173_v35  ;;  %3844 = vmatprep.mubr.bf16.mxu0 %v4676_v32  ;;  %v885_v35 = vrot.slane %v4513_v27, 5  ;;  %v844_v27 = vsel %vm4597_vm5, %v842_v55, %v843_v50  ;;  %v4196_v50 = vld [vmem:[%s5137_s1 + $0xc8] sm:$0xff]   ;;  %v4203_v53 = vld [vmem:[%s5137_s1 + $0x1e0] sm:$0xff]   ;;  %v4211_v55 = vld [vmem:[%s5137_s1 + $0x1f8] sm:$0xff]  }
  0x50   : > { %3731 = vmatpush3.bf16.msra.mxu1 %v4174_v21  ;;  %3858 = vmatprep.subr.bf16.mxu0 %v4175_v19  ;;  %v4733_v21 = vcombine.low %v4481_v60, %v4484_v61  ;;  %v3252_v40 = vcombine.low %v841_v51, %v844_v27  ;;  %v4186_v61 = vld [vmem:[%s5137_s1 + $0xa8] sm:$0xff]   ;;  %v4212_v6 = vld [vmem:[%s5137_s1 + $0x200] sm:$0xff]   ;;  %v4214_v9 = vld [vmem:[%s5137_s1 + $0x210] sm:$0xff]  }
  0x51   : > { %3732 = vmatprep.subr.bf16.mxu1 %v4178_v4  ;;  %v886_v60 = vsel %vm4597_vm5, %v884_v12, %v885_v35  ;;  %v4851_v12 = vld [vmem:[%s4350_s24 + $0x70] sm:$0xf]  ;;  %v4210_v35 = vld [vmem:[%s5137_s1 + $0xf8] sm:$0xff]   ;;  %v228_v41 = vld [vmem:[%s4350_s24 + $0x74] sm:$0x1] }
  0x52   : > { %v1888_v26 = vshll.u32 %v228_v41, 16 }
  0x53   : > { %3717 = vmatmul.mubr.bf16.gmra.mrb[4].mxu1 %v4686_v45  ;;  %3859 = vmatpush3.bf16.msra.mxu0 %v4175_v19  ;;  %v4759_v19 = vcombine.low %v883_v63, %v886_v60 }
  0x54   : > { %3733 = vmatpush3.bf16.msra.mxu1 %v4178_v4  ;;  %3720 = vmatprep.mubr.bf16.mxu1 %v4694_v49  ;;  %v1500_v4 = vrot.slane %v4578_v39, 5 }
  0x55   : > { %3734 = vmatprep.subr.bf16.mxu1 %v4180_v0  ;;  %3860 = vmatprep.subr.bf16.mxu0 %v4179_v30 }
  0x56   : > { %3845 = vmatmul.mubr.bf16.gmra.mrb[4].mxu0 %v4715_v58  ;;  %v1501_v39 = vsel %vm4597_vm5, %v1499_v34, %v1500_v4  ;;  %v4219_v34 = vld [vmem:[%s5137_s1 + $0x238] sm:$0xff]  }
  0x57   : > { %3861 = vmatpush3.bf16.msra.mxu0 %v4179_v30  ;;  %3848 = vmatprep.mubr.bf16.mxu0 %v4725_v1  ;;  %v4789_v62 = vcombine.low %v1498_v33, %v1501_v39  ;;  %v4193_v30 = vld [vmem:[%s5137_s1 + $0x1b8] sm:$0xff]  }
  0x58   : > { %3735 = vmatpush3.bf16.msra.mxu1 %v4180_v0  ;;  %3862 = vmatprep.subr.bf16.mxu0 %v4181_v37  ;;  %v4198_v0 = vld [vmem:[%s5137_s1 + $0xd0] sm:$0xff]  }
  0x59   : > { %3736 = vmatprep.subr.bf16.mxu1 %v4184_v46 }
  0x5b   : > { %3721 = vmatmul.mubr.bf16.gmra.mrb[8].mxu1 %v4733_v21  ;;  %3863 = vmatpush3.bf16.msra.mxu0 %v4181_v37  ;;  %v4207_v37 = vld [vmem:[%s5137_s1 + $0xf0] sm:$0xff]  }
  0x5c   : > { %3737 = vmatpush3.bf16.msra.mxu1 %v4184_v46  ;;  %3724 = vmatprep.mubr.bf16.mxu1 %v4740_v24  ;;  %v4848_v46 = vld [vmem:[%s4350_s24 + $0x6c] sm:$0xf] }
  0x5d   : > { %3738 = vmatprep.subr.bf16.mxu1 %v4186_v61  ;;  %3864 = vmatprep.subr.bf16.mxu0 %v4185_v18  ;;  %v3360_v51 = vcombine.low %v4848_v46, %v4851_v12  ;;  %v1872_v27 = vshll.u32 %v4848_v46, 16  ;;  %v3394_v36 = vrot.slane %v4848_v46, 9 }
  0x5e   : > { %3849 = vmatmul.mubr.bf16.gmra.mrb[8].mxu0 %v4759_v19 }
  0x5f   : > { %3865 = vmatpush3.bf16.msra.mxu0 %v4185_v18  ;;  %3852 = vmatprep.mubr.bf16.mxu0 %v4766_v28  ;;  %v1874_v63 = vrot.slane %v1872_v27, 5 }
  0x60   : > { %3739 = vmatpush3.bf16.msra.mxu1 %v4186_v61  ;;  %3866 = vmatprep.subr.bf16.mxu0 %v4187_v38  ;;  %v4216_v61 = vld [vmem:[%s5137_s1 + $0x220] sm:$0xff]  }
  0x61   : > { %3740 = vmatprep.subr.bf16.mxu1 %v4190_v22 }
  0x63   : > { %3725 = vmatmul.mubr.bf16.gmra.mrb[12].mxu1 %v4774_v42  ;;  %3867 = vmatpush3.bf16.msra.mxu0 %v4187_v38  ;;  %v1890_v38 = vrot.slane %v1888_v26, 5 }
  0x64   : > { %3741 = vmatpush3.bf16.msra.mxu1 %v4190_v22  ;;  %3744 = vmatprep.mubr.bf16.mxu1 %v3252_v40  ;;  %v1882_v40 = vshrl.u32 %v4851_v12, 16  ;;  %v2080_v22 = vrot.slane %v228_v41, 5 }
  0x65   : > { %3742 = vmatprep.subr.bf16.mxu1 %v4192_v17  ;;  %3868 = vmatprep.subr.bf16.mxu0 %v4191_v57 }
  0x66   : > { %3853 = vmatmul.mubr.bf16.gmra.mrb[12].mxu0 %v4789_v62 }
  0x67   : > { %3869 = vmatpush3.bf16.msra.mxu0 %v4191_v57  ;;  %3872 = vmatprep.mubr.bf16.mxu0 %v4652_v5 }
  0x68   : > { %3743 = vmatpush3.bf16.msra.mxu1 %v4192_v17  ;;  %3870 = vmatprep.subr.bf16.mxu0 %v4193_v30 }
  0x69   : > { %3760 = vmatprep.subr.bf16.mxu1 %v4194_v47 }
  0x6b   : > { %3745 = vmatmul.mubr.bf16.vlgmr.msra.gmra.mrb[0].mxu1 %v4632_v56  ;;  %3871 = vmatpush3.bf16.msra.mxu0 %v4193_v30  ;;  %v4200_v56 = vld [vmem:[%s5137_s1 + $0xd8] sm:$0xff]  }
  0x6c   : > { %3761 = vmatpush3.bf16.msra.mxu1 %v4194_v47  ;;  %3748 = vmatprep.mubr.bf16.mxu1 %v4669_v16 }
  0x6d   : > { %3762 = vmatprep.subr.bf16.mxu1 %v4196_v50  ;;  %3888 = vmatprep.subr.bf16.mxu0 %v4195_v7 }
  0x6e   : > { %3873 = vmatmul.mubr.bf16.vlgmr.msra.gmra.mrb[0].mxu0 %v4686_v45 }
  0x6f   : > { %3889 = vmatpush3.bf16.msra.mxu0 %v4195_v7  ;;  %3876 = vmatprep.mubr.bf16.mxu0 %v4694_v49 }
  0x70   : > { %3763 = vmatpush3.bf16.msra.mxu1 %v4196_v50  ;;  %3890 = vmatprep.subr.bf16.mxu0 %v4197_v8 }
  0x71   : > { %3764 = vmatprep.subr.bf16.mxu1 %v4198_v0 }
  0x73   : > { %3749 = vmatmul.mubr.bf16.gmra.mrb[4].mxu1 %v4676_v32  ;;  %3891 = vmatpush3.bf16.msra.mxu0 %v4197_v8 }
  0x74   : > { %3765 = vmatpush3.bf16.msra.mxu1 %v4198_v0  ;;  %3752 = vmatprep.mubr.bf16.mxu1 %v4715_v58 }
  0x75   : > { %3766 = vmatprep.subr.bf16.mxu1 %v4200_v56  ;;  %3892 = vmatprep.subr.bf16.mxu0 %v4199_v23 }
  0x76   : > { %3877 = vmatmul.mubr.bf16.gmra.mrb[4].mxu0 %v4733_v21 }
  0x77   : > { %3893 = vmatpush3.bf16.msra.mxu0 %v4199_v23  ;;  %3880 = vmatprep.mubr.bf16.mxu0 %v4740_v24 }
  0x78   : > { %3767 = vmatpush3.bf16.msra.mxu1 %v4200_v56  ;;  %3894 = vmatprep.subr.bf16.mxu0 %v4201_v14 }
  0x79   : > { %3768 = vmatprep.subr.bf16.mxu1 %v4202_v29 }
  0x7b   : > { %3753 = vmatmul.mubr.bf16.gmra.mrb[8].mxu1 %v4725_v1  ;;  %3895 = vmatpush3.bf16.msra.mxu0 %v4201_v14 }
  0x7c   : > { %3769 = vmatpush3.bf16.msra.mxu1 %v4202_v29  ;;  %3756 = vmatprep.mubr.bf16.mxu1 %v4759_v19 }
  0x7d   : > { %3770 = vmatprep.subr.bf16.mxu1 %v4204_v52  ;;  %3896 = vmatprep.subr.bf16.mxu0 %v4203_v53 }
  0x7e   : > { %3881 = vmatmul.mubr.bf16.gmra.mrb[8].mxu0 %v4774_v42 }
  0x7f   : > { %3897 = vmatpush3.bf16.msra.mxu0 %v4203_v53  ;;  %3884 = vmatprep.mubr.bf16.mxu0 %v4624_v25 }
  0x80   : > { %3771 = vmatpush3.bf16.msra.mxu1 %v4204_v52  ;;  %3898 = vmatprep.subr.bf16.mxu0 %v4205_v54 }
  0x81   : > { %3772 = vmatprep.subr.bf16.mxu1 %v4207_v37 }
  0x83   : > { %3757 = vmatmul.mubr.bf16.gmra.mrb[12].mxu1 %v4766_v28  ;;  %3899 = vmatpush3.bf16.msra.mxu0 %v4205_v54 }
  0x84   : > { %3773 = vmatpush3.bf16.msra.mxu1 %v4207_v37  ;;  %3776 = vmatprep.mubr.bf16.mxu1 %v4647_v2  ;;  %v4213_v2 = vld [vmem:[%s5137_s1 + $0x208] sm:$0xff]   ;;  %v4260_v37 = vmov 1983009808  }
  0x85   : > { %3774 = vmatprep.subr.bf16.mxu1 %v4210_v35  ;;  %3900 = vmatprep.subr.bf16.mxu0 %v4209_v13 }
  0x86   : > { %3885 = vmatmul.mubr.bf16.gmra.mrb[12].mxu0 %v3360_v51 }
  0x87   : > { %3901 = vmatpush3.bf16.msra.mxu0 %v4209_v13  ;;  %3904 = vmatprep.mubr.bf16.mxu0 %v4467_v43  ;;  %v1869_v43 = vshrl.u32 %v4848_v46, 16  ;;  %v2321_v46 = vunpack.c.l.s4 %v4260_v37 }
  0x88   : > { %3775 = vmatpush3.bf16.msra.mxu1 %v4210_v35  ;;  %3902 = vmatprep.subr.bf16.mxu0 %v4211_v55 }
  0x89   : > { %3952 = vmatprep.subr.bf16.mxu1 %v4212_v6 }
  0x8b   : > { %3777 = vmatmul.mubr.bf16.vlgmr.msra.gmra.mrb[0].mxu1 %v4652_v5  ;;  %3903 = vmatpush3.bf16.msra.mxu0 %v4211_v55  ;;  %v4215_v5 = vld [vmem:[%s5137_s1 + $0x218] sm:$0xff]  }
  0x8c   : > { %3960 = vmatpush3.bf16.msra.mxu1 %v4212_v6  ;;  %3780 = vmatprep.mubr.bf16.mxu1 %v4686_v45  ;;  %v1878_v45 = vshll.u32 %v4851_v12, 16 }
  0x8d   : > { %3953 = vmatprep.subr.bf16.mxu1 %v4213_v2  ;;  %3920 = vmatprep.subr.bf16.mxu0 %v4212_v6 }
  0x8e   : > { %3905 = vmatmul.mubr.bf16.vlgmr.msra.gmra.mrb[0].mxu0 %v4495_v3  ;;  %v1871_v3 = vrot.slane %v1869_v43, 4  ;;  %v1880_v60 = vrot.slane %v1878_v45, 5 }
  0x8f   : > { %3921 = vmatpush3.bf16.msra.mxu0 %v4212_v6  ;;  %3908 = vmatprep.mubr.bf16.mxu0 %v4528_v44  ;;  %v1884_v44 = vrot.slane %v1882_v40, 4  ;;  %v4945_v40 = vld [vmem:[%s5138_s2] ss:$0 sm:$0xff] }
  0x90   : > { %3961 = vmatpush3.bf16.msra.mxu1 %v4213_v2  ;;  %3922 = vmatprep.subr.bf16.mxu0 %v4213_v2 }
  0x91   : > { %3954 = vmatprep.subr.bf16.mxu1 %v4214_v9  ;;  %v1885_v18 = vor.u32 %v1884_v44, %v1880_v60 }
  0x93   : > { %3781 = vmatmul.mubr.bf16.gmra.mrb[4].mxu1 %v4694_v49  ;;  %3923 = vmatpush3.bf16.msra.mxu0 %v4213_v2  ;;  %v4217_v49 = vld [vmem:[%s5137_s1 + $0x228] sm:$0xff]   ;;  %v1886_v15 = vrot.slane %v1885_v18, 4  ;;  %v2322_v2 = vunpack.c.0.s8 %v2321_v46 }
  0x94   : > { %3962 = vmatpush3.bf16.msra.mxu1 %v4214_v9  ;;  %3784 = vmatprep.mubr.bf16.mxu1 %v4733_v21  ;;  %v1875_v21 = vor.u32 %v1874_v63, %v1871_v3 }
  0x95   : > { %3955 = vmatprep.subr.bf16.mxu1 %v4215_v5  ;;  %3924 = vmatprep.subr.bf16.mxu0 %v4214_v9  ;;  %v1891_v20 = vsel %vm4396_vm2, %v1886_v15, %v1890_v38 }
  0x96   : > { %3909 = vmatmul.mubr.bf16.gmra.mrb[4].mxu0 %v4556_v11  ;;  %v1876_v11 = vrot.slane %v1875_v21, 4 }
  0x97   : > { %3925 = vmatpush3.bf16.msra.mxu0 %v4214_v9  ;;  %3912 = vmatprep.mubr.bf16.mxu0 %v4582_v48  ;;  %v4218_v48 = vld [vmem:[%s5137_s1 + $0x230] sm:$0xff]  }
  0x98   : > { %3963 = vmatpush3.bf16.msra.mxu1 %v4215_v5  ;;  %3926 = vmatprep.subr.bf16.mxu0 %v4215_v5 }
  0x99   : > { %3956 = vmatprep.subr.bf16.mxu1 %v4216_v61 }
  0x9b   : > { %3785 = vmatmul.mubr.bf16.gmra.mrb[8].mxu1 %v4740_v24  ;;  %3927 = vmatpush3.bf16.msra.mxu0 %v4215_v5  ;;  %v1881_v24 = vsel %vm4396_vm2, %v1876_v11, %v1880_v60 }
  0x9c   : > { %3964 = vmatpush3.bf16.msra.mxu1 %v4216_v61  ;;  %3788 = vmatprep.mubr.bf16.mxu1 %v4774_v42  ;;  %v3385_v4 = vcombine.low %v1881_v24, %v1891_v20 }
  0x9d   : > { %3957 = vmatprep.subr.bf16.mxu1 %v4217_v49  ;;  %3928 = vmatprep.subr.bf16.mxu0 %v4216_v61 }
  0x9e   : > { %3913 = vmatmul.mubr.bf16.gmra.mrb[8].mxu0 %v4606_v31  ;;  %v2077_v31 = vrot.slane %v4851_v12, 5  ;;  %v2323_v12 = vlaneseq }
  0x9f   : > { %3929 = vmatpush3.bf16.msra.mxu0 %v4216_v61  ;;  %3916 = vmatprep.mubr.bf16.mxu0 %v4635_v59 }
  0xa0   : > { %3965 = vmatpush3.bf16.msra.mxu1 %v4217_v49  ;;  %3930 = vmatprep.subr.bf16.mxu0 %v4217_v49  ;;  %v2079_v59 = vrot.slane %v2077_v31, 4  ;;  %v2324_v9 = vshrl.u32 %v2323_v12, 7 }
  0xa1   : > { %3958 = vmatprep.subr.bf16.mxu1 %v4218_v48 }
  0xa2   : > { %v4949_v61 = vsub.s32 %v2322_v2, %v2324_v9 }
  0xa3   : > { %3789 = vmatmul.mubr.bf16.gmra.mrb[12].mxu1 %v4624_v25  ;;  %3931 = vmatpush3.bf16.msra.mxu0 %v4217_v49  ;;  %v2078_v25 = vsel %vm4597_vm5, %v3394_v36, %v2077_v31 }
  0xa4   : > { %3966 = vmatpush3.bf16.msra.mxu1 %v4218_v48  ;;  %3944 = vmatprep.mubr.bf16.mxu1 %v4759_v19  ;;  %v2081_v19 = vsel %vm4597_vm5, %v2079_v59, %v2080_v22 }
  0xa5   : > { %3959 = vmatprep.subr.bf16.mxu1 %v4219_v34  ;;  %3932 = vmatprep.subr.bf16.mxu0 %v4218_v48  ;;  %v3411_v42 = vcombine.low %v2078_v25, %v2081_v19 }
  0xa6   : > { %3917 = vmatmul.mubr.bf16.gmra.mrb[12].mxu0 %v3385_v4 }
  0xa7   : > { %3933 = vmatpush3.bf16.msra.mxu0 %v4218_v48  ;;  %3936 = vmatprep.mubr.bf16.mxu0 %v4669_v16 }
  0xa8   : > { %3967 = vmatpush3.bf16.msra.mxu1 %v4219_v34  ;;  %3934 = vmatprep.subr.bf16.mxu0 %v4219_v34 }
  0xab   : > { %3945 = vmatmul.mubr.bf16.vlgmr.msra.gmra.mrb[16].mxu1 %v4766_v28  ;;  %3935 = vmatpush3.bf16.msra.mxu0 %v4219_v34 }
  0xac   : > { %3948 = vmatprep.mubr.bf16.mxu1 %v4789_v62 }
  0xae   : > { %3937 = vmatmul.mubr.bf16.vlgmr.msra.gmra.mrb[0].mxu0 %v4676_v32 }
  0xaf   : > { %3940 = vmatprep.mubr.bf16.mxu0 %v4715_v58 }
  0xb3   : > { %3949 = vmatmul.mubr.bf16.gmra.mrb[20].mxu1 %v3411_v42 }
  0xb6   : > { %3941 = vmatmul.mubr.bf16.gmra.mrb[4].mxu0 %v4725_v1 }
 0x15e   : > { %v3778_v16 = vpop.f32.mrb[0].mxu1 }
 0x15f   : > { %v1209_v33 = vpop.f32.mrb[1].mxu1 }
 0x160   : > { %v3779_v28 = vpop.f32.mrb[2].mxu1 }
 0x161   : > { %v4926_v39 = vpop.f32.mrb[3].mxu1 }
 0x166   : > { %v4928_v17 = vpop.f32.mrb[4].mxu1 }
 0x167   : > { %v4930_v57 = vpop.f32.mrb[5].mxu1 }
 0x168   : > { %v4932_v10 = vpop.f32.mrb[6].mxu1 }
 0x169   : > { %v4934_v62 = vpop.f32.mrb[7].mxu1 }
 0x16e   : > { %v3786_v30 = vpop.f32.mrb[8].mxu1 }
 0x16f   : > { %v1241_v32 = vpop.f32.mrb[9].mxu1 }
 0x170   : > { %v3787_v47 = vpop.f32.mrb[10].mxu1 }
 0x171   : > { %v1244_v58 = vpop.f32.mrb[11].mxu1  ;;  %v3914_v50 = vpop.f32.mrb[8].mxu0 }
 0x172   : > { %v3976_v7 = vadd.f32 %v3914_v50, %v3786_v30  ;;  %v2027_v1 = vpop.f32.mrb[9].mxu0 }
 0x173   : > { %v3978_v8 = vadd.f32 %v2027_v1, %v1241_v32  ;;  %v3915_v0 = vpop.f32.mrb[10].mxu0 }
 0x174   : > { %v3980_v56 = vadd.f32 %v3915_v0, %v3787_v47  ;;  %v2030_v23 = vpop.f32.mrb[11].mxu0 }
 0x175   : > { %v3982_v29 = vadd.f32 %v2030_v23, %v1244_v58 }
 0x176   : > { %v3790_v14 = vpop.f32.mrb[12].mxu1 }
 0x177   : > { %v1257_v52 = vpop.f32.mrb[13].mxu1 }
 0x178   : > { %v3791_v53 = vpop.f32.mrb[14].mxu1 }
 0x179   : > { %v1260_v54 = vpop.f32.mrb[15].mxu1  ;;  %v3918_v35 = vpop.f32.mrb[12].mxu0 }
 0x17a   : > { %v4936_v13 = vadd.f32 %v3918_v35, %v3790_v14  ;;  %v2043_v51 = vpop.f32.mrb[13].mxu0 }
 0x17b   : > { %v4938_v55 = vadd.f32 %v2043_v51, %v1257_v52  ;;  %v3919_v6 = vpop.f32.mrb[14].mxu0 }
 0x17c   : > { %v4940_v43 = vadd.f32 %v3919_v6, %v3791_v53  ;;  %v2046_v27 = vpop.f32.mrb[15].mxu0 }
 0x17d   : > { %v4947_v45 = vadd.f32 %v2046_v27, %v1260_v54 }
 0x17e   : > { %v3946_v5 = vpop.f32.mrb[16].mxu1 }
 0x17f   : > { %v3977_v3 = vadd.f32 %v3976_v7, %v3946_v5  ;;  %v2217_v63 = vpop.f32.mrb[17].mxu1 }
 0x180   : > { %v3979_v60 = vadd.f32 %v3978_v8, %v2217_v63  ;;  %v3947_v44 = vpop.f32.mrb[18].mxu1 }
 0x181   : > { %v2281_v41 = vadd.f32 %v3977_v3, %v4945_v40  ;;  %v3981_v49 = vadd.f32 %v3980_v56, %v3947_v44  ;;  %v2220_v21 = vpop.f32.mrb[19].mxu1  ;;  %v3938_v11 = vpop.f32.mrb[0].mxu0 }
 0x182   : > { %v2279_v18 = vadd.f32 %v3979_v60, %v4945_v40  ;;  %v3983_v26 = vadd.f32 %v3982_v29, %v2220_v21  ;;  %v3968_v48 = vadd.f32 %v3938_v11, %v3778_v16  ;;  %v2185_v24 = vpop.f32.mrb[1].mxu0 }
 0x183   : > { %v2297_v15 = vmax.f32 %v2281_v41, 0.0  ;;  %v2282_v38 = vadd.f32 %v3981_v49, %v4945_v40  ;;  %v3969_v31 = vadd.f32 %v2185_v24, %v1209_v33  ;;  %v3939_v36 = vpop.f32.mrb[2].mxu0 }
 0x184   : > { %v2295_v20 = vmax.f32 %v2279_v18, 0.0  ;;  %v2273_v22 = vadd.f32 %v3968_v48, %v4945_v40  ;;  %v3970_v42 = vadd.f32 %v3939_v36, %v3779_v28  ;;  %v4959_v30 = vpop.f32.mrb[3].mxu0  ;;  %v4966_v33 = vadd.f32 %v3983_v26, %v4945_v40 }
 0x185   : > { %v2489_v34 = vcombine.high %v2297_v15, %v2297_v15  ;;  %v2496_v4 = vrot.slane %v2297_v15, %v4949_v61  ;;  %v4955_v59 = vmax.f32 %v2282_v38, 0.0  ;;  %v2271_v58 = vadd.f32 %v3969_v31, %v4945_v40 }
 0x186   : > { %v2455_v25 = vcombine.high %v2295_v20, %v2295_v20  ;;  %v2462_v19 = vrot.slane %v2295_v20, %v4949_v61  ;;  %v4961_v32 = vpop.f32.mrb[20].mxu1  ;;  %v2289_v7 = vmax.f32 %v2273_v22, 0.0  ;;  %v2274_v14 = vadd.f32 %v3970_v42, %v4945_v40 }
 0x187   : > { %v2503_v16 = vrot.slane %v2489_v34, %v4949_v61  ;;  %v2504_v47 = vcombine.high %v2496_v4, %v2496_v4  ;;  %v4968_v50 = vpop.f32.mrb[21].mxu1  ;;  %v2287_v23 = vmax.f32 %v2271_v58, 0.0  ;;  %v2506_v29 = vcombine.high %v4955_v59, %v4955_v59 }
 0x188   : > { %v2469_v1 = vrot.slane %v2455_v25, %v4949_v61  ;;  %v2470_v8 = vcombine.high %v2462_v19, %v2462_v19  ;;  %v2671_v0 = vmax.f32 %v2462_v19, %v2496_v4  ;;  %v4971_v28 = vpop.f32.mrb[22].mxu1  ;;  %v2353_v53 = vcombine.high %v2289_v7, %v2289_v7 }
 0x189   : > { %v2505_v56 = vcombine.high %v2503_v16, %v2503_v16  ;;  %v4976_v52 = vpop.f32.mrb[23].mxu1  ;;  %v2360_v54 = vrot.slane %v2289_v7, %v4949_v61  ;;  %v2319_v12 = vcombine.high %v2287_v23, %v2287_v23  ;;  %v2326_v35 = vrot.slane %v2287_v23, %v4949_v61  ;;  %v4980_v2 = vpop.f32.mrb[4].mxu0 }
 0x18a   : > { %v2471_v37 = vcombine.high %v2469_v1, %v2469_v1  ;;  %v2672_v46 = vmax.f32 %v2470_v8, %v2504_v47  ;;  %v2673_v51 = vmax.f32 %v2469_v1, %v2503_v16  ;;  %v3437_v6 = vrot.slane %v2671_v0, 9  ;;  %v4983_v63 = vpop.f32.mrb[5].mxu0 }
 0x18b   : > { %v2367_v9 = vrot.slane %v2353_v53, %v4949_v61  ;;  %v2368_v27 = vcombine.high %v2360_v54, %v2360_v54  ;;  %v2333_v60 = vrot.slane %v2319_v12, %v4949_v61  ;;  %v2334_v44 = vcombine.high %v2326_v35, %v2326_v35  ;;  %v4986_v21 = vpop.f32.mrb[6].mxu0 }
 0x18c   : > { %v2674_v5 = vmax.f32 %v2471_v37, %v2505_v56  ;;  %v3438_v3 = vrot.slane %v2672_v46, 9  ;;  %v2655_v41 = vmax.f32 %v2326_v35, %v2360_v54  ;;  %v3439_v49 = vrot.slane %v2673_v51, 9  ;;  %v4988_v38 = vpop.f32.mrb[7].mxu0 }
 0x18d   : > { %v2369_v18 = vcombine.high %v2367_v9, %v2367_v9  ;;  %v2831_v11 = vmax.f32 %v2671_v0, %v3437_v6  ;;  %v2335_v48 = vcombine.high %v2333_v60, %v2333_v60  ;;  %v2656_v24 = vmax.f32 %v2334_v44, %v2368_v27 }
 0x18e   : > { %v3440_v26 = vrot.slane %v2674_v5, 9  ;;  %v2832_v15 = vmax.f32 %v2672_v46, %v3438_v3  ;;  %v2657_v20 = vmax.f32 %v2333_v60, %v2367_v9  ;;  %v3421_v34 = vrot.slane %v2655_v41, 9 }
 0x18f   : > { %v2833_v4 = vmax.f32 %v2673_v51, %v3439_v49  ;;  %v3504_v36 = vpack.c.bf16 %v2831_v11, %v2831_v11  ;;  %v2658_v25 = vmax.f32 %v2335_v48, %v2369_v18  ;;  %v3422_v19 = vrot.slane %v2656_v24, 9 }
 0x190   : > { %v2834_v31 = vmax.f32 %v2674_v5, %v3440_v26  ;;  %v3505_v22 = vpack.c.bf16 %v2832_v15, %v2832_v15  ;;  %v3423_v42 = vrot.slane %v2657_v20, 9  ;;  %v2815_v16 = vmax.f32 %v2655_v41, %v3421_v34 }
 0x191   : > { %v3506_v47 = vpack.c.bf16 %v2833_v4, %v2833_v4  ;;  %v2991_v7 = vunpack.c.l.b16 %v3504_v36  ;;  %v3424_v8 = vrot.slane %v2658_v25, 9  ;;  %v2816_v0 = vmax.f32 %v2656_v24, %v3422_v19 }
 0x192   : > { %v3507_v58 = vpack.c.bf16 %v2834_v31, %v2834_v31  ;;  %v2992_v1 = vunpack.c.l.b16 %v3505_v22  ;;  %v2817_v56 = vmax.f32 %v2657_v20, %v3423_v42  ;;  %v3488_v23 = vpack.c.bf16 %v2815_v16, %v2815_v16 }
 0x193   : > { %v2993_v53 = vunpack.c.l.b16 %v3506_v47  ;;  %v2290_v46 = vmax.f32 %v2274_v14, 0.0  ;;  %v2818_v12 = vmax.f32 %v2658_v25, %v3424_v8  ;;  %v3489_v35 = vpack.c.bf16 %v2816_v0, %v2816_v0 }
 0x194   : > { %v2994_v54 = vunpack.c.l.b16 %v3507_v58  ;;  %v3042_v37 = vrot.slane %v2992_v1, 7  ;;  %v3490_v51 = vpack.c.bf16 %v2817_v56, %v2817_v56  ;;  %v2513_v6 = vrot.slane %v4955_v59, %v4949_v61 }
 0x195   : > { %v3044_v27 = vrot.slane %v2993_v53, 6  ;;  %v2370_v3 = vcombine.high %v2290_v46, %v2290_v46  ;;  %v3491_v60 = vpack.c.bf16 %v2818_v12, %v2818_v12  ;;  %v2976_v44 = vunpack.c.l.b16 %v3489_v35 }
 0x196   : > { %v3043_v9 = vsel %vm3008_vm6, %v3042_v37, %v2991_v7  ;;  %v3046_v5 = vrot.slane %v2994_v54, 5  ;;  %v2977_v41 = vunpack.c.l.b16 %v3490_v51  ;;  %v2377_v49 = vrot.slane %v2290_v46, %v4949_v61 }
 0x197   : > { %v2975_v18 = vunpack.c.l.b16 %v3488_v23  ;;  %v3045_v26 = vsel %vm3011_vm7, %v3044_v27, %v3043_v9  ;;  %v2384_v14 = vrot.slane %v2370_v3, %v4949_v61  ;;  %v2520_v11 = vrot.slane %v2506_v29, %v4949_v61 }
 0x198   : > { %v2978_v15 = vunpack.c.l.b16 %v3491_v60  ;;  %v3007_v48 = vrot.slane %v2976_v44, 7  ;;  %v3010_v24 = vrot.slane %v2977_v41, 6  ;;  %v2521_v20 = vcombine.high %v2513_v6, %v2513_v6 }
 0x199   : > { %v2385_v34 = vcombine.high %v2377_v49, %v2377_v49  ;;  %v2522_v4 = vcombine.high %v2520_v11, %v2520_v11  ;;  %v3971_v31 = vadd.f32 %v4959_v30, %v4926_v39  ;;  %v2296_v36 = vmax.f32 %v4966_v33, 0.0 }
 0x19a   : > { %v3009_v22 = vsel %vm3008_vm6, %v3007_v48, %v2975_v18  ;;  %v3013_v25 = vrot.slane %v2978_v15, 5  ;;  %v5005_v19 = vsel %vm3014_vm8, %v3046_v5, %v3045_v26  ;;  %v3972_v59 = vadd.f32 %v4980_v2, %v4928_v17 }
 0x19b   : > { %v3012_v29 = vsel %vm3011_vm7, %v3010_v24, %v3009_v22  ;;  %v2272_v42 = vadd.f32 %v3971_v31, %v4945_v40  ;;  %v2472_v16 = vcombine.high %v2296_v36, %v2296_v36  ;;  %v2479_v47 = vrot.slane %v2296_v36, %v4949_v61 }
 0x19c   : > { %v5013_v39 = vsel %vm3014_vm8, %v3013_v25, %v3012_v29  ;;  %v2277_v30 = vadd.f32 %v3972_v59, %v4945_v40  ;;  %v3985_v33 = vadd.f32 %v4936_v13, %v4961_v32  ;;  %v3973_v58 = vadd.f32 %v4983_v63, %v4930_v57 }
 0x19d   : > { %v2288_v7 = vmax.f32 %v2272_v42, 0.0  ;;  %v2486_v17 = vrot.slane %v2472_v16, %v4949_v61  ;;  %v2487_v2 = vcombine.high %v2479_v47, %v2479_v47  ;;  %v2675_v1 = vmax.f32 %v2479_v47, %v2513_v6 }
 0x19e   : > { %v2386_v8 = vcombine.high %v2384_v14, %v2384_v14  ;;  %v2293_v0 = vmax.f32 %v2277_v30, 0.0  ;;  %v5023_v56 = vadd.f32 %v3985_v33, %v4945_v40  ;;  %v5027_v23 = vadd.f32 %v4938_v55, %v4968_v50 }
 0x19f   : > { %v2336_v13 = vcombine.high %v2288_v7, %v2288_v7  ;;  %v2343_v32 = vrot.slane %v2288_v7, %v4949_v61  ;;  %v2488_v57 = vcombine.high %v2486_v17, %v2486_v17  ;;  %v2676_v63 = vmax.f32 %v2487_v2, %v2521_v20 }
 0x1a0   : > { %v2677_v53 = vmax.f32 %v2486_v17, %v2520_v11  ;;  %v3441_v54 = vrot.slane %v2675_v1, 9  ;;  %v2421_v37 = vcombine.high %v2293_v0, %v2293_v0  ;;  %v5031_v46 = vadd.f32 %v3973_v58, %v4945_v40 }
 0x1a1   : > { %v2350_v55 = vrot.slane %v2336_v13, %v4949_v61  ;;  %v2351_v50 = vcombine.high %v2343_v32, %v2343_v32  ;;  %v2659_v12 = vmax.f32 %v2343_v32, %v2377_v49  ;;  %v2678_v35 = vmax.f32 %v2488_v57, %v2522_v4 }
 0x1a2   : > { %v3442_v51 = vrot.slane %v2676_v63, 9  ;;  %v3443_v6 = vrot.slane %v2677_v53, 9  ;;  %v2835_v9 = vmax.f32 %v2675_v1, %v3441_v54  ;;  %v5041_v27 = vrot.slane %v2293_v0, %v4949_v61 }
 0x1a3   : > { %v2352_v5 = vcombine.high %v2350_v55, %v2350_v55  ;;  %v2660_v3 = vmax.f32 %v2351_v50, %v2385_v34  ;;  %v2661_v60 = vmax.f32 %v2350_v55, %v2384_v14  ;;  %v3425_v44 = vrot.slane %v2659_v12, 9 }
 0x1a4   : > { %v3444_v41 = vrot.slane %v2678_v35, 9  ;;  %v2836_v18 = vmax.f32 %v2676_v63, %v3442_v51  ;;  %v2837_v49 = vmax.f32 %v2677_v53, %v3443_v6  ;;  %v3508_v26 = vpack.c.bf16 %v2835_v9, %v2835_v9 }
 0x1a5   : > { %v2662_v11 = vmax.f32 %v2352_v5, %v2386_v8  ;;  %v3426_v15 = vrot.slane %v2660_v3, 9  ;;  %v3427_v48 = vrot.slane %v2661_v60, 9  ;;  %v2819_v24 = vmax.f32 %v2659_v12, %v3425_v44 }
 0x1a6   : > { %v2838_v20 = vmax.f32 %v2678_v35, %v3444_v41  ;;  %v3509_v4 = vpack.c.bf16 %v2836_v18, %v2836_v18  ;;  %v3510_v31 = vpack.c.bf16 %v2837_v49, %v2837_v49  ;;  %v2995_v34 = vunpack.c.l.b16 %v3508_v26 }
 0x1a7   : > { %v3428_v14 = vrot.slane %v2662_v11, 9  ;;  %v2820_v36 = vmax.f32 %v2660_v3, %v3426_v15  ;;  %v2821_v22 = vmax.f32 %v2661_v60, %v3427_v48  ;;  %v3492_v25 = vpack.c.bf16 %v2819_v24, %v2819_v24 }
 0x1a8   : > { %v3511_v59 = vpack.c.bf16 %v2838_v20, %v2838_v20  ;;  %v2996_v29 = vunpack.c.l.b16 %v3509_v4  ;;  %v2997_v42 = vunpack.c.l.b16 %v3510_v31  ;;  %v3048_v16 = vrot.slane %v2995_v34, 4 }
 0x1a9   : > { %v2822_v47 = vmax.f32 %v2662_v11, %v3428_v14  ;;  %v3493_v30 = vpack.c.bf16 %v2820_v36, %v2820_v36  ;;  %v3494_v33 = vpack.c.bf16 %v2821_v22, %v2821_v22  ;;  %v2979_v58 = vunpack.c.l.b16 %v3492_v25 }
 0x1aa   : > { %v2998_v7 = vunpack.c.l.b16 %v3511_v59  ;;  %v3049_v17 = vsel %vm3017_vm9, %v3048_v16, %v5005_v19  ;;  %v3050_v2 = vrot.slane %v2996_v29, 3  ;;  %v2435_v1 = vrot.slane %v2421_v37, %v4949_v61 }
 0x1ab   : > { %v3495_v8 = vpack.c.bf16 %v2822_v47, %v2822_v47  ;;  %v2980_v0 = vunpack.c.l.b16 %v3493_v30  ;;  %v2981_v13 = vunpack.c.l.b16 %v3494_v33  ;;  %v3016_v32 = vrot.slane %v2979_v58, 4 }
 0x1ac   : > { %v3051_v57 = vsel %vm3020_vm10, %v3050_v2, %v3049_v17  ;;  %v3052_v63 = vrot.slane %v2997_v42, 2  ;;  %v3054_v53 = vrot.slane %v2998_v7, 1  ;;  %v2436_v54 = vcombine.high %v5041_v27, %v5041_v27 }
 0x1ad   : > { %v2982_v55 = vunpack.c.l.b16 %v3495_v8  ;;  %v3018_v50 = vsel %vm3017_vm9, %v3016_v32, %v5013_v39  ;;  %v3019_v19 = vrot.slane %v2980_v0, 3  ;;  %v3022_v12 = vrot.slane %v2981_v13, 2 }
 0x1ae   : > { %v3053_v37 = vsel %vm3023_vm11, %v3052_v63, %v3051_v57  ;;  %v2301_v35 = vmax.f32 %v5023_v56, 0.0  ;;  %v2291_v51 = vmax.f32 %v5031_v46, 0.0  ;;  %v2283_v6 = vadd.f32 %v5027_v23, %v4945_v40 }
 0x1af   : > { %v3021_v9 = vsel %vm3020_vm10, %v3019_v19, %v3018_v50  ;;  %v3025_v39 = vrot.slane %v2982_v55, 1  ;;  %v3055_v5 = vsel %vm3026_vm12, %v3054_v53, %v3053_v37  ;;  %v3974_v3 = vadd.f32 %v4986_v21, %v4932_v10 }
 0x1b0   : > { %v3024_v56 = vsel %vm3023_vm11, %v3022_v12, %v3021_v9  ;;  %v3072_v46 = vpack.c.b16 %v3055_v5, %v3055_v5  ;;  %v2557_v60 = vcombine.high %v2301_v35, %v2301_v35  ;;  %v2564_v23 = vrot.slane %v2301_v35, %v4949_v61 }
 0x1b1   : > { %v3027_v44 = vsel %vm3026_vm12, %v3025_v39, %v3024_v56  ;;  %v2387_v41 = vcombine.high %v2291_v51, %v2291_v51  ;;  %v2394_v18 = vrot.slane %v2291_v51, %v4949_v61  ;;  %v2299_v49 = vmax.f32 %v2283_v6, 0.0 }
 0x1b2   : > { %v3070_v26 = vpack.c.b16 %v3027_v44, %v3027_v44  ;;  %3080 = vst [vmem:[%s5064_s21 + $0x8] sm:$0xf] %v3072_v46  ;;  %v2437_v11 = vcombine.high %v2435_v1, %v2435_v1  ;;  %v2571_v15 = vrot.slane %v2557_v60, %v4949_v61  ;;  %v2572_v20 = vcombine.high %v2564_v23, %v2564_v23 }
 0x1b3   : > { %v2401_v10 = vrot.slane %v2387_v41, %v4949_v61  ;;  %v2402_v21 = vcombine.high %v2394_v18, %v2394_v18  ;;  %v2663_v48 = vmax.f32 %v2394_v18, %v5041_v27  ;;  %v2523_v24 = vcombine.high %v2299_v49, %v2299_v49 }
 0x1b4   : > { %3078 = vst [vmem:[%s5064_s21] sm:$0xf] %v3070_v26  ;;  %v2530_v4 = vrot.slane %v2299_v49, %v4949_v61  ;;  %v2278_v31 = vadd.f32 %v3974_v3, %v4945_v40  ;;  %v3989_v34 = vadd.f32 %v4940_v43, %v4971_v28  ;;  %v2573_v59 = vcombine.high %v2571_v15, %v2571_v15 }
 0x1b5   : > { %v2403_v14 = vcombine.high %v2401_v10, %v2401_v10  ;;  %v2664_v36 = vmax.f32 %v2402_v21, %v2436_v54  ;;  %v2665_v22 = vmax.f32 %v2401_v10, %v2435_v1  ;;  %v3429_v25 = vrot.slane %v2663_v48, 9 }
 0x1b6   : > { %v2537_v29 = vrot.slane %v2523_v24, %v4949_v61  ;;  %v2538_v42 = vcombine.high %v2530_v4, %v2530_v4  ;;  %v2679_v16 = vmax.f32 %v2530_v4, %v2564_v23  ;;  %v2294_v12 = vmax.f32 %v2278_v31, 0.0 }
 0x1b7   : > { %v2666_v27 = vmax.f32 %v2403_v14, %v2437_v11  ;;  %v3430_v47 = vrot.slane %v2664_v36, 9  ;;  %v3431_v30 = vrot.slane %v2665_v22, 9  ;;  %v2823_v33 = vmax.f32 %v2663_v48, %v3429_v25 }
 0x1b8   : > { %v2539_v58 = vcombine.high %v2537_v29, %v2537_v29  ;;  %v2680_v7 = vmax.f32 %v2538_v42, %v2572_v20  ;;  %v2681_v17 = vmax.f32 %v2537_v29, %v2571_v15  ;;  %v3445_v2 = vrot.slane %v2679_v16, 9 }
 0x1b9   : > { %v3432_v8 = vrot.slane %v2666_v27, 9  ;;  %v2824_v0 = vmax.f32 %v2664_v36, %v3430_v47  ;;  %v2825_v43 = vmax.f32 %v2665_v22, %v3431_v30  ;;  %v3496_v63 = vpack.c.bf16 %v2823_v33, %v2823_v33 }
 0x1ba   : > { %v2682_v28 = vmax.f32 %v2539_v58, %v2573_v59  ;;  %v3446_v13 = vrot.slane %v2680_v7, 9  ;;  %v3447_v1 = vrot.slane %v2681_v17, 9  ;;  %v2839_v32 = vmax.f32 %v2679_v16, %v3445_v2 }
 0x1bb   : > { %v2826_v57 = vmax.f32 %v2666_v27, %v3432_v8  ;;  %v3497_v53 = vpack.c.bf16 %v2824_v0, %v2824_v0  ;;  %v3498_v54 = vpack.c.bf16 %v2825_v43, %v2825_v43  ;;  %v2983_v3 = vunpack.c.l.b16 %v3496_v63 }
 0x1bc   : > { %v3448_v55 = vrot.slane %v2682_v28, 9  ;;  %v2840_v50 = vmax.f32 %v2680_v7, %v3446_v13  ;;  %v2841_v19 = vmax.f32 %v2681_v17, %v3447_v1  ;;  %v3512_v6 = vpack.c.bf16 %v2839_v32, %v2839_v32 }
 0x1bd   : > { %v3499_v37 = vpack.c.bf16 %v2826_v57, %v2826_v57  ;;  %v2984_v35 = vunpack.c.l.b16 %v3497_v53  ;;  %v2985_v51 = vunpack.c.l.b16 %v3498_v54  ;;  %v2438_v18 = vcombine.high %v2294_v12, %v2294_v12 }
 0x1be   : > { %v2842_v9 = vmax.f32 %v2682_v28, %v3448_v55  ;;  %v3513_v39 = vpack.c.bf16 %v2840_v50, %v2840_v50  ;;  %v3514_v5 = vpack.c.bf16 %v2841_v19, %v2841_v19  ;;  %v2999_v11 = vunpack.c.l.b16 %v3512_v6 }
 0x1bf   : > { %v2986_v56 = vunpack.c.l.b16 %v3499_v37  ;;  %v3028_v46 = vrot.slane %v2984_v35, 7  ;;  %v3030_v60 = vrot.slane %v2985_v51, 6  ;;  %v2286_v15 = vadd.f32 %v3989_v34, %v4945_v40 }
 0x1c0   : > { %v3515_v23 = vpack.c.bf16 %v2842_v9, %v2842_v9  ;;  %v3000_v44 = vunpack.c.l.b16 %v3513_v39  ;;  %v3001_v41 = vunpack.c.l.b16 %v3514_v5  ;;  %v3975_v4 = vadd.f32 %v4988_v38, %v4934_v62 }
 0x1c1   : > { %v3029_v49 = vsel %vm3008_vm6, %v3028_v46, %v2983_v3  ;;  %v3032_v26 = vrot.slane %v2986_v56, 5  ;;  %v2302_v20 = vmax.f32 %v2286_v15, 0.0  ;;  %v3991_v14 = vadd.f32 %v4947_v45, %v4976_v52 }
 0x1c2   : > { %v3031_v10 = vsel %vm3011_vm7, %v3030_v60, %v3029_v49  ;;  %v3002_v21 = vunpack.c.l.b16 %v3515_v23  ;;  %v3056_v48 = vrot.slane %v3000_v44, 7  ;;  %v3058_v24 = vrot.slane %v3001_v41, 6 }
 0x1c3   : > { %v5090_v31 = vsel %vm3014_vm8, %v3032_v26, %v3031_v10  ;;  %v2445_v25 = vrot.slane %v2294_v12, %v4949_v61  ;;  %v2574_v59 = vcombine.high %v2302_v20, %v2302_v20  ;;  %v2276_v29 = vadd.f32 %v3975_v4, %v4945_v40 }
 0x1c4   : > { %v3057_v36 = vsel %vm3008_vm6, %v3056_v48, %v2999_v11  ;;  %v3060_v22 = vrot.slane %v3002_v21, 5  ;;  %v2581_v42 = vrot.slane %v2302_v20, %v4949_v61  ;;  %v2284_v62 = vadd.f32 %v3991_v14, %v4945_v40 }
 0x1c5   : > { %v3059_v34 = vsel %vm3011_vm7, %v3058_v24, %v3057_v36  ;;  %v2452_v16 = vrot.slane %v2438_v18, %v4949_v61  ;;  %v2292_v45 = vmax.f32 %v2276_v29, 0.0  ;;  %v2588_v52 = vrot.slane %v2574_v59, %v4949_v61 }
 0x1c6   : > { %v5101_v38 = vsel %vm3014_vm8, %v3060_v22, %v3059_v34  ;;  %v2300_v27 = vmax.f32 %v2284_v62, 0.0  ;;  %v2453_v47 = vcombine.high %v2445_v25, %v2445_v25  ;;  %v2589_v58 = vcombine.high %v2581_v42, %v2581_v42 }
 0x1c7   : > { %v2404_v30 = vcombine.high %v2292_v45, %v2292_v45  ;;  %v2411_v33 = vrot.slane %v2292_v45, %v4949_v61  ;;  %v2454_v2 = vcombine.high %v2452_v16, %v2452_v16  ;;  %v2590_v43 = vcombine.high %v2588_v52, %v2588_v52 }
 0x1c8   : > { %v2540_v7 = vcombine.high %v2300_v27, %v2300_v27  ;;  %v2547_v17 = vrot.slane %v2300_v27, %v4949_v61 }
 0x1c9   : > { %v2418_v40 = vrot.slane %v2404_v30, %v4949_v61  ;;  %v2419_v8 = vcombine.high %v2411_v33, %v2411_v33  ;;  %v2667_v0 = vmax.f32 %v2411_v33, %v2445_v25 }
 0x1ca   : > { %v2554_v28 = vrot.slane %v2540_v7, %v4949_v61  ;;  %v2555_v13 = vcombine.high %v2547_v17, %v2547_v17  ;;  %v2683_v1 = vmax.f32 %v2547_v17, %v2581_v42 }
 0x1cb   : > { %v2420_v32 = vcombine.high %v2418_v40, %v2418_v40  ;;  %v2668_v57 = vmax.f32 %v2419_v8, %v2453_v47  ;;  %v2669_v63 = vmax.f32 %v2418_v40, %v2452_v16  ;;  %v3433_v53 = vrot.slane %v2667_v0, 9 }
 0x1cc   : > { %v2556_v54 = vcombine.high %v2554_v28, %v2554_v28  ;;  %v2684_v55 = vmax.f32 %v2555_v13, %v2589_v58  ;;  %v2685_v50 = vmax.f32 %v2554_v28, %v2588_v52  ;;  %v3449_v19 = vrot.slane %v2683_v1, 9 }
 0x1cd   : > { %v2670_v12 = vmax.f32 %v2420_v32, %v2454_v2  ;;  %v3434_v37 = vrot.slane %v2668_v57, 9  ;;  %v3435_v35 = vrot.slane %v2669_v63, 9  ;;  %v2827_v51 = vmax.f32 %v2667_v0, %v3433_v53 }
 0x1ce   : > { %v2686_v6 = vmax.f32 %v2556_v54, %v2590_v43  ;;  %v3450_v9 = vrot.slane %v2684_v55, 9  ;;  %v3451_v39 = vrot.slane %v2685_v50, 9  ;;  %v2843_v5 = vmax.f32 %v2683_v1, %v3449_v19 }
 0x1cf   : > { %v3436_v3 = vrot.slane %v2670_v12, 9  ;;  %v2828_v61 = vmax.f32 %v2668_v57, %v3434_v37  ;;  %v2829_v56 = vmax.f32 %v2669_v63, %v3435_v35  ;;  %v3500_v46 = vpack.c.bf16 %v2827_v51, %v2827_v51 }
 0x1d0   : > { %v3452_v60 = vrot.slane %v2686_v6, 9  ;;  %v2844_v23 = vmax.f32 %v2684_v55, %v3450_v9  ;;  %v2845_v44 = vmax.f32 %v2685_v50, %v3451_v39  ;;  %v3516_v41 = vpack.c.bf16 %v2843_v5, %v2843_v5 }
 0x1d1   : > { %v2830_v18 = vmax.f32 %v2670_v12, %v3436_v3  ;;  %v3501_v49 = vpack.c.bf16 %v2828_v61, %v2828_v61  ;;  %v3502_v26 = vpack.c.bf16 %v2829_v56, %v2829_v56  ;;  %v2987_v11 = vunpack.c.l.b16 %v3500_v46 }
 0x1d2   : > { %v2846_v15 = vmax.f32 %v2686_v6, %v3452_v60  ;;  %v3517_v10 = vpack.c.bf16 %v2844_v23, %v2844_v23  ;;  %v3518_v21 = vpack.c.bf16 %v2845_v44, %v2845_v44  ;;  %v3003_v48 = vunpack.c.l.b16 %v3516_v41 }
 0x1d3   : > { %v3503_v24 = vpack.c.bf16 %v2830_v18, %v2830_v18  ;;  %v2988_v20 = vunpack.c.l.b16 %v3501_v49  ;;  %v2989_v4 = vunpack.c.l.b16 %v3502_v26  ;;  %v3034_v14 = vrot.slane %v2987_v11, 4 }
 0x1d4   : > { %v3519_v36 = vpack.c.bf16 %v2846_v15, %v2846_v15  ;;  %v3004_v22 = vunpack.c.l.b16 %v3517_v10  ;;  %v3005_v34 = vunpack.c.l.b16 %v3518_v21  ;;  %v3062_v25 = vrot.slane %v3003_v48, 4 }
 0x1d5   : > { %v2990_v59 = vunpack.c.l.b16 %v3503_v24  ;;  %v3035_v29 = vsel %vm3017_vm9, %v3034_v14, %v5090_v31  ;;  %v3036_v42 = vrot.slane %v2988_v20, 3  ;;  %v3038_v62 = vrot.slane %v2989_v4, 2 }
 0x1d6   : > { %v3006_v16 = vunpack.c.l.b16 %v3519_v36  ;;  %v3063_v45 = vsel %vm3017_vm9, %v3062_v25, %v5101_v38  ;;  %v3064_v52 = vrot.slane %v3004_v22, 3  ;;  %v3066_v30 = vrot.slane %v3005_v34, 2 }
 0x1d7   : > { %v3037_v27 = vsel %vm3020_vm10, %v3036_v42, %v3035_v29  ;;  %v3040_v47 = vrot.slane %v2990_v59, 1 }
 0x1d8   : > { %v3039_v33 = vsel %vm3023_vm11, %v3038_v62, %v3037_v27  ;;  %v3065_v58 = vsel %vm3020_vm10, %v3064_v52, %v3063_v45  ;;  %v3068_v7 = vrot.slane %v3006_v16, 1 }
 0x1d9   : > { %v3041_v31 = vsel %vm3026_vm12, %v3040_v47, %v3039_v33  ;;  %v3067_v17 = vsel %vm3023_vm11, %v3066_v30, %v3065_v58 }
 0x1da   : > { %v3071_v2 = vpack.c.b16 %v3041_v31, %v3041_v31  ;;  %v3069_v40 = vsel %vm3026_vm12, %v3068_v7, %v3067_v17 }
 0x1db   : > { %v3073_v8 = vpack.c.b16 %v3069_v40, %v3069_v40 }
 0x1dc   : > { %3079 = vst [vmem:[%s5064_s21 + $0x4] sm:$0xf] %v3071_v2 }
 0x1dd   : > { %3081 = vst [vmem:[%s5064_s21 + $0xc] sm:$0xf] %v3073_v8 }
 0x1de PF: > { %s13_s16 = sadd.s32 1, %s4258_s16   ;;  %s5145_s12 = smov %s4250_s14 }
 0x1df   : > { %p10_p7 = scmp.ge.s32.totalorder %s13_s16, 6   ;;  %s5146_s13 = smov %s4254_s15 }
 0x1e0   : > { %s5147_s14 = smov %s5150_s17  ;;  %s5148_s15 = smov %s5154_s18 }
 0x1e1   :  { %12 = sbr.rel (!%p10_p7) target bundleno = 3 (0x3), region = 71 }

// kernel: vgg_forward.9
= control target key start
LH: loop header
LB: loop body
LE: loop exit
PB: predicated region body
PF: predicated region fallthrough
CT: control target
= control target key end

     0   :  { %s2349_s1 = inlined_call_operand.vmem [shape: bf16[2048,128], index: 1, kind: input, shape index: {}]   ;;  %s2350_s0 = inlined_call_operand.vmem [shape: bf16[8,2048], index: 0, kind: input, shape index: {}]   ;;  %s2351_s2 = inlined_call_operand.vmem [shape: f32[1,128], index: 2, kind: input, shape index: {}]   ;;  %s2352_s3 = inlined_call_operand.vmem [shape: bf16[8,128], index: 3, kind: output, shape index: {}]  }
   0x1   :  { %v1771_v0 = vld [vmem:[%s2349_s1 + $0x40] sm:$0xff]   ;;  %v1775_v4 = vld [vmem:[%s2349_s1 + $0x48] sm:$0xff]   ;;  %v1779_v8 = vld [vmem:[%s2349_s1 + $0x50] sm:$0xff]  }
   0x2   :  { %v1772_v1 = vld [vmem:[%s2349_s1 + $0xc0] sm:$0xff]   ;;  %1595 = vmatprep.subr.bf16.mxu0 %v1771_v0  ;;  %v1776_v5 = vld [vmem:[%s2349_s1 + $0xc8] sm:$0xff]   ;;  %v1780_v9 = vld [vmem:[%s2349_s1 + $0xd0] sm:$0xff]  }
   0x3   :  { %v1773_v2 = vld [vmem:[%s2349_s1] sm:$0xff]   ;;  %1617 = vmatprep.subr.bf16.mxu1 %v1772_v1  ;;  %v1777_v6 = vld [vmem:[%s2349_s1 + $0x8] sm:$0xff]   ;;  %v1781_v10 = vld [vmem:[%s2349_s1 + $0x10] sm:$0xff]  }
   0x4   :  { %v1774_v3 = vld [vmem:[%s2349_s1 + $0x80] sm:$0xff]   ;;  %1596 = vmatpush3.bf16.msra.mxu0 %v1773_v2  ;;  %v1778_v7 = vld [vmem:[%s2349_s1 + $0x88] sm:$0xff]   ;;  %v1782_v11 = vld [vmem:[%s2349_s1 + $0x90] sm:$0xff]  }
   0x5   :  { %1618 = vmatpush3.bf16.msra.mxu1 %v1774_v3  ;;  %1597 = vmatprep.subr.bf16.mxu0 %v1775_v4  ;;  %v1783_v12 = vld [vmem:[%s2349_s1 + $0x58] sm:$0xff]   ;;  %v1787_v16 = vld [vmem:[%s2349_s1 + $0x60] sm:$0xff]   ;;  %v1791_v20 = vld [vmem:[%s2349_s1 + $0x68] sm:$0xff]  }
   0x6   :  { %1619 = vmatprep.subr.bf16.mxu1 %v1776_v5  ;;  %v1784_v13 = vld [vmem:[%s2349_s1 + $0xd8] sm:$0xff]   ;;  %v1788_v17 = vld [vmem:[%s2349_s1 + $0xe0] sm:$0xff]   ;;  %v1792_v21 = vld [vmem:[%s2349_s1 + $0xe8] sm:$0xff]  }
   0x7   :  { %v1785_v14 = vld [vmem:[%s2349_s1 + $0x18] sm:$0xff]   ;;  %v1789_v18 = vld [vmem:[%s2349_s1 + $0x20] sm:$0xff]   ;;  %v1793_v22 = vld [vmem:[%s2349_s1 + $0x28] sm:$0xff]  }
   0x8   :  { %1598 = vmatpush3.bf16.msra.mxu0 %v1777_v6  ;;  %v1786_v15 = vld [vmem:[%s2349_s1 + $0x98] sm:$0xff]   ;;  %v1790_v19 = vld [vmem:[%s2349_s1 + $0xa0] sm:$0xff]   ;;  %v1794_v23 = vld [vmem:[%s2349_s1 + $0xa8] sm:$0xff]  }
   0x9   :  { %1620 = vmatpush3.bf16.msra.mxu1 %v1778_v7  ;;  %1599 = vmatprep.subr.bf16.mxu0 %v1779_v8  ;;  %v1795_v24 = vld [vmem:[%s2349_s1 + $0x70] sm:$0xff]   ;;  %v1799_v28 = vld [vmem:[%s2349_s1 + $0x78] sm:$0xff]   ;;  %v21_v32 = vld [vmem:[%s2350_s0] sm:$0xff] }
   0xa   :  { %1621 = vmatprep.subr.bf16.mxu1 %v1780_v9  ;;  %v1796_v25 = vld [vmem:[%s2349_s1 + $0xf0] sm:$0xff]   ;;  %v1800_v29 = vld [vmem:[%s2349_s1 + $0xf8] sm:$0xff]   ;;  %v22_v33 = vld [vmem:[%s2350_s0 + $0x8] sm:$0xff]  ;;  %v1450_v34 = vcombine.low %v21_v32, %v21_v32  ;;  %v1451_v35 = vcombine.high %v21_v32, %v21_v32 }
   0xb   :  { %v1797_v26 = vld [vmem:[%s2349_s1 + $0x30] sm:$0xff]   ;;  %v1801_v30 = vld [vmem:[%s2349_s1 + $0x38] sm:$0xff]   ;;  %v1452_v36 = vcombine.low %v22_v33, %v22_v33  ;;  %v1453_v37 = vcombine.high %v22_v33, %v22_v33  ;;  %v1807_v38 = vld [vmem:[%s2349_s1 + $0x140] sm:$0xff]  }
   0xc   :  { %1600 = vmatpush3.bf16.msra.mxu0 %v1781_v10  ;;  %v1798_v27 = vld [vmem:[%s2349_s1 + $0xb0] sm:$0xff]   ;;  %v1802_v31 = vld [vmem:[%s2349_s1 + $0xb8] sm:$0xff]   ;;  %v1808_v39 = vld [vmem:[%s2349_s1 + $0x1c0] sm:$0xff]   ;;  %1141 = vmatprep.mubr.bf16.mxu0 %v1451_v35 }
   0xd   :  { %1622 = vmatpush3.bf16.msra.mxu1 %v1782_v11  ;;  %1601 = vmatprep.subr.bf16.mxu0 %v1783_v12  ;;  %v1809_v40 = vld [vmem:[%s2349_s1 + $0x100] sm:$0xff]   ;;  %v1811_v42 = vld [vmem:[%s2349_s1 + $0x148] sm:$0xff]   ;;  %v1815_v46 = vld [vmem:[%s2349_s1 + $0x150] sm:$0xff]  }
   0xe   :  { %1623 = vmatprep.subr.bf16.mxu1 %v1784_v13  ;;  %1181 = vmatprep.mubr.bf16.mxu1 %v1453_v37  ;;  %v1810_v41 = vld [vmem:[%s2349_s1 + $0x180] sm:$0xff]   ;;  %v1812_v43 = vld [vmem:[%s2349_s1 + $0x1c8] sm:$0xff]   ;;  %v1816_v47 = vld [vmem:[%s2349_s1 + $0x1d0] sm:$0xff]  }
   0xf   :  { %v1813_v44 = vld [vmem:[%s2349_s1 + $0x108] sm:$0xff]   ;;  %v1817_v48 = vld [vmem:[%s2349_s1 + $0x110] sm:$0xff]   ;;  %v1819_v50 = vld [vmem:[%s2349_s1 + $0x158] sm:$0xff]  }
  0x10   :  { %1602 = vmatpush3.bf16.msra.mxu0 %v1785_v14  ;;  %v1814_v45 = vld [vmem:[%s2349_s1 + $0x188] sm:$0xff]   ;;  %v1818_v49 = vld [vmem:[%s2349_s1 + $0x190] sm:$0xff]   ;;  %v1820_v51 = vld [vmem:[%s2349_s1 + $0x1d8] sm:$0xff]  }
  0x11   :  { %1624 = vmatpush3.bf16.msra.mxu1 %v1786_v15  ;;  %1603 = vmatprep.subr.bf16.mxu0 %v1787_v16  ;;  %v1821_v52 = vld [vmem:[%s2349_s1 + $0x118] sm:$0xff]   ;;  %v1823_v54 = vld [vmem:[%s2349_s1 + $0x160] sm:$0xff]   ;;  %v1827_v58 = vld [vmem:[%s2349_s1 + $0x168] sm:$0xff]  }
  0x12   :  { %1625 = vmatprep.subr.bf16.mxu1 %v1788_v17  ;;  %v1822_v53 = vld [vmem:[%s2349_s1 + $0x198] sm:$0xff]   ;;  %v1824_v55 = vld [vmem:[%s2349_s1 + $0x1e0] sm:$0xff]   ;;  %v1828_v59 = vld [vmem:[%s2349_s1 + $0x1e8] sm:$0xff]  }
  0x13   :  { %v1825_v56 = vld [vmem:[%s2349_s1 + $0x120] sm:$0xff]   ;;  %v1829_v60 = vld [vmem:[%s2349_s1 + $0x128] sm:$0xff]   ;;  %v1831_v62 = vld [vmem:[%s2349_s1 + $0x170] sm:$0xff]  }
  0x14   :  { %1604 = vmatpush3.bf16.msra.mxu0 %v1789_v18  ;;  %v1826_v57 = vld [vmem:[%s2349_s1 + $0x1a0] sm:$0xff]   ;;  %v1830_v61 = vld [vmem:[%s2349_s1 + $0x1a8] sm:$0xff]   ;;  %v1832_v63 = vld [vmem:[%s2349_s1 + $0x1f0] sm:$0xff]  }
  0x15   :  { %1626 = vmatpush3.bf16.msra.mxu1 %v1790_v19  ;;  %1605 = vmatprep.subr.bf16.mxu0 %v1791_v20  ;;  %v1833_v0 = vld [vmem:[%s2349_s1 + $0x130] sm:$0xff]   ;;  %v1835_v2 = vld [vmem:[%s2349_s1 + $0x178] sm:$0xff]   ;;  %v1843_v12 = vld [vmem:[%s2349_s1 + $0x240] sm:$0xff]  }
  0x16   :  { %1627 = vmatprep.subr.bf16.mxu1 %v1792_v21  ;;  %v1834_v1 = vld [vmem:[%s2349_s1 + $0x1b0] sm:$0xff]   ;;  %v1836_v3 = vld [vmem:[%s2349_s1 + $0x1f8] sm:$0xff]   ;;  %v1844_v13 = vld [vmem:[%s2349_s1 + $0x2c0] sm:$0xff]  }
  0x17   :  { %v1837_v4 = vld [vmem:[%s2349_s1 + $0x138] sm:$0xff]   ;;  %v23_v6 = vld [vmem:[%s2350_s0 + $0x10] sm:$0xff]  ;;  %v1845_v14 = vld [vmem:[%s2349_s1 + $0x200] sm:$0xff]  }
  0x18   :  { %1606 = vmatpush3.bf16.msra.mxu0 %v1793_v22  ;;  %v1838_v5 = vld [vmem:[%s2349_s1 + $0x1b8] sm:$0xff]   ;;  %v1454_v7 = vcombine.low %v23_v6, %v23_v6  ;;  %v1455_v8 = vcombine.high %v23_v6, %v23_v6  ;;  %v1846_v15 = vld [vmem:[%s2349_s1 + $0x280] sm:$0xff]   ;;  %v1847_v16 = vld [vmem:[%s2349_s1 + $0x248] sm:$0xff]  }
  0x19   :  { %1628 = vmatpush3.bf16.msra.mxu1 %v1794_v23  ;;  %1607 = vmatprep.subr.bf16.mxu0 %v1795_v24  ;;  %v24_v9 = vld [vmem:[%s2350_s0 + $0x18] sm:$0xff]  ;;  %v1848_v17 = vld [vmem:[%s2349_s1 + $0x2c8] sm:$0xff]   ;;  %v1851_v20 = vld [vmem:[%s2349_s1 + $0x250] sm:$0xff]  }
  0x1a   :  { %1629 = vmatprep.subr.bf16.mxu1 %v1796_v25  ;;  %v1456_v10 = vcombine.low %v24_v9, %v24_v9  ;;  %v1457_v11 = vcombine.high %v24_v9, %v24_v9  ;;  %v1849_v18 = vld [vmem:[%s2349_s1 + $0x208] sm:$0xff]   ;;  %v1852_v21 = vld [vmem:[%s2349_s1 + $0x2d0] sm:$0xff]   ;;  %v1855_v24 = vld [vmem:[%s2349_s1 + $0x258] sm:$0xff]  }
  0x1b   :  { %v1850_v19 = vld [vmem:[%s2349_s1 + $0x288] sm:$0xff]   ;;  %v1853_v22 = vld [vmem:[%s2349_s1 + $0x210] sm:$0xff]   ;;  %v1856_v25 = vld [vmem:[%s2349_s1 + $0x2d8] sm:$0xff]  }
  0x1c   :  { %1608 = vmatpush3.bf16.msra.mxu0 %v1797_v26  ;;  %v1854_v23 = vld [vmem:[%s2349_s1 + $0x290] sm:$0xff]   ;;  %v1857_v26 = vld [vmem:[%s2349_s1 + $0x218] sm:$0xff]   ;;  %v1863_v32 = vld [vmem:[%s2349_s1 + $0x268] sm:$0xff]  }
  0x1d   :  { %1630 = vmatpush3.bf16.msra.mxu1 %v1798_v27  ;;  %1609 = vmatprep.subr.bf16.mxu0 %v1799_v28  ;;  %v1858_v27 = vld [vmem:[%s2349_s1 + $0x298] sm:$0xff]   ;;  %v1859_v28 = vld [vmem:[%s2349_s1 + $0x260] sm:$0xff]   ;;  %v1864_v33 = vld [vmem:[%s2349_s1 + $0x2e8] sm:$0xff]  }
  0x1e   :  { %1631 = vmatprep.subr.bf16.mxu1 %v1800_v29  ;;  %v1860_v29 = vld [vmem:[%s2349_s1 + $0x2e0] sm:$0xff]   ;;  %v1866_v35 = vld [vmem:[%s2349_s1 + $0x2a8] sm:$0xff]   ;;  %v1868_v37 = vld [vmem:[%s2349_s1 + $0x2f0] sm:$0xff]  }
  0x1f   :  { %v1899_v6 = vld [vmem:[%s2349_s1 + $0x368] sm:$0xff]  }
  0x20   :  { %1610 = vmatpush3.bf16.msra.mxu0 %v1801_v30  ;;  %v1861_v30 = vld [vmem:[%s2349_s1 + $0x220] sm:$0xff]   ;;  %v1902_v9 = vld [vmem:[%s2349_s1 + $0x3a8] sm:$0xff]  }
  0x21   :  { %1632 = vmatpush3.bf16.msra.mxu1 %v1802_v31  ;;  %1639 = vmatprep.subr.bf16.mxu0 %v1807_v38  ;;  %v1862_v31 = vld [vmem:[%s2349_s1 + $0x2a0] sm:$0xff]   ;;  %v1869_v38 = vld [vmem:[%s2349_s1 + $0x230] sm:$0xff]  }
  0x22   :  { %1661 = vmatprep.subr.bf16.mxu1 %v1808_v39  ;;  %v1870_v39 = vld [vmem:[%s2349_s1 + $0x2b0] sm:$0xff]  }
  0x23   :  { %1142 = vmatmul.mubr.bf16.vlgmr.msra.gmra.mrb[0].mxu0 %v1450_v34  ;;  %v1865_v34 = vld [vmem:[%s2349_s1 + $0x228] sm:$0xff]  }
  0x24   :  { %1182 = vmatmul.mubr.bf16.vlgmr.msra.gmra.mrb[0].mxu1 %v1452_v36  ;;  %1640 = vmatpush3.bf16.msra.mxu0 %v1809_v40  ;;  %v1867_v36 = vld [vmem:[%s2349_s1 + $0x270] sm:$0xff]   ;;  %v1871_v40 = vld [vmem:[%s2349_s1 + $0x278] sm:$0xff]  }
  0x25   :  { %1662 = vmatpush3.bf16.msra.mxu1 %v1810_v41  ;;  %1641 = vmatprep.subr.bf16.mxu0 %v1811_v42  ;;  %v1872_v41 = vld [vmem:[%s2349_s1 + $0x2f8] sm:$0xff]  }
  0x26   :  { %1663 = vmatprep.subr.bf16.mxu1 %v1812_v43  ;;  %1221 = vmatprep.mubr.bf16.mxu0 %v1455_v8  ;;  %v1873_v42 = vld [vmem:[%s2349_s1 + $0x238] sm:$0xff]   ;;  %v1901_v8 = vld [vmem:[%s2349_s1 + $0x328] sm:$0xff]  }
  0x27   :  { %1261 = vmatprep.mubr.bf16.mxu1 %v1457_v11  ;;  %v1874_v43 = vld [vmem:[%s2349_s1 + $0x2b8] sm:$0xff]   ;;  %v1904_v11 = vld [vmem:[%s2349_s1 + $0x3f0] sm:$0xff]  }
  0x28   :  { %1642 = vmatpush3.bf16.msra.mxu0 %v1813_v44  ;;  %v25_v44 = vld [vmem:[%s2350_s0 + $0x20] sm:$0xff] }
  0x29   :  { %1664 = vmatpush3.bf16.msra.mxu1 %v1814_v45  ;;  %1643 = vmatprep.subr.bf16.mxu0 %v1815_v46  ;;  %v26_v45 = vld [vmem:[%s2350_s0 + $0x28] sm:$0xff]  ;;  %v1458_v46 = vcombine.low %v25_v44, %v25_v44 }
  0x2a   :  { %1665 = vmatprep.subr.bf16.mxu1 %v1816_v47  ;;  %v1459_v47 = vcombine.high %v25_v44, %v25_v44 }
  0x2c   :  { %1644 = vmatpush3.bf16.msra.mxu0 %v1817_v48  ;;  %v1460_v48 = vcombine.low %v26_v45, %v26_v45 }
  0x2d   :  { %1666 = vmatpush3.bf16.msra.mxu1 %v1818_v49  ;;  %1645 = vmatprep.subr.bf16.mxu0 %v1819_v50  ;;  %v1461_v49 = vcombine.high %v26_v45, %v26_v45  ;;  %v1879_v50 = vld [vmem:[%s2349_s1 + $0x340] sm:$0xff]  }
  0x2e   :  { %1667 = vmatprep.subr.bf16.mxu1 %v1820_v51  ;;  %v1880_v51 = vld [vmem:[%s2349_s1 + $0x3c0] sm:$0xff]  }
  0x30   :  { %1646 = vmatpush3.bf16.msra.mxu0 %v1821_v52  ;;  %v1881_v52 = vld [vmem:[%s2349_s1 + $0x300] sm:$0xff]  }
  0x31   :  { %1668 = vmatpush3.bf16.msra.mxu1 %v1822_v53  ;;  %1647 = vmatprep.subr.bf16.mxu0 %v1823_v54  ;;  %v1882_v53 = vld [vmem:[%s2349_s1 + $0x380] sm:$0xff]   ;;  %v1883_v54 = vld [vmem:[%s2349_s1 + $0x348] sm:$0xff]  }
  0x32   :  { %1669 = vmatprep.subr.bf16.mxu1 %v1824_v55  ;;  %v1884_v55 = vld [vmem:[%s2349_s1 + $0x3c8] sm:$0xff]  }
  0x34   :  { %1648 = vmatpush3.bf16.msra.mxu0 %v1825_v56  ;;  %v1885_v56 = vld [vmem:[%s2349_s1 + $0x308] sm:$0xff]  }
  0x35   :  { %1670 = vmatpush3.bf16.msra.mxu1 %v1826_v57  ;;  %1649 = vmatprep.subr.bf16.mxu0 %v1827_v58  ;;  %v1886_v57 = vld [vmem:[%s2349_s1 + $0x388] sm:$0xff]   ;;  %v1887_v58 = vld [vmem:[%s2349_s1 + $0x350] sm:$0xff]  }
  0x36   :  { %1671 = vmatprep.subr.bf16.mxu1 %v1828_v59  ;;  %v1888_v59 = vld [vmem:[%s2349_s1 + $0x3d0] sm:$0xff]  }
  0x38   :  { %1650 = vmatpush3.bf16.msra.mxu0 %v1829_v60  ;;  %v1889_v60 = vld [vmem:[%s2349_s1 + $0x310] sm:$0xff]  }
  0x39   :  { %1672 = vmatpush3.bf16.msra.mxu1 %v1830_v61  ;;  %1651 = vmatprep.subr.bf16.mxu0 %v1831_v62  ;;  %v1890_v61 = vld [vmem:[%s2349_s1 + $0x390] sm:$0xff]   ;;  %v1891_v62 = vld [vmem:[%s2349_s1 + $0x358] sm:$0xff]  }
  0x3a   :  { %1673 = vmatprep.subr.bf16.mxu1 %v1832_v63  ;;  %v1892_v63 = vld [vmem:[%s2349_s1 + $0x3d8] sm:$0xff]  }
  0x3c   :  { %1652 = vmatpush3.bf16.msra.mxu0 %v1833_v0  ;;  %v1893_v0 = vld [vmem:[%s2349_s1 + $0x318] sm:$0xff]  }
  0x3d   :  { %1674 = vmatpush3.bf16.msra.mxu1 %v1834_v1  ;;  %1653 = vmatprep.subr.bf16.mxu0 %v1835_v2  ;;  %v1894_v1 = vld [vmem:[%s2349_s1 + $0x398] sm:$0xff]   ;;  %v1895_v2 = vld [vmem:[%s2349_s1 + $0x360] sm:$0xff]  }
  0x3e   :  { %1675 = vmatprep.subr.bf16.mxu1 %v1836_v3  ;;  %v1896_v3 = vld [vmem:[%s2349_s1 + $0x3e0] sm:$0xff]  }
  0x40   :  { %1654 = vmatpush3.bf16.msra.mxu0 %v1837_v4  ;;  %v1897_v4 = vld [vmem:[%s2349_s1 + $0x320] sm:$0xff]  }
  0x41   :  { %1676 = vmatpush3.bf16.msra.mxu1 %v1838_v5  ;;  %1683 = vmatprep.subr.bf16.mxu0 %v1843_v12  ;;  %v1898_v5 = vld [vmem:[%s2349_s1 + $0x3a0] sm:$0xff]   ;;  %v1905_v12 = vld [vmem:[%s2349_s1 + $0x330] sm:$0xff]  }
  0x42   :  { %1705 = vmatprep.subr.bf16.mxu1 %v1844_v13  ;;  %v1906_v13 = vld [vmem:[%s2349_s1 + $0x3b0] sm:$0xff]  }
  0x43   :  { %1222 = vmatmul.mubr.bf16.vlgmr.msra.gmra.mrb[4].mxu0 %v1454_v7  ;;  %v1900_v7 = vld [vmem:[%s2349_s1 + $0x3e8] sm:$0xff]  }
  0x44   :  { %1262 = vmatmul.mubr.bf16.vlgmr.msra.gmra.mrb[4].mxu1 %v1456_v10  ;;  %1684 = vmatpush3.bf16.msra.mxu0 %v1845_v14  ;;  %v1903_v10 = vld [vmem:[%s2349_s1 + $0x370] sm:$0xff]   ;;  %v1907_v14 = vld [vmem:[%s2349_s1 + $0x378] sm:$0xff]  }
  0x45   :  { %1706 = vmatpush3.bf16.msra.mxu1 %v1846_v15  ;;  %1685 = vmatprep.subr.bf16.mxu0 %v1847_v16  ;;  %v1908_v15 = vld [vmem:[%s2349_s1 + $0x3f8] sm:$0xff]  }
  0x46   :  { %1707 = vmatprep.subr.bf16.mxu1 %v1848_v17  ;;  %1301 = vmatprep.mubr.bf16.mxu0 %v1459_v47  ;;  %v1909_v16 = vld [vmem:[%s2349_s1 + $0x338] sm:$0xff]  }
  0x47   :  { %1341 = vmatprep.mubr.bf16.mxu1 %v1461_v49  ;;  %v1910_v17 = vld [vmem:[%s2349_s1 + $0x3b8] sm:$0xff]  }
  0x48   :  { %1686 = vmatpush3.bf16.msra.mxu0 %v1849_v18  ;;  %v27_v18 = vld [vmem:[%s2350_s0 + $0x30] sm:$0xff] }
  0x49   :  { %1708 = vmatpush3.bf16.msra.mxu1 %v1850_v19  ;;  %1687 = vmatprep.subr.bf16.mxu0 %v1851_v20  ;;  %v28_v19 = vld [vmem:[%s2350_s0 + $0x38] sm:$0xff]  ;;  %v1462_v20 = vcombine.low %v27_v18, %v27_v18 }
  0x4a   :  { %1709 = vmatprep.subr.bf16.mxu1 %v1852_v21  ;;  %v1463_v21 = vcombine.high %v27_v18, %v27_v18 }
  0x4c   :  { %1688 = vmatpush3.bf16.msra.mxu0 %v1853_v22  ;;  %v1464_v22 = vcombine.low %v28_v19, %v28_v19 }
  0x4d   :  { %1710 = vmatpush3.bf16.msra.mxu1 %v1854_v23  ;;  %1689 = vmatprep.subr.bf16.mxu0 %v1855_v24  ;;  %v1465_v23 = vcombine.high %v28_v19, %v28_v19 }
  0x4e   :  { %1711 = vmatprep.subr.bf16.mxu1 %v1856_v25 }
  0x50   :  { %1690 = vmatpush3.bf16.msra.mxu0 %v1857_v26 }
  0x51   :  { %1712 = vmatpush3.bf16.msra.mxu1 %v1858_v27  ;;  %1691 = vmatprep.subr.bf16.mxu0 %v1859_v28 }
  0x52   :  { %1713 = vmatprep.subr.bf16.mxu1 %v1860_v29 }
  0x54   :  { %1692 = vmatpush3.bf16.msra.mxu0 %v1861_v30 }
  0x55   :  { %1714 = vmatpush3.bf16.msra.mxu1 %v1862_v31  ;;  %1693 = vmatprep.subr.bf16.mxu0 %v1863_v32 }
  0x56   :  { %1715 = vmatprep.subr.bf16.mxu1 %v1864_v33 }
  0x58   :  { %1694 = vmatpush3.bf16.msra.mxu0 %v1865_v34 }
  0x59   :  { %1716 = vmatpush3.bf16.msra.mxu1 %v1866_v35  ;;  %1695 = vmatprep.subr.bf16.mxu0 %v1867_v36 }
  0x5a   :  { %1717 = vmatprep.subr.bf16.mxu1 %v1868_v37 }
  0x5c   :  { %1696 = vmatpush3.bf16.msra.mxu0 %v1869_v38 }
  0x5d   :  { %1718 = vmatpush3.bf16.msra.mxu1 %v1870_v39  ;;  %1697 = vmatprep.subr.bf16.mxu0 %v1871_v40 }
  0x5e   :  { %1719 = vmatprep.subr.bf16.mxu1 %v1872_v41 }
  0x60   :  { %1698 = vmatpush3.bf16.msra.mxu0 %v1873_v42 }
  0x61   :  { %1720 = vmatpush3.bf16.msra.mxu1 %v1874_v43  ;;  %1727 = vmatprep.subr.bf16.mxu0 %v1879_v50 }
  0x62   :  { %1749 = vmatprep.subr.bf16.mxu1 %v1880_v51 }
  0x63   :  { %1302 = vmatmul.mubr.bf16.vlgmr.msra.gmra.mrb[8].mxu0 %v1458_v46 }
  0x64   :  { %1342 = vmatmul.mubr.bf16.vlgmr.msra.gmra.mrb[8].mxu1 %v1460_v48  ;;  %1728 = vmatpush3.bf16.msra.mxu0 %v1881_v52 }
  0x65   :  { %1750 = vmatpush3.bf16.msra.mxu1 %v1882_v53  ;;  %1729 = vmatprep.subr.bf16.mxu0 %v1883_v54 }
  0x66   :  { %1751 = vmatprep.subr.bf16.mxu1 %v1884_v55  ;;  %1381 = vmatprep.mubr.bf16.mxu0 %v1463_v21 }
  0x67   :  { %1421 = vmatprep.mubr.bf16.mxu1 %v1465_v23 }
  0x68   :  { %1730 = vmatpush3.bf16.msra.mxu0 %v1885_v56 }
  0x69   :  { %1752 = vmatpush3.bf16.msra.mxu1 %v1886_v57  ;;  %1731 = vmatprep.subr.bf16.mxu0 %v1887_v58 }
  0x6a   :  { %1753 = vmatprep.subr.bf16.mxu1 %v1888_v59 }
  0x6c   :  { %1732 = vmatpush3.bf16.msra.mxu0 %v1889_v60 }
  0x6d   :  { %1754 = vmatpush3.bf16.msra.mxu1 %v1890_v61  ;;  %1733 = vmatprep.subr.bf16.mxu0 %v1891_v62 }
  0x6e   :  { %1755 = vmatprep.subr.bf16.mxu1 %v1892_v63 }
  0x70   :  { %1734 = vmatpush3.bf16.msra.mxu0 %v1893_v0 }
  0x71   :  { %1756 = vmatpush3.bf16.msra.mxu1 %v1894_v1  ;;  %1735 = vmatprep.subr.bf16.mxu0 %v1895_v2 }
  0x72   :  { %1757 = vmatprep.subr.bf16.mxu1 %v1896_v3 }
  0x74   :  { %1736 = vmatpush3.bf16.msra.mxu0 %v1897_v4 }
  0x75   :  { %1758 = vmatpush3.bf16.msra.mxu1 %v1898_v5  ;;  %1737 = vmatprep.subr.bf16.mxu0 %v1899_v6  ;;  %v1594_v6 = vld [vmem:[%s2351_s2] ss:$0 sm:$0xff] }
  0x76   :  { %1759 = vmatprep.subr.bf16.mxu1 %v1900_v7 }
  0x78   :  { %1738 = vmatpush3.bf16.msra.mxu0 %v1901_v8 }
  0x79   :  { %1760 = vmatpush3.bf16.msra.mxu1 %v1902_v9  ;;  %1739 = vmatprep.subr.bf16.mxu0 %v1903_v10 }
  0x7a   :  { %1761 = vmatprep.subr.bf16.mxu1 %v1904_v11 }
  0x7c   :  { %1740 = vmatpush3.bf16.msra.mxu0 %v1905_v12 }
  0x7d   :  { %1762 = vmatpush3.bf16.msra.mxu1 %v1906_v13  ;;  %1741 = vmatprep.subr.bf16.mxu0 %v1907_v14 }
  0x7e   :  { %1763 = vmatprep.subr.bf16.mxu1 %v1908_v15 }
  0x80   :  { %1742 = vmatpush3.bf16.msra.mxu0 %v1909_v16 }
  0x81   :  { %1764 = vmatpush3.bf16.msra.mxu1 %v1910_v17 }
  0x83   :  { %1382 = vmatmul.mubr.bf16.vlgmr.msra.gmra.mrb[12].mxu0 %v1462_v20 }
  0x84   :  { %1422 = vmatmul.mubr.bf16.vlgmr.msra.gmra.mrb[12].mxu1 %v1464_v22 }
  0xf6   :  { %v1611_v24 = vpop.f32.mrb[0].mxu0 }
  0xf7   :  { %v1633_v25 = vpop.f32.mrb[0].mxu1  ;;  %v1612_v26 = vpop.f32.mrb[1].mxu0 }
  0xf8   :  { %v1634_v27 = vpop.f32.mrb[1].mxu1  ;;  %v1613_v28 = vadd.f32 %v1612_v26, %v1611_v24  ;;  %v1614_v30 = vpop.f32.mrb[2].mxu0 }
  0xf9   :  { %v1635_v29 = vadd.f32 %v1634_v27, %v1633_v25  ;;  %v1636_v31 = vpop.f32.mrb[2].mxu1  ;;  %v1615_v32 = vpop.f32.mrb[3].mxu0 }
  0xfa   :  { %v1637_v33 = vpop.f32.mrb[3].mxu1 }
  0xfb   :  { %v1184_v34 = vadd.f32 %v1635_v29, %v1613_v28 }
 0x116   :  { %v1655_v35 = vpop.f32.mrb[4].mxu0 }
 0x117   :  { %v1677_v36 = vpop.f32.mrb[4].mxu1  ;;  %v1656_v37 = vpop.f32.mrb[5].mxu0 }
 0x118   :  { %v1678_v38 = vpop.f32.mrb[5].mxu1  ;;  %v1657_v39 = vadd.f32 %v1656_v37, %v1655_v35  ;;  %v1658_v41 = vpop.f32.mrb[6].mxu0 }
 0x119   :  { %v1679_v40 = vadd.f32 %v1678_v38, %v1677_v36  ;;  %v1680_v42 = vpop.f32.mrb[6].mxu1  ;;  %v1659_v43 = vpop.f32.mrb[7].mxu0 }
 0x11a   :  { %v1681_v44 = vpop.f32.mrb[7].mxu1  ;;  %v1224_v45 = vadd.f32 %v1657_v39, %v1184_v34 }
 0x11c   :  { %v1264_v46 = vadd.f32 %v1679_v40, %v1224_v45 }
 0x136   :  { %v1699_v47 = vpop.f32.mrb[8].mxu0 }
 0x137   :  { %v1721_v48 = vpop.f32.mrb[8].mxu1  ;;  %v1700_v49 = vpop.f32.mrb[9].mxu0 }
 0x138   :  { %v1701_v50 = vadd.f32 %v1700_v49, %v1699_v47  ;;  %v1722_v51 = vpop.f32.mrb[9].mxu1  ;;  %v1702_v52 = vpop.f32.mrb[10].mxu0 }
 0x139   :  { %v1723_v53 = vadd.f32 %v1722_v51, %v1721_v48  ;;  %v1724_v54 = vpop.f32.mrb[10].mxu1  ;;  %v1703_v55 = vpop.f32.mrb[11].mxu0 }
 0x13a   :  { %v1304_v56 = vadd.f32 %v1701_v50, %v1264_v46  ;;  %v1725_v57 = vpop.f32.mrb[11].mxu1 }
 0x13c   :  { %v1344_v58 = vadd.f32 %v1723_v53, %v1304_v56 }
 0x156   :  { %v1743_v59 = vpop.f32.mrb[12].mxu0 }
 0x157   :  { %v1765_v60 = vpop.f32.mrb[12].mxu1  ;;  %v1744_v61 = vpop.f32.mrb[13].mxu0 }
 0x158   :  { %v1745_v62 = vadd.f32 %v1744_v61, %v1743_v59  ;;  %v1766_v63 = vpop.f32.mrb[13].mxu1  ;;  %v1746_v0 = vpop.f32.mrb[14].mxu0 }
 0x159   :  { %v1767_v1 = vadd.f32 %v1766_v63, %v1765_v60  ;;  %v1768_v2 = vpop.f32.mrb[14].mxu1  ;;  %v1747_v3 = vpop.f32.mrb[15].mxu0 }
 0x15a   :  { %v1384_v4 = vadd.f32 %v1745_v62, %v1344_v58  ;;  %v1769_v5 = vpop.f32.mrb[15].mxu1 }
 0x15c   :  { %v1424_v7 = vadd.f32 %v1767_v1, %v1384_v4 }
 0x15e   :  { %v1442_v8 = vadd.f32 %v1594_v6, %v1424_v7 }
 0x160   :  { %v1443_v9 = vmax.f32 %v1442_v8, 0.0 }
 0x162   :  { %v1444_v10 = vpack.c.bf16 %v1443_v9, %v1443_v9 }
 0x164   :  { %1445 = vst [vmem:[%s2352_s3] sm:$0xf] %v1444_v10 }

// kernel: vgg_forward.10
= control target key start
LH: loop header
LB: loop body
LE: loop exit
PB: predicated region body
PF: predicated region fallthrough
CT: control target
= control target key end

     0   :  { %v195_v0 = vmov 0.0   ;;  %vm196_vm0 = vmmov 0   ;;  %s250_s1 = inlined_call_operand.vmem [shape: bf16[128,128], index: 1, kind: input, shape index: {}]   ;;  %s251_s0 = inlined_call_operand.vmem [shape: bf16[8,128], index: 0, kind: input, shape index: {}]   ;;  %s252_s2 = inlined_call_operand.vmem [shape: f32[1,128], index: 2, kind: input, shape index: {}]   ;;  %s253_s3 = inlined_call_operand.vmem [shape: bf16[8,128], index: 3, kind: output, shape index: {}]  }
   0x1   :  { %165 = vmatprep.subr.bf16.mxu0 %v195_v0  ;;  %v187_v1 = vld [vmem:[%s250_s1] sm:$0xff]   ;;  %181 = vmatprep.mubr.msk.bf16.mxu0 %vm196_vm0, %v195_v0  ;;  %v188_v2 = vld [vmem:[%s250_s1 + $0x8] sm:$0xff]   ;;  %v189_v3 = vld [vmem:[%s250_s1 + $0x10] sm:$0xff]  }
   0x2   :  { %166 = vmatpush3.bf16.msra.mxu0 %v187_v1  ;;  %v190_v4 = vld [vmem:[%s250_s1 + $0x18] sm:$0xff]   ;;  %v191_v5 = vld [vmem:[%s250_s1 + $0x20] sm:$0xff]   ;;  %v192_v6 = vld [vmem:[%s250_s1 + $0x28] sm:$0xff]  }
   0x3   :  { %167 = vmatprep.subr.bf16.mxu0 %v195_v0  ;;  %v193_v7 = vld [vmem:[%s250_s1 + $0x30] sm:$0xff]   ;;  %v194_v8 = vld [vmem:[%s250_s1 + $0x38] sm:$0xff]   ;;  %v21_v9 = vld [vmem:[%s251_s0] sm:$0xf] }
   0x4   :  { %v155_v10 = vld [vmem:[%s252_s2] ss:$0 sm:$0xff] }
   0x6   :  { %168 = vmatpush3.bf16.msra.mxu0 %v188_v2 }
   0x7   :  { %169 = vmatprep.subr.bf16.mxu0 %v195_v0 }
   0xa   :  { %170 = vmatpush3.bf16.msra.mxu0 %v189_v3 }
   0xb   :  { %171 = vmatprep.subr.bf16.mxu0 %v195_v0 }
   0xe   :  { %172 = vmatpush3.bf16.msra.mxu0 %v190_v4 }
   0xf   :  { %173 = vmatprep.subr.bf16.mxu0 %v195_v0 }
  0x12   :  { %174 = vmatpush3.bf16.msra.mxu0 %v191_v5 }
  0x13   :  { %175 = vmatprep.subr.bf16.mxu0 %v195_v0 }
  0x16   :  { %176 = vmatpush3.bf16.msra.mxu0 %v192_v6 }
  0x17   :  { %177 = vmatprep.subr.bf16.mxu0 %v195_v0 }
  0x1a   :  { %178 = vmatpush3.bf16.msra.mxu0 %v193_v7 }
  0x1b   :  { %179 = vmatprep.subr.bf16.mxu0 %v195_v0 }
  0x1e   :  { %180 = vmatpush3.bf16.msra.mxu0 %v194_v8 }
  0x21   :  { %182 = vmatmul.mubr.bf16.vlgmr.msra.gmra.mrb[0].mxu0 %v21_v9 }
  0xf4   :  { %v120_v11 = vpop.f32.mrb[0].mxu0 }
  0xf5   :  { %v139_v12 = vadd.f32 %v155_v10, %v120_v11  ;;  %v183_v13 = vpop.f32.mrb[1].mxu0 }
  0xf6   :  { %v123_v14 = vpop.f32.mrb[2].mxu0 }
  0xf7   :  { %v140_v15 = vmax.f32 %v139_v12, 0.0  ;;  %v184_v16 = vpop.f32.mrb[3].mxu0 }
  0xf9   :  { %v141_v17 = vpack.c.bf16 %v140_v15, %v140_v15 }
  0xfb   :  { %142 = vst [vmem:[%s253_s3] sm:$0xf] %v141_v17 }

// kernel: vgg_forward.11
= control target key start
LH: loop header
LB: loop body
LE: loop exit
PB: predicated region body
PF: predicated region fallthrough
CT: control target
= control target key end

     0   :  { %v193_v0 = vmov 0.0   ;;  %vm194_vm0 = vmmov 0   ;;  %s248_s1 = inlined_call_operand.vmem [shape: bf16[128,128], index: 1, kind: input, shape index: {}]   ;;  %s249_s0 = inlined_call_operand.vmem [shape: bf16[8,128], index: 0, kind: input, shape index: {}]   ;;  %s250_s2 = inlined_call_operand.vmem [shape: f32[1,128], index: 2, kind: input, shape index: {}]   ;;  %s251_s3 = inlined_call_operand.vmem [shape: f32[8,128], index: 3, kind: output, shape index: {}]  }
   0x1   :  { %163 = vmatprep.subr.bf16.mxu0 %v193_v0  ;;  %v185_v1 = vld [vmem:[%s248_s1] sm:$0xff]   ;;  %179 = vmatprep.mubr.msk.bf16.mxu0 %vm194_vm0, %v193_v0  ;;  %v186_v2 = vld [vmem:[%s248_s1 + $0x8] sm:$0xff]   ;;  %v187_v3 = vld [vmem:[%s248_s1 + $0x10] sm:$0xff]  }
   0x2   :  { %164 = vmatpush3.bf16.msra.mxu0 %v185_v1  ;;  %v188_v4 = vld [vmem:[%s248_s1 + $0x18] sm:$0xff]   ;;  %v189_v5 = vld [vmem:[%s248_s1 + $0x20] sm:$0xff]   ;;  %v190_v6 = vld [vmem:[%s248_s1 + $0x28] sm:$0xff]  }
   0x3   :  { %165 = vmatprep.subr.bf16.mxu0 %v193_v0  ;;  %v191_v7 = vld [vmem:[%s248_s1 + $0x30] sm:$0xff]   ;;  %v192_v8 = vld [vmem:[%s248_s1 + $0x38] sm:$0xff]   ;;  %v21_v9 = vld [vmem:[%s249_s0] sm:$0xf] }
   0x4   :  { %v153_v10 = vld [vmem:[%s250_s2] ss:$0 sm:$0xff] }
   0x6   :  { %166 = vmatpush3.bf16.msra.mxu0 %v186_v2 }
   0x7   :  { %167 = vmatprep.subr.bf16.mxu0 %v193_v0 }
   0xa   :  { %168 = vmatpush3.bf16.msra.mxu0 %v187_v3 }
   0xb   :  { %169 = vmatprep.subr.bf16.mxu0 %v193_v0 }
   0xe   :  { %170 = vmatpush3.bf16.msra.mxu0 %v188_v4 }
   0xf   :  { %171 = vmatprep.subr.bf16.mxu0 %v193_v0 }
  0x12   :  { %172 = vmatpush3.bf16.msra.mxu0 %v189_v5 }
  0x13   :  { %173 = vmatprep.subr.bf16.mxu0 %v193_v0 }
  0x16   :  { %174 = vmatpush3.bf16.msra.mxu0 %v190_v6 }
  0x17   :  { %175 = vmatprep.subr.bf16.mxu0 %v193_v0 }
  0x1a   :  { %176 = vmatpush3.bf16.msra.mxu0 %v191_v7 }
  0x1b   :  { %177 = vmatprep.subr.bf16.mxu0 %v193_v0 }
  0x1e   :  { %178 = vmatpush3.bf16.msra.mxu0 %v192_v8 }
  0x21   :  { %180 = vmatmul.mubr.bf16.vlgmr.msra.gmra.mrb[0].mxu0 %v21_v9 }
  0xf4   :  { %v120_v11 = vpop.f32.mrb[0].mxu0 }
  0xf5   :  { %v139_v12 = vadd.f32 %v153_v10, %v120_v11  ;;  %v181_v13 = vpop.f32.mrb[1].mxu0 }
  0xf6   :  { %v123_v14 = vpop.f32.mrb[2].mxu0 }
  0xf7   :  { %140 = vst [vmem:[%s251_s3] sm:$0xff] %v139_v12  ;;  %v182_v15 = vpop.f32.mrb[3].mxu0 }

</bundles_post_ra>
